<compile_context>
chip_gen: v7x
topology: tpu7x:2x2x1
jax: 0.10.0
libtpu: 0.0.40
codegen_flags: <defaults>
</compile_context>

<pallas_src>
import functools

import jax
import jax.numpy as jnp
from jax.experimental import pallas as pl
from jax.experimental.pallas import tpu as pltpu


def _cdiv(a, b):
    return -(-a // b)


def _round_up(x, m):
    return _cdiv(x, m) * m


def _pick_row_tile(m_img, batch, target=1024):
    """Pick (tq, nt): nt*tq >= m_img, tq a multiple of 128 (lane-dense stores),
    and batch*nt >= 2 when possible so the second core gets work."""
    nt = max(1, _cdiv(m_img, target))
    if batch * nt < 2 and m_img > 128:
        nt = 2
    tq = _round_up(_cdiv(m_img, nt), 128)
    return tq, nt


def _vmem_limit_bytes():
    """~3/4 of physical VMEM: ~96 MiB on v5e/v6e (128 MiB), ~48 MiB on v7x (64 MiB)."""
    try:
        cap = int(pltpu.get_tpu_info().vmem_capacity_bytes)
    except Exception:
        return 48 * 1024 * 1024
    return min(cap * 3 // 4, 96 * 1024 * 1024)


# -----------------------------------------------------------------------------
# Pallas kernel: fused  conv3x3 (3 aligned window loads, dx-packed matmuls)
#                -> folded BN/bias -> LeakyReLU -> conv1x1 -> occlusion multiply
# -----------------------------------------------------------------------------
def _warp_head_kernel(feat_ref, w3_ref, shift_ref, w4t_ref, b4_ref, occ_ref,
                      out_ref, *, wp, tq, win_rows):
    # feat_ref : (S, Cin)         bf16  zero-padded image slab, whole image resident
    #                                   (block index depends only on the batch axis)
    # w3_ref   : (3, Cin, 3*Cmid) bf16  conv3x3; dx taps packed along N, BN/bias folded
    # shift_ref: (1, Cmid)        f32   folded BN shift + conv3 bias
    # w4t_ref  : (Cout, Cmid)     bf16  conv1x1 weight, (out, in)
    # b4_ref   : (Cout, 1)        f32   conv1x1 bias (column -> broadcasts over lanes)
    # occ_ref  : (1, tq)          f32   occlusion row (broadcasts over channel sublanes)
    # out_ref  : (Cout, tq)       f32   channels-first, lane-dense store
    cmid = shift_ref.shape[-1]
    q0 = pl.program_id(1) * tq                 # tq is a multiple of 128 -> q0 aligned
    acc = jnp.zeros((tq, cmid), jnp.float32)
    for dy in range(3):                        # static unroll over kernel rows
        off = (dy * wp) % 16                   # static sublane phase of this tap row
        base = pl.multiple_of(q0 + (dy * wp - off), 16)
        win = feat_ref[pl.ds(base, win_rows), :]                  # aligned (tq+32, Cin)
        # one MXU push per dy: K=Cin, N=3*Cmid (the three dx taps share the push)
        q = jnp.dot(win, w3_ref[dy], preferred_element_type=jnp.float32)
        for dx in range(3):                    # dx shift applied on the f32 result (XLU)
            acc = acc + q[off + dx:off + dx + tq, dx * cmid:(dx + 1) * cmid]
    h = acc + shift_ref[...]                   # folded BatchNorm(eval) + conv bias
    h = jnp.where(h >= 0.0, h, 0.01 * h)       # LeakyReLU (slope 0.01)
    # conv1x1 as (Cout, Cmid) x (tq, Cmid)^T -> (Cout, tq): channels-first result so
    # the store is lane-dense and no NHWC->NCHW transpose is needed in the wrapper.
    y = jax.lax.dot_general(w4t_ref[...], h.astype(w4t_ref.dtype),
                            (((1,), (1,)), ((), ())),
                            preferred_element_type=jnp.float32)
    y = (y + b4_ref[...]) * occ_ref[...]
    out_ref[...] = y


def warp_head_pallas(feat, w3p, shift, w4t, b4, occ, *, batch, s_rows, wp, tq, nt):
    """feat: (B, S, Cin) bf16 zero-padded slabs; occ: (B*nt, 1, tq) f32.
    Returns (B, Cout, nt*tq) f32 (channels-first, lane-dense)."""
    cin = feat.shape[-1]
    cmid3 = w3p.shape[-1]
    cmid = cmid3 // 3
    cout = w4t.shape[0]
    mq = nt * tq
    win_rows = tq + 32

    feat_kwargs = {}
    if 2 * s_rows * cin * 2 > 16 * 1024 * 1024:
        # Large whole-image slab: single-buffer it (its block index only changes
        # once per nt inner steps) so residency fits v7x's 64 MiB VMEM.
        feat_kwargs["pipeline_mode"] = pl.Buffered(1)

    kernel = functools.partial(_warp_head_kernel, wp=wp, tq=tq, win_rows=win_rows)
    flops = batch * mq * (2 * 9 * cin * cmid + 2 * cmid * cout)
    bytes_accessed = (batch * s_rows * cin * 2            # feature slab (bf16)
                      + int(w3p.size) * 2 + int(w4t.size) * 2
                      + (int(shift.size) + int(b4.size) + int(occ.size)) * 4
                      + batch * mq * cout * 4)            # output (f32)

    return pl.pallas_call(
        kernel,
        out_shape=jax.ShapeDtypeStruct((batch, cout, mq), jnp.float32),
        grid_spec=pltpu.PrefetchScalarGridSpec(
            num_scalar_prefetch=0,
            grid=(batch, nt),
            in_specs=[
                # whole padded image slab, re-DMA'd only when the batch index changes
                pl.BlockSpec((None, s_rows, cin), lambda b, j: (b, 0, 0), **feat_kwargs),
                pl.BlockSpec((3, cin, cmid3), lambda b, j: (0, 0, 0)),   # packed conv3x3
                pl.BlockSpec((1, cmid), lambda b, j: (0, 0)),            # folded BN/bias
                pl.BlockSpec((cout, cmid), lambda b, j: (0, 0)),         # conv1x1 weight
                pl.BlockSpec((cout, 1), lambda b, j: (0, 0)),            # conv1x1 bias
                pl.BlockSpec((None, 1, tq), lambda b, j: (b * nt + j, 0, 0)),  # occlusion
            ],
            out_specs=pl.BlockSpec((None, cout, tq), lambda b, j: (b, 0, j)),
        ),
        compiler_params=pltpu.CompilerParams(
            dimension_semantics=("parallel", "parallel"),
            vmem_limit_bytes=_vmem_limit_bytes(),
        ),
        cost_estimate=pl.CostEstimate(flops=flops, transcendentals=0,
                                      bytes_accessed=bytes_accessed),
    )(feat, w3p, shift, w4t, b4, occ)


# -----------------------------------------------------------------------------
# Plain-JAX glue
# -----------------------------------------------------------------------------
def grid_sample_3d(inp, grid):
    """F.grid_sample for 5-D input, mode='bilinear' (trilinear),
    padding_mode='zeros', align_corners=False.
    inp: (N, C, D, H, W), grid: (N, Do, Ho, Wo, 3) with (x, y, z) in [-1, 1]."""
    N, C, D, H, W = inp.shape
    gx, gy, gz = grid[..., 0], grid[..., 1], grid[..., 2]
    ix = ((gx + 1.0) * W - 1.0) / 2.0
    iy = ((gy + 1.0) * H - 1.0) / 2.0
    iz = ((gz + 1.0) * D - 1.0) / 2.0
    ix0, iy0, iz0 = jnp.floor(ix), jnp.floor(iy), jnp.floor(iz)
    ix1, iy1, iz1 = ix0 + 1.0, iy0 + 1.0, iz0 + 1.0
    wx1, wy1, wz1 = ix - ix0, iy - iy0, iz - iz0
    wx0, wy0, wz0 = 1.0 - wx1, 1.0 - wy1, 1.0 - wz1

    inp_flat = inp.reshape(N, C, D * H * W)
    out_spatial = gx.shape[1:]
    P = out_spatial[0] * out_spatial[1] * out_spatial[2]

    def gather(zi, yi, xi):
        valid = ((zi >= 0) & (zi <= D - 1) & (yi >= 0) & (yi <= H - 1)
                 & (xi >= 0) & (xi <= W - 1))
        zc = jnp.clip(zi, 0, D - 1).astype(jnp.int32)
        yc = jnp.clip(yi, 0, H - 1).astype(jnp.int32)
        xc = jnp.clip(xi, 0, W - 1).astype(jnp.int32)
        flat = (zc * H + yc) * W + xc                       # (N, Do, Ho, Wo)
        idx = jnp.broadcast_to(flat.reshape(N, 1, P), (N, C, P))
        vals = jnp.take_along_axis(inp_flat, idx, axis=2)   # (N, C, P)
        vals = vals.reshape(N, C, *out_spatial)
        return vals * valid[:, None].astype(inp.dtype)

    out = (gather(iz0, iy0, ix0) * (wz0 * wy0 * wx0)[:, None]
           + gather(iz0, iy0, ix1) * (wz0 * wy0 * wx1)[:, None]
           + gather(iz0, iy1, ix0) * (wz0 * wy1 * wx0)[:, None]
           + gather(iz0, iy1, ix1) * (wz0 * wy1 * wx1)[:, None]
           + gather(iz1, iy0, ix0) * (wz1 * wy0 * wx0)[:, None]
           + gather(iz1, iy0, ix1) * (wz1 * wy0 * wx1)[:, None]
           + gather(iz1, iy1, ix0) * (wz1 * wy1 * wx0)[:, None]
           + gather(iz1, iy1, ix1) * (wz1 * wy1 * wx1)[:, None])
    return out


def dense_motion_surrogate(feature, kp_source, kp_driving):
    """Deterministic stand-in for DenseMotionNetwork (source not provided)."""
    B, C, D, H, W = feature.shape
    zs = (jnp.arange(D, dtype=jnp.float32) + 0.5) / D * 2.0 - 1.0
    ys = (jnp.arange(H, dtype=jnp.float32) + 0.5) / H * 2.0 - 1.0
    xs = (jnp.arange(W, dtype=jnp.float32) + 0.5) / W * 2.0 - 1.0
    zz, yy, xx = jnp.meshgrid(zs, ys, xs, indexing="ij")
    identity = jnp.stack([xx, yy, zz], axis=-1)                     # (D, H, W, 3)
    disp = jnp.mean(kp_driving - kp_source, axis=1) * 0.1           # (B, 3)
    deformation = identity[None] + disp[:, None, None, None, :]     # (B, D, H, W, 3)
    occlusion = jax.nn.sigmoid(jnp.mean(feature, axis=(1, 2)))[:, None]  # (B, 1, H, W)
    return deformation, occlusion


class WarpingNetworkPallas:
    """JAX/Pallas implementation of WarpingNetwork.forward (eval mode)."""

    def __init__(self, num_kp=21, block_expansion=16, max_features=64,
                 num_down_blocks=2, reshape_channel=8, seed=42):
        self.num_kp = num_kp
        self.reshape_channel = reshape_channel
        cin = max_features
        cmid = block_expansion * 2 ** num_down_blocks
        k = jax.random.split(jax.random.PRNGKey(seed), 8)
        f32 = jnp.float32
        # third: SameBlock2d = Conv2d(cin, cmid, 3, pad=1) + BatchNorm2d + LeakyReLU
        w3 = jax.random.normal(k[0], (cmid, cin, 3, 3), f32) * 0.05
        b3 = jax.random.normal(k[1], (cmid,), f32) * 0.05
        gamma = 1.0 + jax.random.normal(k[2], (cmid,), f32) * 0.05
        beta = jax.random.normal(k[3], (cmid,), f32) * 0.05
        rmean = jax.random.normal(k[4], (cmid,), f32) * 0.05
        rvar = 1.0 + jnp.abs(jax.random.normal(k[5], (cmid,), f32)) * 0.05
        eps = 1e-5
        bn_scale = gamma / jnp.sqrt(rvar + eps)
        bn_shift = beta - rmean * bn_scale
        # Fold BatchNorm(eval) + conv bias into the conv3x3 weights.
        w3f = w3 * bn_scale[:, None, None, None]                    # (out, in, 3, 3)
        self.shift = b3 * bn_scale + bn_shift                       # (Cmid,)
        # Packed layout (3, Cin, 3*Cmid): [dy, :, dx*Cmid:(dx+1)*Cmid] = W[:, :, dy, dx]^T
        w3_t = jnp.transpose(w3f, (2, 1, 3, 0))                     # (ky, in, kx, out)
        self.w3p = w3_t.reshape(3, cin, 3 * cmid).astype(jnp.bfloat16)
        # fourth: Conv2d(cmid, cmid, 1)
        w4 = jax.random.normal(k[6], (cmid, cmid, 1, 1), f32) * 0.05
        self.b4 = jax.random.normal(k[7], (cmid,), f32) * 0.05
        self.w4t = w4.reshape(cmid, cmid).astype(jnp.bfloat16)      # (out, in)
        self.cin, self.cmid = cin, cmid

    def __call__(self, feature_3d, kp_source, kp_driving):
        B, C, D, H, W = feature_3d.shape
        cin, cmid = self.cin, self.cmid
        assert C * D == cin, "reshape_channel * depth must equal max_features"
        deformation, occlusion_map = dense_motion_surrogate(
            feature_3d, kp_source, kp_driving)
        # deform_input: F.grid_sample(feature_3d, deformation, align_corners=False)
        out = grid_sample_3d(feature_3d, deformation)               # (B, C, D, H, W)
        out2d = out.reshape(B, C * D, H, W)                         # view(bs, c*d, h, w)

        # --- fused Pallas head (conv3x3 + BN + LeakyReLU + conv1x1 + occlusion) ---
        Wp = W + 2                               # padded row stride (2 junk cols/row)
        m_img = H * Wp                           # flat output positions per image
        tq, nt = _pick_row_tile(m_img, B)
        mq = nt * tq
        S = _round_up(mq + 2 * Wp + 32, 16)      # slab rows incl. tap-window headroom

        # Cast to bf16 BEFORE the layout ops so the transpose/pads move half the bytes.
        feat = jnp.transpose(out2d.astype(jnp.bfloat16), (0, 2, 3, 1))   # NHWC
        feat = jnp.pad(feat, ((0, 0), (1, 1), (1, 1), (0, 0)))           # (B, H+2, Wp, Cin)
        feat = feat.reshape(B, (H + 2) * Wp, cin)
        feat = jnp.pad(feat, ((0, 0), (0, S - (H + 2) * Wp), (0, 0)))    # (B, S, Cin)

        occ = occlusion_map[:, 0]                                        # (B, H, W)
        occ = jnp.pad(occ, ((0, 0), (0, 0), (0, Wp - W)))                # (B, H, Wp)
        occ = jnp.pad(occ.reshape(B, m_img), ((0, 0), (0, mq - m_img)))
        occ = occ.reshape(B * nt, 1, tq)                                 # lane-dense rows

        y = warp_head_pallas(feat, self.w3p, self.shift[None, :], self.w4t,
                             self.b4[:, None], occ,
                             batch=B, s_rows=S, wp=Wp, tq=tq, nt=nt)     # (B, Cout, mq)
        # Drop padded rows / junk columns; output is already channels-first (NCHW).
        y = y[:, :, :m_img].reshape(B, cmid, H, Wp)[:, :, :, :W]
        return y

    # Pure-JAX reference for the Pallas head (same bf16 operand quantization,
    # f32 accumulation) used for the correctness check.
    def reference(self, feature_3d, kp_source, kp_driving):
        B, C, D, H, W = feature_3d.shape
        cin, cmid = self.cin, self.cmid
        deformation, occlusion_map = dense_motion_surrogate(
            feature_3d, kp_source, kp_driving)
        out = grid_sample_3d(feature_3d, deformation).reshape(B, C * D, H, W)
        x = out.astype(jnp.bfloat16).astype(jnp.float32)
        w3 = jnp.asarray(self.w3p, jnp.float32).reshape(3, cin, 3, cmid)  # (ky,in,kx,out)
        w3 = jnp.transpose(w3, (3, 1, 0, 2))                              # OIHW
        dn = ("NCHW", "OIHW", "NCHW")
        h = jax.lax.conv_general_dilated(x, w3, (1, 1), "SAME", dimension_numbers=dn,
                                         precision=jax.lax.Precision.HIGHEST)
        h = h + self.shift[None, :, None, None]
        h = jnp.where(h >= 0.0, h, 0.01 * h)
        h = h.astype(jnp.bfloat16).astype(jnp.float32)
        w4 = jnp.asarray(self.w4t, jnp.float32).reshape(cmid, cmid, 1, 1)  # OIHW
        y = jax.lax.conv_general_dilated(h, w4, (1, 1), "VALID", dimension_numbers=dn,
                                         precision=jax.lax.Precision.HIGHEST)
        y = y + self.b4[None, :, None, None]
        return y * occlusion_map


if __name__ == "__main__":
    # Small shapes consistent with the module: reshape_channel * D == max_features
    B, C, D, H, W = 2, 8, 8, 16, 16
    NUM_KP = 21

    key = jax.random.PRNGKey(0)
    k1, k2, k3 = jax.random.split(key, 3)
    feature_3d = jax.random.normal(k1, (B, C, D, H, W), jnp.float32)
    kp_source = jax.random.normal(k2, (B, NUM_KP, 3), jnp.float32) * 0.3
    kp_driving = jax.random.normal(k3, (B, NUM_KP, 3), jnp.float32) * 0.3

    net = WarpingNetworkPallas(num_kp=NUM_KP, block_expansion=16, max_features=C * D,
                               num_down_blocks=2, reshape_channel=C)

    out = jax.block_until_ready(net(feature_3d, kp_source, kp_driving))
    ref = jax.block_until_ready(net.reference(feature_3d, kp_source, kp_driving))

    assert out.shape == (B, 64, H, W), out.shape
    err = float(jnp.max(jnp.abs(out - ref)))
    assert err < 2e-3, err

    print("KERNEL_OK")
</pallas_src>

<mosaic_0001>
module attributes {stable_mosaic.version = 11 : i64} {
  func.func @_warp_head_kernel(%arg0: i32, %arg1: i32, %arg2: memref<1x464x64xbf16, #tpu.memory_space<vmem>>, %arg3: memref<3x64x192xbf16, #tpu.memory_space<vmem>>, %arg4: memref<1x64xf32, #tpu.memory_space<vmem>>, %arg5: memref<64x64xbf16, #tpu.memory_space<vmem>>, %arg6: memref<64x1xf32, #tpu.memory_space<vmem>>, %arg7: memref<1x1x384xf32, #tpu.memory_space<vmem>>, %arg8: memref<1x64x384xf32, #tpu.memory_space<vmem>>) attributes {dimension_semantics = [#tpu.dimension_semantics<parallel>, #tpu.dimension_semantics<parallel>], iteration_bounds = array<i64: 2, 1>, scalar_prefetch = 0 : i64, scratch_operands = 0 : i64, tpu.core_type = #tpu.core_type<tc>, window_params = [{transform_indices = @transform_0, window_bounds = array<i64: 1, 464, 64>}, {pipeline_mode = #tpu.pipeline_mode<synchronous>, transform_indices = @transform_1, window_bounds = array<i64: 3, 64, 192>}, {pipeline_mode = #tpu.pipeline_mode<synchronous>, transform_indices = @transform_2, window_bounds = array<i64: 1, 64>}, {pipeline_mode = #tpu.pipeline_mode<synchronous>, transform_indices = @transform_3, window_bounds = array<i64: 64, 64>}, {pipeline_mode = #tpu.pipeline_mode<synchronous>, transform_indices = @transform_4, window_bounds = array<i64: 64, 1>}, {transform_indices = @transform_5, window_bounds = array<i64: 1, 1, 384>}, {transform_indices = @transform_6, window_bounds = array<i64: 1, 64, 384>}]} {
    %c384_i32 = arith.constant 384 : i32
    %0 = arith.muli %arg1, %c384_i32 : i32
    %cst = arith.constant 0.000000e+00 : f32
    %1 = vector.broadcast %cst : f32 to vector<384x64xf32>
    %c0_i32 = arith.constant 0 : i32
    %2 = arith.addi %0, %c0_i32 : i32
    %3 = tpu.assume_multiple %2, 16 : i32
    %c0 = arith.constant 0 : index
    %4 = arith.index_cast %3 : i32 to index
    %c0_0 = arith.constant 0 : index
    %5 = vector.load %arg2[%c0, %4, %c0_0] : memref<1x464x64xbf16, #tpu.memory_space<vmem>>, vector<1x416x64xbf16>
    %6 = vector.shape_cast %5 : vector<1x416x64xbf16> to vector<416x64xbf16>
    %c0_1 = arith.constant 0 : index
    %c0_2 = arith.constant 0 : index
    %c0_3 = arith.constant 0 : index
    %7 = vector.load %arg3[%c0_1, %c0_2, %c0_3] : memref<3x64x192xbf16, #tpu.memory_space<vmem>>, vector<1x64x192xbf16>
    %8 = vector.shape_cast %7 : vector<1x64x192xbf16> to vector<64x192xbf16>
    %cst_4 = arith.constant dense<0.000000e+00> : vector<416x192xf32>
    %9 = tpu.matmul %6, %8, %cst_4 {dimension_numbers = #tpu.dot_dimension_numbers<[1], [0], [0], [1], [0, 0, 1, 1], [], []>} : vector<416x64xbf16>, vector<64x192xbf16>, vector<416x192xf32> -> vector<416x192xf32>
    %10 = vector.extract_strided_slice %9 {offsets = [0, 0], sizes = [384, 64], strides = [1, 1]} : vector<416x192xf32> to vector<384x64xf32>
    %11 = arith.addf %1, %10 : vector<384x64xf32>
    %12 = vector.extract_strided_slice %9 {offsets = [1, 64], sizes = [384, 64], strides = [1, 1]} : vector<416x192xf32> to vector<384x64xf32>
    %13 = arith.addf %11, %12 : vector<384x64xf32>
    %14 = vector.extract_strided_slice %9 {offsets = [2, 128], sizes = [384, 64], strides = [1, 1]} : vector<416x192xf32> to vector<384x64xf32>
    %15 = arith.addf %13, %14 : vector<384x64xf32>
    %c16_i32 = arith.constant 16 : i32
    %16 = arith.addi %0, %c16_i32 : i32
    %17 = tpu.assume_multiple %16, 16 : i32
    %c0_5 = arith.constant 0 : index
    %18 = arith.index_cast %17 : i32 to index
    %c0_6 = arith.constant 0 : index
    %19 = vector.load %arg2[%c0_5, %18, %c0_6] : memref<1x464x64xbf16, #tpu.memory_space<vmem>>, vector<1x416x64xbf16>
    %20 = vector.shape_cast %19 : vector<1x416x64xbf16> to vector<416x64xbf16>
    %c1 = arith.constant 1 : index
    %c0_7 = arith.constant 0 : index
    %c0_8 = arith.constant 0 : index
    %21 = vector.load %arg3[%c1, %c0_7, %c0_8] : memref<3x64x192xbf16, #tpu.memory_space<vmem>>, vector<1x64x192xbf16>
    %22 = vector.shape_cast %21 : vector<1x64x192xbf16> to vector<64x192xbf16>
    %cst_9 = arith.constant dense<0.000000e+00> : vector<416x192xf32>
    %23 = tpu.matmul %20, %22, %cst_9 {dimension_numbers = #tpu.dot_dimension_numbers<[1], [0], [0], [1], [0, 0, 1, 1], [], []>} : vector<416x64xbf16>, vector<64x192xbf16>, vector<416x192xf32> -> vector<416x192xf32>
    %24 = vector.extract_strided_slice %23 {offsets = [2, 0], sizes = [384, 64], strides = [1, 1]} : vector<416x192xf32> to vector<384x64xf32>
    %25 = arith.addf %15, %24 : vector<384x64xf32>
    %26 = vector.extract_strided_slice %23 {offsets = [3, 64], sizes = [384, 64], strides = [1, 1]} : vector<416x192xf32> to vector<384x64xf32>
    %27 = arith.addf %25, %26 : vector<384x64xf32>
    %28 = vector.extract_strided_slice %23 {offsets = [4, 128], sizes = [384, 64], strides = [1, 1]} : vector<416x192xf32> to vector<384x64xf32>
    %29 = arith.addf %27, %28 : vector<384x64xf32>
    %c32_i32 = arith.constant 32 : i32
    %30 = arith.addi %0, %c32_i32 : i32
    %31 = tpu.assume_multiple %30, 16 : i32
    %c0_10 = arith.constant 0 : index
    %32 = arith.index_cast %31 : i32 to index
    %c0_11 = arith.constant 0 : index
    %33 = vector.load %arg2[%c0_10, %32, %c0_11] : memref<1x464x64xbf16, #tpu.memory_space<vmem>>, vector<1x416x64xbf16>
    %34 = vector.shape_cast %33 : vector<1x416x64xbf16> to vector<416x64xbf16>
    %c2 = arith.constant 2 : index
    %c0_12 = arith.constant 0 : index
    %c0_13 = arith.constant 0 : index
    %35 = vector.load %arg3[%c2, %c0_12, %c0_13] : memref<3x64x192xbf16, #tpu.memory_space<vmem>>, vector<1x64x192xbf16>
    %36 = vector.shape_cast %35 : vector<1x64x192xbf16> to vector<64x192xbf16>
    %cst_14 = arith.constant dense<0.000000e+00> : vector<416x192xf32>
    %37 = tpu.matmul %34, %36, %cst_14 {dimension_numbers = #tpu.dot_dimension_numbers<[1], [0], [0], [1], [0, 0, 1, 1], [], []>} : vector<416x64xbf16>, vector<64x192xbf16>, vector<416x192xf32> -> vector<416x192xf32>
    %38 = vector.extract_strided_slice %37 {offsets = [4, 0], sizes = [384, 64], strides = [1, 1]} : vector<416x192xf32> to vector<384x64xf32>
    %39 = arith.addf %29, %38 : vector<384x64xf32>
    %40 = vector.extract_strided_slice %37 {offsets = [5, 64], sizes = [384, 64], strides = [1, 1]} : vector<416x192xf32> to vector<384x64xf32>
    %41 = arith.addf %39, %40 : vector<384x64xf32>
    %42 = vector.extract_strided_slice %37 {offsets = [6, 128], sizes = [384, 64], strides = [1, 1]} : vector<416x192xf32> to vector<384x64xf32>
    %43 = arith.addf %41, %42 : vector<384x64xf32>
    %c0_15 = arith.constant 0 : index
    %c0_16 = arith.constant 0 : index
    %44 = vector.load %arg4[%c0_15, %c0_16] : memref<1x64xf32, #tpu.memory_space<vmem>>, vector<1x64xf32>
    %45 = vector.broadcast %44 : vector<1x64xf32> to vector<384x64xf32>
    %46 = arith.addf %43, %45 : vector<384x64xf32>
    %cst_17 = arith.constant 0.000000e+00 : f32
    %47 = vector.broadcast %cst_17 : f32 to vector<384x64xf32>
    %48 = arith.cmpf oge, %46, %47 : vector<384x64xf32>
    %cst_18 = arith.constant 0.00999999977 : f32
    %49 = vector.broadcast %cst_18 : f32 to vector<384x64xf32>
    %50 = arith.mulf %49, %46 : vector<384x64xf32>
    %51 = arith.select %48, %46, %50 : vector<384x64xi1>, vector<384x64xf32>
    %c0_19 = arith.constant 0 : index
    %c0_20 = arith.constant 0 : index
    %52 = vector.load %arg5[%c0_19, %c0_20] : memref<64x64xbf16, #tpu.memory_space<vmem>>, vector<64x64xbf16>
    %53 = arith.truncf %51 : vector<384x64xf32> to vector<384x64xbf16>
    %cst_21 = arith.constant dense<0.000000e+00> : vector<64x384xf32>
    %54 = tpu.matmul %52, %53, %cst_21 {dimension_numbers = #tpu.dot_dimension_numbers<[1], [1], [0], [0], [0, 0, 1, 0], [], []>} : vector<64x64xbf16>, vector<384x64xbf16>, vector<64x384xf32> -> vector<64x384xf32>
    %c0_22 = arith.constant 0 : index
    %c0_23 = arith.constant 0 : index
    %55 = vector.load %arg6[%c0_22, %c0_23] : memref<64x1xf32, #tpu.memory_space<vmem>>, vector<64x1xf32>
    %56 = vector.broadcast %55 : vector<64x1xf32> to vector<64x384xf32>
    %57 = arith.addf %54, %56 : vector<64x384xf32>
    %c0_24 = arith.constant 0 : index
    %c0_25 = arith.constant 0 : index
    %c0_26 = arith.constant 0 : index
    %58 = vector.load %arg7[%c0_24, %c0_25, %c0_26] : memref<1x1x384xf32, #tpu.memory_space<vmem>>, vector<1x1x384xf32>
    %59 = vector.shape_cast %58 : vector<1x1x384xf32> to vector<1x384xf32>
    %60 = vector.broadcast %59 : vector<1x384xf32> to vector<64x384xf32>
    %61 = arith.mulf %57, %60 : vector<64x384xf32>
    %c0_27 = arith.constant 0 : index
    %c0_28 = arith.constant 0 : index
    %c0_29 = arith.constant 0 : index
    %62 = vector.load %arg8[%c0_27, %c0_28, %c0_29] : memref<1x64x384xf32, #tpu.memory_space<vmem>>, vector<1x64x384xf32>
    %63 = vector.shape_cast %62 : vector<1x64x384xf32> to vector<64x384xf32>
    %64 = vector.shape_cast %61 : vector<64x384xf32> to vector<1x64x384xf32>
    tpu.vector_store %arg8[%c0_27, %c0_28, %c0_29], %64 {strides = array<i32>} : memref<1x64x384xf32, #tpu.memory_space<vmem>>, vector<1x64x384xf32>,
    return
  }
  func.func @transform_0(%arg0: i32, %arg1: i32) -> (i32, i32, i32) {
    %c0_i32 = arith.constant 0 : i32
    %c0_i32_0 = arith.constant 0 : i32
    %c0_i32_1 = arith.constant 0 : i32
    return %arg0, %c0_i32, %c0_i32_0 : i32, i32, i32
  }
  func.func @transform_1(%arg0: i32, %arg1: i32) -> (i32, i32, i32) {
    %c0_i32 = arith.constant 0 : i32
    %c0_i32_0 = arith.constant 0 : i32
    %c0_i32_1 = arith.constant 0 : i32
    %c0_i32_2 = arith.constant 0 : i32
    return %c0_i32, %c0_i32_0, %c0_i32_1 : i32, i32, i32
  }
  func.func @transform_2(%arg0: i32, %arg1: i32) -> (i32, i32) {
    %c0_i32 = arith.constant 0 : i32
    %c0_i32_0 = arith.constant 0 : i32
    %c0_i32_1 = arith.constant 0 : i32
    return %c0_i32, %c0_i32_0 : i32, i32
  }
  func.func @transform_3(%arg0: i32, %arg1: i32) -> (i32, i32) {
    %c0_i32 = arith.constant 0 : i32
    %c0_i32_0 = arith.constant 0 : i32
    %c0_i32_1 = arith.constant 0 : i32
    return %c0_i32, %c0_i32_0 : i32, i32
  }
  func.func @transform_4(%arg0: i32, %arg1: i32) -> (i32, i32) {
    %c0_i32 = arith.constant 0 : i32
    %c0_i32_0 = arith.constant 0 : i32
    %c0_i32_1 = arith.constant 0 : i32
    return %c0_i32, %c0_i32_0 : i32, i32
  }
  func.func @transform_5(%arg0: i32, %arg1: i32) -> (i32, i32, i32) {
    %c1_i32 = arith.constant 1 : i32
    %0 = arith.muli %arg0, %c1_i32 : i32
    %1 = arith.addi %0, %arg1 : i32
    %c0_i32 = arith.constant 0 : i32
    %c0_i32_0 = arith.constant 0 : i32
    %c0_i32_1 = arith.constant 0 : i32
    return %1, %c0_i32, %c0_i32_0 : i32, i32, i32
  }
  func.func @transform_6(%arg0: i32, %arg1: i32) -> (i32, i32, i32) {
    %c0_i32 = arith.constant 0 : i32
    %c0_i32_0 = arith.constant 0 : i32
    return %arg0, %c0_i32, %arg1 : i32, i32, i32
  }
}

</mosaic_0001>

<bundles_post_ra>
// kernel: tpu_custom_call.1
= control target key start
LH: loop header
LB: loop body
LE: loop exit
PB: predicated region body
PF: predicated region fallthrough
CT: control target
= control target key end

     0   :  { %11 = vsyncpa [#allocation3], 0  ;;  %s8928_s0 = inlined_call_operand.vmem [shape: bf16[2,464,64], index: 0, kind: input, shape index: {}]   ;;  %s8929_s1 = inlined_call_operand.vmem [shape: bf16[3,64,192], index: 1, kind: input, shape index: {}]   ;;  %s8930_s2 = inlined_call_operand.vmem [shape: f32[1,64], index: 2, kind: input, shape index: {}]   ;;  %s8931_s3 = inlined_call_operand.vmem [shape: bf16[64,64], index: 3, kind: input, shape index: {}]   ;;  %s8932_s4 = inlined_call_operand.vmem [shape: f32[64,1], index: 4, kind: input, shape index: {}]   ;;  %s8933_s5 = inlined_call_operand.vmem [shape: f32[2,1,384], index: 5, kind: input, shape index: {}]   ;;  %s8934_s6 = inlined_call_operand.hbm [shape: f32[2,64,384], index: 6, kind: output, shape index: {}]  }
   0x1   :  { %13 = vsyncpa [#allocation3 + $0x1], 0  ;;  %s5677_s21 = smov 0   ;;  %s5679_s22 = smov 0  }
   0x2   :  { %s5681_s23 = smov 0   ;;  %s5683_s24 = smov 0  }
   0x3   :  { %s5685_s25 = smov 0   ;;  %s5687_s26 = smov 0  }
   0x4 LB: > { %s4966_s27 = sadd.s32 4294967295, %s5635_s26   ;;  %s4967_s28 = sadd.s32 4294967294, %s5635_s26   ;;  %s5635_s26 = sphi %s5687_s26, %s19_s26   ;;  %s5631_s25 = sphi %s5685_s25, %s9681_s25   ;;  %s5627_s24 = sphi %s5683_s24, %s9680_s24   ;;  %s5623_s23 = sphi %s5681_s23, %s9679_s23   ;;  %s5619_s22 = sphi %s5679_s22, %s9678_s22   ;;  %s5615_s21 = sphi %s5677_s21, %s9677_s21  }
   0x5   : > { %s31_s29 = sadd.s32 1, %s5631_s25  ;;  %s178_s30 = sadd.s32 1, %s5623_s23 }
   0x6   : > { %p33_p0 = scmp.ge.s32.totalorder %s31_s29, 2  ;;  %p188_p1 = scmp.ne.s32.totalorder %s5623_s23, %s5619_s22 }
   0x7   : > { %p189_p2 = scmp.eq.s32.totalorder %s4966_s27, 1  ;;  %p194_p3 = scmp.ne.s32.totalorder %s5619_s22, %s5615_s21 }
   0x8   : > { %s9683_s29 = smov (%p33_p0, %s31_s29), 0  ;;  %p195_p5 = scmp.eq.s32.totalorder %s4967_s28, 1 }
   0x9   : > { %p5717_p4 = por %p189_p2, %p188_p1  ;;  %s173_s8 = ssub.s32 %s5631_s25, %s9683_s29 }
   0xa   : > { %p4970_p6 = scmp.ge.s32.totalorder %s5635_s26, 1  ;;  %p176_p7 = scmp.eq.s32.totalorder %s173_s8, 0 }
   0xb   : > { %p5724_p8 = por %p195_p5, %p194_p3  ;;  %p242_p9 = scmp.lt.s32.totalorder %s5635_s26, 3 }
   0xc   : > { %s5730_s10 = scalar_select %p176_p7, %s5623_s23, %s178_s30  }
   0xd   : > { %p243_p10 = pnand %p4970_p6, %p242_p9 }
   0xf   : > { %246 = sbr.rel (%p243_p10) target bundleno = 990 (0x3de), region = 44 }
  0x16   : > { %v5437_v0 = vld [vmem:[%s8929_s1 + $0x4] ss:$8 sps:$4 sm:$0xff]   ;;  %p277_p11 = scmp.lt.s32.totalorder %s5627_s24, 1  ;;  %v5439_v1 = vld [vmem:[%s8929_s1] ss:$8 sps:$4 sm:$0xff]   ;;  %v8938_v2 = vmov 0  }
  0x17   : > { %636 = vmatprep.mubr.bf16.mxu0 %v8938_v2  ;;  %816 = vmatprep.mubr.bf16.mxu1 %v8938_v2  ;;  %v5440_v3 = vld [vmem:[%s8929_s1 + $0x14] ss:$8 sps:$4 sm:$0xff]   ;;  %v5442_v4 = vld [vmem:[%s8929_s1 + $0x10] ss:$8 sps:$4 sm:$0xff]   ;;  %v5443_v5 = vld [vmem:[%s8929_s1 + $0x24] ss:$8 sps:$4 sm:$0xff]  }
  0x18   : > { %604 = vmatprep.subr.bf16.mxu0 %v5437_v0  ;;  %5348 = vmatprep.subr.bf16.mxu1 %v5437_v0  ;;  %s5745_s17 = scalar_select %p277_p11, %s5627_s24, 1  ;;  %v5445_v6 = vld [vmem:[%s8929_s1 + $0x20] ss:$8 sps:$4 sm:$0xff]   ;;  %v5446_v7 = vld [vmem:[%s8929_s1 + $0x34] ss:$8 sps:$4 sm:$0xff]   ;;  %vm525_vm0 = vcmask 523264  }
  0x19   : > { %605 = vmatpush1.bf16.msra.mxu0 %v5439_v1  ;;  %5352 = vmatpush1.bf16.msra.mxu1 %v5439_v1  ;;  %v5448_v8 = vld [vmem:[%s8929_s1 + $0x30] ss:$8 sps:$4 sm:$0xff]   ;;  %v5465_v9 = vld [vmem:[%s8929_s1 + $0x44] ss:$8 sps:$4 sm:$0xff]   ;;  %v5463_v12 = vld [vmem:[%s8929_s1 + $0x40] ss:$8 sps:$4 sm:$0xff]  }
  0x1a   : > { %606 = vmatprep.subr.bf16.mxu0 %v5440_v3  ;;  %5349 = vmatprep.subr.bf16.mxu1 %v5440_v3  ;;  %s5373_s28 = smul.u32 232, %s5745_s17  ;;  %v5466_v14 = vld [vmem:[%s8929_s1 + $0x50] ss:$8 sps:$4 sm:$0xff]   ;;  %v5468_v15 = vld [vmem:[%s8929_s1 + $0x54] ss:$8 sps:$4 sm:$0xff]   ;;  %vm988_vm1 = vcmask 1046528  }
  0x1b   : > { %5436 = vset.pattern.permute.xlu1 %v8938_v2  ;;  %5435 = vset.pattern.permute.xlu0 %v8938_v2  ;;  %v5471_v17 = vld [vmem:[%s8929_s1 + $0x60] ss:$8 sps:$4 sm:$0xff]   ;;  %v5473_v18 = vld [vmem:[%s8929_s1 + $0x64] ss:$8 sps:$4 sm:$0xff]   ;;  %v5476_v19 = vld [vmem:[%s8929_s1 + $0x74] ss:$8 sps:$4 sm:$0xff]  }
  0x1c   : > { %s5759_s11 = scalar_lea.vmem %s8928_s0, %s5373_s28  ;;  %v5474_v21 = vld [vmem:[%s8929_s1 + $0x70] ss:$8 sps:$4 sm:$0xff]   ;;  %v5495_v26 = vld [vmem:[%s8929_s1 + $0x80] ss:$8 sps:$4 sm:$0xff]   ;;  %v5497_v27 = vld [vmem:[%s8929_s1 + $0x84] ss:$8 sps:$4 sm:$0xff]  }
  0x1d   : > { %607 = vmatpush1.bf16.msra.mxu0 %v5442_v4  ;;  %5353 = vmatpush1.bf16.msra.mxu1 %v5442_v4  ;;  %v5449_v10 = vld [vmem:[%s5759_s11] sm:$0xff]   ;;  %v5450_v11 = vld [vmem:[%s5759_s11 + $0x90] sm:$0xff]   ;;  %v5451_v13 = vld [vmem:[%s5759_s11 + $0x8] sm:$0xff]   ;;  %vm1327_vm2 = vcmask 1045504   ;;  %s5638_s14 = smov 64   ;;  %vm2364_vm3 = vcmask 1044480  }
  0x1e   : > { %608 = vmatprep.subr.bf16.mxu0 %v5443_v5  ;;  %5350 = vmatprep.subr.bf16.mxu1 %v5443_v5  ;;  %v5452_v16 = vld [vmem:[%s5759_s11 + $0x98] sm:$0xff]   ;;  %v5453_v20 = vld [vmem:[%s5759_s11 + $0x10] sm:$0xff]   ;;  %v5454_v22 = vld [vmem:[%s5759_s11 + $0xa0] sm:$0xff]   ;;  %vm2703_vm4 = vcmask 1043456   ;;  %vm3740_vm5 = vcmask 1042432   ;;  %vm4079_vm6 = vcmask 1041408  }
  0x1f   : > { %v5455_v23 = vld [vmem:[%s5759_s11 + $0x18] sm:$0xff]   ;;  %v5456_v24 = vld [vmem:[%s5759_s11 + $0xa8] sm:$0xff]   ;;  %v5457_v25 = vld [vmem:[%s5759_s11 + $0x20] sm:$0xff]   ;;  %s5374_s20 = smul.u32 3, %s5745_s17  ;;  %s5639_s19 = smov [#allocation2]  }
  0x20   : > { %v5458_v28 = vld [vmem:[%s5759_s11 + $0xb0] sm:$0xff]   ;;  %v5505_v31 = vld [vmem:[%s8929_s1 + $0xa4] ss:$8 sps:$4 sm:$0xff]   ;;  %v5503_v33 = vld [vmem:[%s8929_s1 + $0xa0] ss:$8 sps:$4 sm:$0xff]   ;;  %s5375_s12 = smul.u32 3072, %s5627_s24 }
  0x21   : > { %609 = vmatpush1.bf16.msra.mxu0 %v5445_v6  ;;  %5354 = vmatpush1.bf16.msra.mxu1 %v5445_v6  ;;  %v5500_v29 = vld [vmem:[%s8929_s1 + $0x94] ss:$8 sps:$4 sm:$0xff]   ;;  %v5498_v30 = vld [vmem:[%s8929_s1 + $0x90] ss:$8 sps:$4 sm:$0xff]   ;;  %v5459_v32 = vld [vmem:[%s5759_s11 + $0x28] sm:$0xff]   ;;  %s286_s30 = scalar_lea.vmem %s8933_s5, %s5374_s20  ;;  %s5561_s20 = sshll.u32 %s5639_s19, 4  ;;  %s5562_s20 = int_to_ptr.vmem [resolvable:$false] %s5561_s20 }
  0x22   : > { %610 = vmatprep.subr.bf16.mxu0 %v5446_v7  ;;  %5351 = vmatprep.subr.bf16.mxu1 %v5446_v7  ;;  %v5508_v34 = vld [vmem:[%s8929_s1 + $0xb4] ss:$8 sps:$4 sm:$0xff]   ;;  %v5506_v36 = vld [vmem:[%s8929_s1 + $0xb0] ss:$8 sps:$4 sm:$0xff]   ;;  %v5462_v38 = vld [vmem:[%s5759_s11 + $0xc0] sm:$0xff]   ;;  %s8876_s15 = scalar_lea.hbm %s8934_s6, %s5375_s12  ;;  %s5563_s27 = scalar_lea.vmem %s5562_s20, 6144 }
  0x23   : > { %v5460_v35 = vld [vmem:[%s5759_s11 + $0xb8] sm:$0xff]   ;;  %v5461_v37 = vld [vmem:[%s5759_s11 + $0x30] sm:$0xff]   ;;  %v5470_v40 = vld [vmem:[%s5759_s11 + $0xc8] sm:$0xff]  }
  0x24   : > { %v5469_v39 = vld [vmem:[%s5759_s11 + $0x38] sm:$0xff]   ;;  %v5477_v41 = vld [vmem:[%s5759_s11 + $0x40] sm:$0xff]   ;;  %v5478_v42 = vld [vmem:[%s5759_s11 + $0x8] sm:$0xff]  }
  0x25   : > { %611 = vmatpush1.bf16.msra.mxu0 %v5448_v8  ;;  %5355 = vmatpush1.bf16.msra.mxu1 %v5448_v8  ;;  %v5479_v43 = vld [vmem:[%s5759_s11 + $0x48] sm:$0xff]   ;;  %v5480_v44 = vld [vmem:[%s5759_s11 + $0x10] sm:$0xff]   ;;  %v5482_v46 = vld [vmem:[%s5759_s11 + $0x18] sm:$0xff]  }
  0x26   : > { %1835 = vmatprep.subr.bf16.mxu1 %v5465_v9  ;;  %3211 = vmatprep.subr.bf16.mxu0 %v5497_v27  ;;  %v5481_v45 = vld [vmem:[%s5759_s11 + $0x50] sm:$0xff]   ;;  %v5483_v47 = vld [vmem:[%s5759_s11 + $0x58] sm:$0xff]   ;;  %v5484_v48 = vld [vmem:[%s5759_s11 + $0x20] sm:$0xff]  }
  0x27   : > { %v5485_v49 = vld [vmem:[%s5759_s11 + $0x60] sm:$0xff]   ;;  %v5486_v50 = vld [vmem:[%s5759_s11 + $0x28] sm:$0xff]   ;;  %v5488_v52 = vld [vmem:[%s5759_s11 + $0x30] sm:$0xff]  }
  0x28   : > { %5006 = vmatmul.mubr.msk.bf16.vlgmr.msra.gmra.mrb[0].mxu0 %vm525_vm0, %v5449_v10  ;;  %5024 = vmatmul.mubr.msk.bf16.vlgmr.msra.gmra.mrb[0].mxu1 %vm525_vm0, %v5450_v11  ;;  %v5487_v51 = vld [vmem:[%s5759_s11 + $0x68] sm:$0xff]   ;;  %v5489_v53 = vld [vmem:[%s5759_s11 + $0x70] sm:$0xff]   ;;  %v5490_v54 = vld [vmem:[%s5759_s11 + $0x38] sm:$0xff]  }
  0x29   : > { %646 = vmatprep.mubr.bf16.mxu0 %v8938_v2  ;;  %826 = vmatprep.mubr.bf16.mxu1 %v8938_v2  ;;  %v5491_v55 = vld [vmem:[%s5759_s11 + $0x78] sm:$0xff]   ;;  %v5492_v56 = vld [vmem:[%s5759_s11 + $0x40] sm:$0xff]   ;;  %v5494_v58 = vld [vmem:[%s5759_s11 + $0x48] sm:$0xff]  }
  0x2a   : > { %1836 = vmatpush1.bf16.msra.mxu1 %v5463_v12  ;;  %3212 = vmatpush1.bf16.msra.mxu0 %v5495_v26  ;;  %v5493_v57 = vld [vmem:[%s5759_s11 + $0x80] sm:$0xff]   ;;  %v5501_v59 = vld [vmem:[%s5759_s11 + $0x88] sm:$0xff]   ;;  %v5502_v60 = vld [vmem:[%s5759_s11 + $0x50] sm:$0xff]  }
  0x2b   : > { %1837 = vmatprep.subr.bf16.mxu1 %v5468_v15  ;;  %3213 = vmatprep.subr.bf16.mxu0 %v5500_v29  ;;  %v5509_v61 = vld [vmem:[%s5759_s11 + $0x58] sm:$0xff]   ;;  %v5510_v62 = vld [vmem:[%s5759_s11 + $0x10] sm:$0xff]   ;;  %v5512_v0 = vld [vmem:[%s5759_s11 + $0x60] sm:$0xff]  }
  0x2c   : > { %v5511_v63 = vld [vmem:[%s5759_s11 + $0x18] sm:$0xff]   ;;  %v5513_v1 = vld [vmem:[%s5759_s11 + $0x20] sm:$0xff]   ;;  %v5514_v3 = vld [vmem:[%s5759_s11 + $0x68] sm:$0xff]  }
  0x2d   : > { %v5515_v4 = vld [vmem:[%s5759_s11 + $0x28] sm:$0xff]   ;;  %v5516_v5 = vld [vmem:[%s5759_s11 + $0x70] sm:$0xff]   ;;  %v5518_v7 = vld [vmem:[%s5759_s11 + $0x78] sm:$0xff]  }
  0x2e   : > { %1838 = vmatpush1.bf16.msra.mxu1 %v5466_v14  ;;  %3214 = vmatpush1.bf16.msra.mxu0 %v5498_v30  ;;  %v5517_v6 = vld [vmem:[%s5759_s11 + $0x30] sm:$0xff]   ;;  %v5519_v8 = vld [vmem:[%s5759_s11 + $0x38] sm:$0xff]   ;;  %v5520_v9 = vld [vmem:[%s5759_s11 + $0x80] sm:$0xff]  }
  0x2f   : > { %1839 = vmatprep.subr.bf16.mxu1 %v5473_v18  ;;  %3215 = vmatprep.subr.bf16.mxu0 %v5505_v31  ;;  %v5521_v10 = vld [vmem:[%s5759_s11 + $0x40] sm:$0xff]   ;;  %v5522_v11 = vld [vmem:[%s5759_s11 + $0x88] sm:$0xff]   ;;  %v5525_v14 = vld [vmem:[%s5759_s11 + $0x50] sm:$0xff]  }
  0x30   : > { %5007 = vmatmul.mubr.msk.bf16.gmra.mrb[4].mxu0 %vm525_vm0, %v5451_v13  ;;  %5025 = vmatmul.mubr.msk.bf16.gmra.mrb[4].mxu1 %vm525_vm0, %v5452_v16  ;;  %v5523_v12 = vld [vmem:[%s5759_s11 + $0x48] sm:$0xff]   ;;  %v5524_v13 = vld [vmem:[%s5759_s11 + $0x90] sm:$0xff]   ;;  %v5529_v15 = vld [vmem:[%s5759_s11 + $0x98] sm:$0xff]  }
  0x31   : > { %656 = vmatprep.mubr.bf16.mxu0 %v8938_v2  ;;  %836 = vmatprep.mubr.bf16.mxu1 %v8938_v2 }
  0x32   : > { %1840 = vmatpush1.bf16.msra.mxu1 %v5471_v17  ;;  %3216 = vmatpush1.bf16.msra.mxu0 %v5503_v33 }
  0x33   : > { %1841 = vmatprep.subr.bf16.mxu1 %v5476_v19  ;;  %3217 = vmatprep.subr.bf16.mxu0 %v5508_v34  ;;  %v5526_v19 = vld [vmem:[%s5759_s11 + $0x58] sm:$0xff]  }
  0x36   : > { %1842 = vmatpush1.bf16.msra.mxu1 %v5474_v21  ;;  %3218 = vmatpush1.bf16.msra.mxu0 %v5506_v36 }
  0x38   : > { %5008 = vmatmul.mubr.msk.bf16.gmra.mrb[8].mxu0 %vm525_vm0, %v5453_v20  ;;  %5026 = vmatmul.mubr.msk.bf16.gmra.mrb[8].mxu1 %vm525_vm0, %v5454_v22  ;;  %v5532_v22 = vld [vmem:[%s5759_s11 + $0xa0] sm:$0xff]  }
  0x39   : > { %666 = vmatprep.mubr.bf16.mxu0 %v8938_v2  ;;  %846 = vmatprep.mubr.bf16.mxu1 %v8938_v2 }
  0x40   : > { %5009 = vmatmul.mubr.msk.bf16.gmra.mrb[12].mxu0 %vm525_vm0, %v5455_v23  ;;  %5027 = vmatmul.mubr.msk.bf16.gmra.mrb[12].mxu1 %vm525_vm0, %v5456_v24 }
  0x41   : > { %676 = vmatprep.mubr.bf16.mxu0 %v8938_v2  ;;  %856 = vmatprep.mubr.bf16.mxu1 %v8938_v2 }
  0x48   : > { %5010 = vmatmul.mubr.msk.bf16.gmra.mrb[16].mxu0 %vm525_vm0, %v5457_v25  ;;  %5028 = vmatmul.mubr.msk.bf16.gmra.mrb[16].mxu1 %vm525_vm0, %v5458_v28 }
  0x49   : > { %686 = vmatprep.mubr.bf16.mxu0 %v8938_v2  ;;  %866 = vmatprep.mubr.bf16.mxu1 %v8938_v2 }
  0x50   : > { %5011 = vmatmul.mubr.msk.bf16.gmra.mrb[20].mxu0 %vm525_vm0, %v5459_v32  ;;  %5029 = vmatmul.mubr.msk.bf16.gmra.mrb[20].mxu1 %vm525_vm0, %v5460_v35 }
  0x51   : > { %696 = vmatprep.mubr.bf16.mxu0 %v8938_v2  ;;  %876 = vmatprep.mubr.bf16.mxu1 %v8938_v2 }
  0x58   : > { %5012 = vmatmul.mubr.msk.bf16.gmra.mrb[24].mxu0 %vm525_vm0, %v5461_v37  ;;  %5030 = vmatmul.mubr.msk.bf16.gmra.mrb[24].mxu1 %vm525_vm0, %v5462_v38 }
  0x59   : > { %706 = vmatprep.mubr.bf16.mxu0 %v8938_v2  ;;  %884 = vmatprep.mubr.bf16.mxu1 %v8938_v2 }
  0x60   : > { %5013 = vmatmul.mubr.msk.bf16.gmra.mrb[28].mxu0 %vm525_vm0, %v5469_v39  ;;  %5031 = vmatmul.mubr.msk.bf16.gmra.mrb[28].mxu1 %vm525_vm0, %v5470_v40 }
  0x61   : > { %716 = vmatprep.mubr.bf16.mxu0 %v8938_v2  ;;  %1867 = vmatprep.mubr.bf16.mxu1 %v8938_v2 }
  0x68   : > { %5014 = vmatmul.mubr.msk.bf16.gmra.mrb[32].mxu0 %vm525_vm0, %v5477_v41  ;;  %5126 = vmatmul.mubr.msk.bf16.vlgmr.msra.gmra.mrb[32].mxu1 %vm525_vm0, %v5478_v42 }
  0x69   : > { %726 = vmatprep.mubr.bf16.mxu0 %v8938_v2  ;;  %1877 = vmatprep.mubr.bf16.mxu1 %v8938_v2 }
  0x70   : > { %5015 = vmatmul.mubr.msk.bf16.gmra.mrb[36].mxu0 %vm525_vm0, %v5479_v43  ;;  %5127 = vmatmul.mubr.msk.bf16.gmra.mrb[36].mxu1 %vm525_vm0, %v5480_v44  ;;  %v5527_v44 = vld [vmem:[%s5759_s11 + $0x60] sm:$0xff]  }
  0x71   : > { %736 = vmatprep.mubr.bf16.mxu0 %v8938_v2  ;;  %1887 = vmatprep.mubr.bf16.mxu1 %v8938_v2 }
  0x78   : > { %5016 = vmatmul.mubr.msk.bf16.gmra.mrb[40].mxu0 %vm525_vm0, %v5481_v45  ;;  %5128 = vmatmul.mubr.msk.bf16.gmra.mrb[40].mxu1 %vm525_vm0, %v5482_v46  ;;  %v5535_v45 = vld [vmem:[%s5759_s11 + $0xa8] sm:$0xff]  }
  0x79   : > { %746 = vmatprep.mubr.bf16.mxu0 %v8938_v2  ;;  %1897 = vmatprep.mubr.bf16.mxu1 %v8938_v2 }
  0x80   : > { %5017 = vmatmul.mubr.msk.bf16.gmra.mrb[44].mxu0 %vm525_vm0, %v5483_v47  ;;  %5129 = vmatmul.mubr.msk.bf16.gmra.mrb[44].mxu1 %vm525_vm0, %v5484_v48 }
  0x81   : > { %756 = vmatprep.mubr.bf16.mxu0 %v8938_v2  ;;  %1907 = vmatprep.mubr.bf16.mxu1 %v8938_v2 }
  0x88   : > { %5018 = vmatmul.mubr.msk.bf16.gmra.mrb[48].mxu0 %vm525_vm0, %v5485_v49  ;;  %5130 = vmatmul.mubr.msk.bf16.gmra.mrb[48].mxu1 %vm525_vm0, %v5486_v50 }
  0x89   : > { %766 = vmatprep.mubr.bf16.mxu0 %v8938_v2  ;;  %1917 = vmatprep.mubr.bf16.mxu1 %v8938_v2 }
  0x90   : > { %5019 = vmatmul.mubr.msk.bf16.gmra.mrb[52].mxu0 %vm525_vm0, %v5487_v51  ;;  %5131 = vmatmul.mubr.msk.bf16.gmra.mrb[52].mxu1 %vm525_vm0, %v5488_v52 }
  0x91   : > { %776 = vmatprep.mubr.bf16.mxu0 %v8938_v2  ;;  %1927 = vmatprep.mubr.bf16.mxu1 %v8938_v2 }
  0x98   : > { %5020 = vmatmul.mubr.msk.bf16.gmra.mrb[56].mxu0 %vm525_vm0, %v5489_v53  ;;  %5132 = vmatmul.mubr.msk.bf16.gmra.mrb[56].mxu1 %vm525_vm0, %v5490_v54 }
  0x99   : > { %786 = vmatprep.mubr.bf16.mxu0 %v8938_v2  ;;  %1937 = vmatprep.mubr.bf16.mxu1 %v8938_v2 }
  0xa0   : > { %5021 = vmatmul.mubr.msk.bf16.gmra.mrb[60].mxu0 %vm525_vm0, %v5491_v55  ;;  %5133 = vmatmul.mubr.msk.bf16.gmra.mrb[60].mxu1 %vm525_vm0, %v5492_v56 }
  0xa1   : > { %796 = vmatprep.mubr.bf16.mxu0 %v8938_v2  ;;  %1947 = vmatprep.mubr.bf16.mxu1 %v8938_v2 }
  0xa8   : > { %5022 = vmatmul.mubr.msk.bf16.gmra.mrb[64].mxu0 %vm525_vm0, %v5493_v57  ;;  %5134 = vmatmul.mubr.msk.bf16.gmra.mrb[64].mxu1 %vm525_vm0, %v5494_v58 }
  0xa9   : > { %806 = vmatprep.mubr.bf16.mxu0 %v8938_v2  ;;  %1957 = vmatprep.mubr.bf16.mxu1 %v8938_v2 }
  0xb0   : > { %5023 = vmatmul.mubr.msk.bf16.gmra.mrb[68].mxu0 %vm525_vm0, %v5501_v59  ;;  %5135 = vmatmul.mubr.msk.bf16.gmra.mrb[68].mxu1 %vm525_vm0, %v5502_v60 }
  0xb1   : > { %1967 = vmatprep.mubr.bf16.mxu1 %v8938_v2  ;;  %3243 = vmatprep.mubr.bf16.mxu0 %v8938_v2 }
  0xb8   : > { %5136 = vmatmul.mubr.msk.bf16.gmra.mrb[72].mxu1 %vm525_vm0, %v5509_v61  ;;  %5246 = vmatmul.mubr.msk.bf16.vlgmr.msra.gmra.mrb[72].mxu0 %vm525_vm0, %v5510_v62 }
  0xb9   : > { %3253 = vmatprep.mubr.bf16.mxu0 %v8938_v2  ;;  %1977 = vmatprep.mubr.bf16.mxu1 %v8938_v2 }
  0xc0   : > { %5247 = vmatmul.mubr.msk.bf16.gmra.mrb[76].mxu0 %vm525_vm0, %v5511_v63  ;;  %5137 = vmatmul.mubr.msk.bf16.gmra.mrb[76].mxu1 %vm525_vm0, %v5512_v0 }
  0xc1   : > { %3263 = vmatprep.mubr.bf16.mxu0 %v8938_v2  ;;  %1987 = vmatprep.mubr.bf16.mxu1 %v8938_v2 }
  0xc8   : > { %5248 = vmatmul.mubr.msk.bf16.gmra.mrb[80].mxu0 %vm525_vm0, %v5513_v1  ;;  %5138 = vmatmul.mubr.msk.bf16.gmra.mrb[80].mxu1 %vm525_vm0, %v5514_v3 }
  0xc9   : > { %3273 = vmatprep.mubr.bf16.mxu0 %v8938_v2  ;;  %1997 = vmatprep.mubr.bf16.mxu1 %v8938_v2 }
  0xd0   : > { %5249 = vmatmul.mubr.msk.bf16.gmra.mrb[84].mxu0 %vm525_vm0, %v5515_v4  ;;  %5139 = vmatmul.mubr.msk.bf16.gmra.mrb[84].mxu1 %vm525_vm0, %v5516_v5 }
  0xd1   : > { %3283 = vmatprep.mubr.bf16.mxu0 %v8938_v2  ;;  %2007 = vmatprep.mubr.bf16.mxu1 %v8938_v2 }
  0xd8   : > { %5250 = vmatmul.mubr.msk.bf16.gmra.mrb[88].mxu0 %vm525_vm0, %v5517_v6  ;;  %5140 = vmatmul.mubr.msk.bf16.gmra.mrb[88].mxu1 %vm525_vm0, %v5518_v7  ;;  %v5528_v7 = vld [vmem:[%s5759_s11 + $0x68] sm:$0xff]  }
  0xd9   : > { %3293 = vmatprep.mubr.bf16.mxu0 %v8938_v2  ;;  %2017 = vmatprep.mubr.bf16.mxu1 %v8938_v2 }
  0xe0   : > { %5251 = vmatmul.mubr.msk.bf16.gmra.mrb[92].mxu0 %vm525_vm0, %v5519_v8  ;;  %5141 = vmatmul.mubr.msk.bf16.gmra.mrb[92].mxu1 %vm525_vm0, %v5520_v9  ;;  %v5538_v8 = vld [vmem:[%s5759_s11 + $0xb0] sm:$0xff]  }
  0xe1   : > { %3303 = vmatprep.mubr.bf16.mxu0 %v8938_v2  ;;  %2027 = vmatprep.mubr.bf16.mxu1 %v8938_v2 }
  0xe8   : > { %5252 = vmatmul.mubr.msk.bf16.gmra.mrb[96].mxu0 %vm525_vm0, %v5521_v10  ;;  %5142 = vmatmul.mubr.msk.bf16.gmra.mrb[96].mxu1 %vm525_vm0, %v5522_v11 }
  0xe9   : > { %3313 = vmatprep.mubr.bf16.mxu0 %v8938_v2  ;;  %2037 = vmatprep.mubr.bf16.mxu1 %v8938_v2 }
  0xf0   : > { %5253 = vmatmul.mubr.msk.bf16.gmra.mrb[100].mxu0 %vm525_vm0, %v5523_v12  ;;  %5143 = vmatmul.mubr.msk.bf16.gmra.mrb[100].mxu1 %vm525_vm0, %v5524_v13 }
  0xf1   : > { %3323 = vmatprep.mubr.bf16.mxu0 %v8938_v2  ;;  %2047 = vmatprep.mubr.bf16.mxu1 %v8938_v2 }
  0xf8   : > { %5254 = vmatmul.mubr.msk.bf16.gmra.mrb[104].mxu0 %vm525_vm0, %v5525_v14  ;;  %5144 = vmatmul.mubr.msk.bf16.gmra.mrb[104].mxu1 %vm525_vm0, %v5529_v15 }
  0xf9   : > { %3333 = vmatprep.mubr.bf16.mxu0 %v8938_v2  ;;  %2057 = vmatprep.mubr.bf16.mxu1 %v8938_v2 }
  0xfb   : > { %v5980_v16 = vpop.f32.mrb[0].mxu0  ;;  %v5982_v17 = vpop.f32.mrb[0].mxu1 }
  0xfc   : > { %8992 = vst [vmem:[#allocation5_spill] sm:$0xff] %v5982_v17  ;;  %v640_v18 = vpop.f32.mrb[1].mxu0  ;;  %v8936_v20 = vrot.slane %v5982_v17, 1  ;;  %v5986_v21 = vpop.f32.mrb[1].mxu1  ;;  %v989_v26 = vrot.slane %v5980_v16, 1 }
  0xfd   : > { %v5989_v23 = vpop.f32.mrb[2].mxu0  ;;  %v8935_v24 = vrot.slane %v5986_v21, 2  ;;  %v5992_v25 = vpop.f32.mrb[2].mxu1  ;;  %v1328_v31 = vrot.slane %v640_v18, 2 }
  0xfe   : > { %8993 = vst [vmem:[#allocation6_spill] sm:$0xff] %v5992_v25  ;;  %v990_v27 = vrot.slane %v5989_v23, 1  ;;  %v644_v28 = vpop.f32.mrb[3].mxu0  ;;  %v1062_v29 = vrot.slane %v5992_v25, 1  ;;  %v824_v30 = vpop.f32.mrb[3].mxu1 }
  0xff   : > { %v1329_v32 = vrot.slane %v644_v28, 2  ;;  %v1401_v33 = vrot.slane %v824_v30, 2 }
 0x100   : > { %5255 = vmatmul.mubr.msk.bf16.gmra.mrb[108].mxu0 %vm525_vm0, %v5526_v19  ;;  %v991_v34 = vsel %vm988_vm1, %v989_v26, %v990_v27  ;;  %5145 = vmatmul.mubr.msk.bf16.gmra.mrb[108].mxu1 %vm525_vm0, %v5532_v22  ;;  %v6003_v35 = vsel %vm988_vm1, %v8936_v20, %v1062_v29 }
 0x101   : > { %8994 = vst [vmem:[#allocation7_spill] sm:$0xff] %v6003_v35  ;;  %1086 = vrot.lane.b32.xlu0 %v991_v34, %s5638_s14  ;;  %3343 = vmatprep.mubr.bf16.mxu0 %v8938_v2  ;;  %v6008_v36 = vsel %vm1327_vm2, %v1328_v31, %v1329_v32  ;;  %v6013_v37 = vsel %vm1327_vm2, %v8935_v24, %v1401_v33 }
 0x102   : > { %8995 = vst [vmem:[#allocation8_spill] sm:$0xff] %v6013_v37  ;;  %2067 = vmatprep.mubr.bf16.mxu1 %v8938_v2 }
 0x103   : > { %v6016_v38 = vpop.f32.mrb[4].mxu0  ;;  %v6018_v39 = vpop.f32.mrb[4].mxu1 }
 0x104   : > { %8996 = vst [vmem:[#allocation9_spill] sm:$0xff] %v6018_v39  ;;  %v992_v40 = vrot.slane %v6016_v38, 1  ;;  %v650_v41 = vpop.f32.mrb[5].mxu0  ;;  %v1064_v42 = vrot.slane %v6018_v39, 1  ;;  %v830_v43 = vpop.f32.mrb[5].mxu1 }
 0x105   : > { %v1331_v46 = vrot.slane %v650_v41, 2  ;;  %v6024_v47 = vpop.f32.mrb[6].mxu0  ;;  %v1403_v48 = vrot.slane %v830_v43, 2  ;;  %v6026_v49 = vpop.f32.mrb[6].mxu1 }
 0x106   : > { %8997 = vst [vmem:[#allocation10_spill] sm:$0xff] %v6026_v49  ;;  %v994_v50 = vrot.slane %v6024_v47, 1  ;;  %v654_v51 = vpop.f32.mrb[7].mxu0  ;;  %v993_v52 = vsel %vm988_vm1, %v990_v27, %v992_v40  ;;  %v1066_v53 = vrot.slane %v6026_v49, 1  ;;  %v834_v54 = vpop.f32.mrb[7].mxu1  ;;  %v6032_v55 = vsel %vm988_vm1, %v1062_v29, %v1064_v42 }
 0x107   : > { %8998 = vst [vmem:[#allocation11_spill] sm:$0xff] %v6032_v55  ;;  %v1333_v56 = vrot.slane %v654_v51, 2  ;;  %1088 = vrot.lane.b32.xlu0 %v993_v52, %s5638_s14  ;;  %v1405_v57 = vrot.slane %v834_v54, 2  ;;  %v6036_v58 = vsel %vm1327_vm2, %v1329_v32, %v1331_v46  ;;  %v6039_v59 = vsel %vm1327_vm2, %v1401_v33, %v1403_v48 }
 0x108   : > { %8999 = vst [vmem:[#allocation12_spill] sm:$0xff] %v6039_v59  ;;  %5256 = vmatmul.mubr.msk.bf16.gmra.mrb[112].mxu0 %vm525_vm0, %v5527_v44  ;;  %v995_v60 = vsel %vm988_vm1, %v992_v40, %v994_v50  ;;  %5146 = vmatmul.mubr.msk.bf16.gmra.mrb[112].mxu1 %vm525_vm0, %v5535_v45  ;;  %v6045_v61 = vsel %vm988_vm1, %v1064_v42, %v1066_v53  ;;  %v5530_v45 = vld [vmem:[%s5759_s11 + $0x70] sm:$0xff]  }
 0x109   : > { %9000 = vst [vmem:[#allocation13_spill] sm:$0xff] %v6045_v61  ;;  %3353 = vmatprep.mubr.bf16.mxu0 %v8938_v2  ;;  %2077 = vmatprep.mubr.bf16.mxu1 %v8938_v2  ;;  %v6050_v62 = vsel %vm1327_vm2, %v1331_v46, %v1333_v56  ;;  %v6053_v63 = vsel %vm1327_vm2, %v1403_v48, %v1405_v57  ;;  %v5541_v46 = vld [vmem:[%s5759_s11 + $0xb8] sm:$0xff]  }
 0x10a   : > { %9001 = vst [vmem:[#allocation14_spill] sm:$0xff] %v6053_v63  ;;  %v5537_v63 = vld [vmem:[%s5759_s11 + $0x98] sm:$0xff]  }
 0x10b   : > { %1090 = vrot.lane.b32.xlu0 %v995_v60, %s5638_s14  ;;  %v6056_v0 = vpop.f32.mrb[8].mxu0  ;;  %v6058_v1 = vpop.f32.mrb[8].mxu1 }
 0x10c   : > { %9002 = vst [vmem:[#allocation15_spill] sm:$0xff] %v6058_v1  ;;  %v996_v3 = vrot.slane %v6056_v0, 1  ;;  %v660_v4 = vpop.f32.mrb[9].mxu0  ;;  %v1068_v5 = vrot.slane %v6058_v1, 1  ;;  %v840_v6 = vpop.f32.mrb[9].mxu1 }
 0x10d   : > { %v1335_v9 = vrot.slane %v660_v4, 2  ;;  %v6064_v10 = vpop.f32.mrb[10].mxu0  ;;  %v1407_v11 = vrot.slane %v840_v6, 2  ;;  %v6066_v12 = vpop.f32.mrb[10].mxu1 }
 0x10e   : > { %9003 = vst [vmem:[#allocation16_spill] sm:$0xff] %v6066_v12  ;;  %v998_v13 = vrot.slane %v6064_v10, 1  ;;  %v664_v14 = vpop.f32.mrb[11].mxu0  ;;  %v997_v15 = vsel %vm988_vm1, %v994_v50, %v996_v3  ;;  %v1070_v18 = vrot.slane %v6066_v12, 1  ;;  %v844_v19 = vpop.f32.mrb[11].mxu1  ;;  %v6072_v22 = vsel %vm988_vm1, %v1066_v53, %v1068_v5 }
 0x10f   : > { %9004 = vst [vmem:[#allocation17_spill] sm:$0xff] %v6072_v22  ;;  %v1337_v26 = vrot.slane %v664_v14, 2  ;;  %1092 = vrot.lane.b32.xlu1 %v997_v15, %s5638_s14  ;;  %v1409_v27 = vrot.slane %v844_v19, 2  ;;  %v6076_v28 = vsel %vm1327_vm2, %v1333_v56, %v1335_v9  ;;  %v6079_v29 = vsel %vm1327_vm2, %v1405_v57, %v1407_v11 }
 0x110   : > { %9005 = vst [vmem:[#allocation18_spill] sm:$0xff] %v6079_v29  ;;  %5257 = vmatmul.mubr.msk.bf16.gmra.mrb[116].mxu0 %vm525_vm0, %v5528_v7  ;;  %v999_v30 = vsel %vm988_vm1, %v996_v3, %v998_v13  ;;  %5147 = vmatmul.mubr.msk.bf16.gmra.mrb[116].mxu1 %vm525_vm0, %v5538_v8  ;;  %v6085_v31 = vsel %vm988_vm1, %v1068_v5, %v1070_v18 }
 0x111   : > { %9006 = vst [vmem:[#allocation19_spill] sm:$0xff] %v6085_v31  ;;  %1094 = vrot.lane.b32.xlu0 %v999_v30, %s5638_s14  ;;  %3363 = vmatprep.mubr.bf16.mxu0 %v8938_v2  ;;  %v6090_v32 = vsel %vm1327_vm2, %v1335_v9, %v1337_v26  ;;  %v6093_v33 = vsel %vm1327_vm2, %v1407_v11, %v1409_v27  ;;  %v5531_v30 = vld [vmem:[%s5759_s11 + $0x78] sm:$0xff]  }
 0x112   : > { %9007 = vst [vmem:[#allocation20_spill] sm:$0xff] %v6093_v33  ;;  %2087 = vmatprep.mubr.bf16.mxu1 %v8938_v2 }
 0x113   : > { %v6096_v34 = vpop.f32.mrb[12].mxu0  ;;  %v6098_v40 = vpop.f32.mrb[12].mxu1 }
 0x114   : > { %9008 = vst [vmem:[#allocation21_spill] sm:$0xff] %v6098_v40  ;;  %v1000_v41 = vrot.slane %v6096_v34, 1  ;;  %v670_v42 = vpop.f32.mrb[13].mxu0  ;;  %v1072_v43 = vrot.slane %v6098_v40, 1  ;;  %v850_v44 = vpop.f32.mrb[13].mxu1 }
 0x115   : > { %v1339_v48 = vrot.slane %v670_v42, 2  ;;  %v6104_v50 = vpop.f32.mrb[14].mxu0  ;;  %v1411_v51 = vrot.slane %v850_v44, 2  ;;  %v6106_v52 = vpop.f32.mrb[14].mxu1 }
 0x116   : > { %9009 = vst [vmem:[#allocation22_spill] sm:$0xff] %v6106_v52  ;;  %v1002_v53 = vrot.slane %v6104_v50, 1  ;;  %v674_v54 = vpop.f32.mrb[15].mxu0  ;;  %v1001_v56 = vsel %vm988_vm1, %v998_v13, %v1000_v41  ;;  %v1074_v57 = vrot.slane %v6106_v52, 1  ;;  %v854_v60 = vpop.f32.mrb[15].mxu1  ;;  %v6112_v3 = vsel %vm988_vm1, %v1070_v18, %v1072_v43 }
 0x117   : > { %9010 = vst [vmem:[#allocation23_spill] sm:$0xff] %v6112_v3  ;;  %v1341_v4 = vrot.slane %v674_v54, 2  ;;  %1096 = vrot.lane.b32.xlu1 %v1001_v56, %s5638_s14  ;;  %v1413_v5 = vrot.slane %v854_v60, 2  ;;  %v6116_v6 = vsel %vm1327_vm2, %v1337_v26, %v1339_v48  ;;  %v6119_v7 = vsel %vm1327_vm2, %v1409_v27, %v1411_v51 }
 0x118   : > { %9011 = vst [vmem:[#allocation24_spill] sm:$0xff] %v6119_v7  ;;  %5258 = vmatmul.mubr.msk.bf16.gmra.mrb[120].mxu0 %vm525_vm0, %v5530_v45  ;;  %v1003_v8 = vsel %vm988_vm1, %v1000_v41, %v1002_v53  ;;  %5148 = vmatmul.mubr.msk.bf16.gmra.mrb[120].mxu1 %vm525_vm0, %v5541_v46  ;;  %v6125_v9 = vsel %vm988_vm1, %v1072_v43, %v1074_v57  ;;  %v5544_v41 = vld [vmem:[%s5759_s11 + $0xc0] sm:$0xff]  }
 0x119   : > { %9012 = vst [vmem:[#allocation25_spill] sm:$0xff] %v6125_v9  ;;  %1098 = vrot.lane.b32.xlu0 %v1003_v8, %s5638_s14  ;;  %3373 = vmatprep.mubr.bf16.mxu0 %v8938_v2  ;;  %v6130_v11 = vsel %vm1327_vm2, %v1339_v48, %v1341_v4  ;;  %v6133_v13 = vsel %vm1327_vm2, %v1411_v51, %v1413_v5 }
 0x11a   : > { %9013 = vst [vmem:[#allocation26_spill] sm:$0xff] %v6133_v13  ;;  %2097 = vmatprep.mubr.bf16.mxu1 %v8938_v2 }
 0x11b   : > { %v6136_v14 = vpop.f32.mrb[16].mxu0  ;;  %v6138_v15 = vpop.f32.mrb[16].mxu1 }
 0x11c   : > { %9014 = vst [vmem:[#allocation27_spill] sm:$0xff] %v6138_v15  ;;  %v1004_v18 = vrot.slane %v6136_v14, 1  ;;  %v680_v19 = vpop.f32.mrb[17].mxu0  ;;  %v1076_v26 = vrot.slane %v6138_v15, 1  ;;  %v860_v27 = vpop.f32.mrb[17].mxu1 }
 0x11d   : > { %v1343_v42 = vrot.slane %v680_v19, 2  ;;  %v6144_v43 = vpop.f32.mrb[18].mxu0  ;;  %v1415_v44 = vrot.slane %v860_v27, 2  ;;  %v6146_v45 = vpop.f32.mrb[18].mxu1 }
 0x11e   : > { %9015 = vst [vmem:[#allocation28_spill] sm:$0xff] %v6146_v45  ;;  %v1006_v46 = vrot.slane %v6144_v43, 1  ;;  %v684_v48 = vpop.f32.mrb[19].mxu0  ;;  %v1005_v51 = vsel %vm988_vm1, %v1002_v53, %v1004_v18  ;;  %v1078_v54 = vrot.slane %v6146_v45, 1  ;;  %v864_v56 = vpop.f32.mrb[19].mxu1  ;;  %v6152_v60 = vsel %vm988_vm1, %v1074_v57, %v1076_v26 }
 0x11f   : > { %9016 = vst [vmem:[#allocation29_spill] sm:$0xff] %v6152_v60  ;;  %v1345_v8 = vrot.slane %v684_v48, 2  ;;  %1100 = vrot.lane.b32.xlu1 %v1005_v51, %s5638_s14  ;;  %v1417_v19 = vrot.slane %v864_v56, 2  ;;  %v6156_v24 = vsel %vm1327_vm2, %v1341_v4, %v1343_v42  ;;  %v6159_v27 = vsel %vm1327_vm2, %v1413_v5, %v1415_v44  ;;  %v5533_v56 = vld [vmem:[%s5759_s11 + $0x80] sm:$0xff]  }
 0x120   : > { %9017 = vst [vmem:[#allocation30_spill] sm:$0xff] %v6159_v27  ;;  %5259 = vmatmul.mubr.msk.bf16.gmra.mrb[124].mxu0 %vm525_vm0, %v5531_v30  ;;  %v1007_v53 = vsel %vm988_vm1, %v1004_v18, %v1006_v46  ;;  %5149 = vmatmul.mubr.msk.bf16.gmra.mrb[124].mxu1 %vm525_vm0, %v5544_v41  ;;  %v6165_v57 = vsel %vm988_vm1, %v1076_v26, %v1078_v54 }
 0x121   : > { %9018 = vst [vmem:[#allocation31_spill] sm:$0xff] %v6165_v57  ;;  %1102 = vrot.lane.b32.xlu0 %v1007_v53, %s5638_s14  ;;  %3383 = vmatprep.mubr.bf16.mxu0 %v8938_v2  ;;  %v6170_v4 = vsel %vm1327_vm2, %v1343_v42, %v1345_v8  ;;  %v6173_v5 = vsel %vm1327_vm2, %v1415_v44, %v1417_v19  ;;  %v5547_v53 = vld [vmem:[%s5759_s11 + $0xc8] sm:$0xff]  }
 0x122   : > { %9019 = vst [vmem:[#allocation32_spill] sm:$0xff] %v6173_v5  ;;  %2107 = vmatprep.mubr.bf16.mxu1 %v8938_v2 }
 0x123   : > { %v6176_v30 = vpop.f32.mrb[20].mxu0  ;;  %v6178_v18 = vpop.f32.mrb[20].mxu1 }
 0x124   : > { %9020 = vst [vmem:[#allocation33_spill] sm:$0xff] %v6178_v18  ;;  %v1008_v41 = vrot.slane %v6176_v30, 1  ;;  %v690_v26 = vpop.f32.mrb[21].mxu0  ;;  %v1080_v48 = vrot.slane %v6178_v18, 1  ;;  %v870_v51 = vpop.f32.mrb[21].mxu1 }
 0x125   : > { %v1347_v20 = vrot.slane %v690_v26, 2  ;;  %v6184_v42 = vpop.f32.mrb[22].mxu0  ;;  %v1419_v45 = vrot.slane %v870_v51, 2  ;;  %v6186_v44 = vpop.f32.mrb[22].mxu1 }
 0x126   : > { %9021 = vst [vmem:[#allocation34_spill] sm:$0xff] %v6186_v44  ;;  %v1010_v2 = vrot.slane %v6184_v42, 1  ;;  %v694_v5 = vpop.f32.mrb[23].mxu0  ;;  %v1009_v15 = vsel %vm988_vm1, %v1006_v46, %v1008_v41  ;;  %v1082_v27 = vrot.slane %v6186_v44, 1  ;;  %v874_v52 = vpop.f32.mrb[23].mxu1  ;;  %v6192_v13 = vsel %vm988_vm1, %v1078_v54, %v1080_v48  ;;  %v5534_v44 = vld [vmem:[%s5759_s11 + $0x88] sm:$0xff]  }
 0x127   : > { %9022 = vst [vmem:[#allocation35_spill] sm:$0xff] %v6192_v13  ;;  %v1349_v18 = vrot.slane %v694_v5, 2  ;;  %1104 = vrot.lane.b32.xlu1 %v1009_v15, %s5638_s14  ;;  %v1421_v26 = vrot.slane %v874_v52, 2  ;;  %v6196_v40 = vsel %vm1327_vm2, %v1345_v8, %v1347_v20  ;;  %v6199_v51 = vsel %vm1327_vm2, %v1417_v19, %v1419_v45 }
 0x128   : > { %9023 = vst [vmem:[#allocation36_spill] sm:$0xff] %v6199_v51  ;;  %5260 = vmatmul.mubr.msk.bf16.gmra.mrb[128].mxu0 %vm525_vm0, %v5533_v56  ;;  %v1011_v46 = vsel %vm988_vm1, %v1008_v41, %v1010_v2  ;;  %5150 = vmatmul.mubr.msk.bf16.gmra.mrb[128].mxu1 %vm525_vm0, %v5547_v53  ;;  %v6205_v54 = vsel %vm988_vm1, %v1080_v48, %v1082_v27  ;;  %v9025_v15 = vmov 0  }
 0x129   : > { %9024 = vst [vmem:[#allocation37_spill] sm:$0xff] %v6205_v54  ;;  %1106 = vrot.lane.b32.xlu0 %v1011_v46, %s5638_s14  ;;  %3393 = vmatprep.mubr.bf16.mxu0 %v9025_v15  ;;  %v6210_v52 = vsel %vm1327_vm2, %v1347_v20, %v1349_v18  ;;  %v6213_v8 = vsel %vm1327_vm2, %v1419_v45, %v1421_v26 }
 0x12a   : > { %9026 = vst [vmem:[#allocation38_spill] sm:$0xff] %v6213_v8  ;;  %2115 = vmatprep.mubr.bf16.mxu1 %v9025_v15 }
 0x12b   : > { %v6216_v19 = vpop.f32.mrb[24].mxu0  ;;  %v878_v5 = vpop.f32.mrb[24].mxu1 }
 0x12c   : > { %v1012_v41 = vrot.slane %v6216_v19, 1  ;;  %v700_v56 = vpop.f32.mrb[25].mxu0  ;;  %v1084_v48 = vrot.slane %v878_v5, 1  ;;  %v880_v53 = vpop.f32.mrb[25].mxu1 }
 0x12d   : > { %v1351_v46 = vrot.slane %v700_v56, 2  ;;  %v6220_v51 = vpop.f32.mrb[26].mxu0  ;;  %v1423_v7 = vrot.slane %v880_v53, 2  ;;  %v882_v20 = vpop.f32.mrb[26].mxu1 }
 0x12e   : > { %9027 = vst [vmem:[#allocation39_spill] sm:$0xff] %v6220_v51  ;;  %v1014_v12 = vrot.slane %v6220_v51, 1  ;;  %v704_v45 = vpop.f32.mrb[27].mxu0  ;;  %v1013_v8 = vsel %vm988_vm1, %v1010_v2, %v1012_v41  ;;  %v883_v33 = vpop.f32.mrb[27].mxu1  ;;  %v6225_v1 = vsel %vm988_vm1, %v1082_v27, %v1084_v48 }
 0x12f   : > { %9028 = vst [vmem:[#allocation40_spill] sm:$0xff] %v6225_v1  ;;  %v1353_v29 = vrot.slane %v704_v45, 2  ;;  %1108 = vrot.lane.b32.xlu1 %v1013_v8, %s5638_s14  ;;  %v6229_v5 = vsel %vm1327_vm2, %v1349_v18, %v1351_v46  ;;  %v6232_v56 = vsel %vm1327_vm2, %v1421_v26, %v1423_v7  ;;  %v5536_v7 = vld [vmem:[%s5759_s11 + $0x90] sm:$0xff]  }
 0x130   : > { %9029 = vst [vmem:[#allocation41_spill] sm:$0xff] %v6232_v56  ;;  %5261 = vmatmul.mubr.msk.bf16.gmra.mrb[132].mxu0 %vm525_vm0, %v5534_v44  ;;  %v1015_v53 = vsel %vm988_vm1, %v1012_v41, %v1014_v12 }
 0x131   : > { %1110 = vrot.lane.b32.xlu0 %v1015_v53, %s5638_s14  ;;  %3403 = vmatprep.mubr.bf16.mxu0 %v9025_v15  ;;  %v6239_v2 = vsel %vm1327_vm2, %v1351_v46, %v1353_v29 }
 0x132   : > { %9030 = vst [vmem:[#allocation42_spill] sm:$0xff] %v6239_v2 }
 0x133   : > { %v6241_v33 = vpop.f32.mrb[28].mxu0  ;;  %v886_v27 = vpop.f32.mrb[28].mxu1 }
 0x134   : > { %9031 = vst [vmem:[#allocation43_spill] sm:$0xff] %v6241_v33  ;;  %v1016_v18 = vrot.slane %v6241_v33, 1  ;;  %v710_v8 = vpop.f32.mrb[29].mxu0  ;;  %v887_v48 = vpop.f32.mrb[29].mxu1 }
 0x135   : > { %v1355_v26 = vrot.slane %v710_v8, 2  ;;  %v6245_v20 = vpop.f32.mrb[30].mxu0  ;;  %v888_v44 = vpop.f32.mrb[30].mxu1 }
 0x136   : > { %9032 = vst [vmem:[#allocation44_spill] sm:$0xff] %v6245_v20  ;;  %v1018_v41 = vrot.slane %v6245_v20, 1  ;;  %v714_v45 = vpop.f32.mrb[31].mxu0  ;;  %v1017_v53 = vsel %vm988_vm1, %v1014_v12, %v1016_v18  ;;  %v889_v56 = vpop.f32.mrb[31].mxu1 }
 0x137   : > { %v1357_v46 = vrot.slane %v714_v45, 2  ;;  %1112 = vrot.lane.b32.xlu1 %v1017_v53, %s5638_s14  ;;  %v6251_v27 = vsel %vm1327_vm2, %v1353_v29, %v1355_v26 }
 0x138   : > { %9033 = vst [vmem:[#allocation45_spill] sm:$0xff] %v6251_v27  ;;  %5262 = vmatmul.mubr.msk.bf16.gmra.mrb[136].mxu0 %vm525_vm0, %v5536_v7  ;;  %v1019_v8 = vsel %vm988_vm1, %v1016_v18, %v1018_v41 }
 0x139   : > { %1114 = vrot.lane.b32.xlu0 %v1019_v8, %s5638_s14  ;;  %3413 = vmatprep.mubr.bf16.mxu0 %v9025_v15  ;;  %v6258_v48 = vsel %vm1327_vm2, %v1355_v26, %v1357_v46 }
 0x13a   : > { %9034 = vst [vmem:[#allocation46_spill] sm:$0xff] %v6258_v48 }
 0x13b   : > { %v6260_v12 = vpop.f32.mrb[32].mxu0  ;;  %v1869_v56 = vpop.f32.mrb[32].mxu1 }
 0x13c   : > { %9035 = vst [vmem:[#allocation47_spill] sm:$0xff] %v6260_v12  ;;  %v1020_v44 = vrot.slane %v6260_v12, 1  ;;  %v2171_v45 = vrot.slane %v1869_v56, 2  ;;  %v2365_v53 = vrot.slane %v1869_v56, 3  ;;  %v720_v29 = vpop.f32.mrb[33].mxu0  ;;  %v1871_v49 = vpop.f32.mrb[33].mxu1 }
 0x13d   : > { %v1359_v7 = vrot.slane %v720_v29, 2  ;;  %v2704_v39 = vrot.slane %v1871_v49, 4  ;;  %v6264_v18 = vpop.f32.mrb[34].mxu0  ;;  %v1873_v8 = vpop.f32.mrb[34].mxu1 }
 0x13e   : > { %9036 = vst [vmem:[#allocation48_spill] sm:$0xff] %v6264_v18  ;;  %v1022_v26 = vrot.slane %v6264_v18, 1  ;;  %v2172_v59 = vrot.slane %v1873_v8, 2  ;;  %v2366_v25 = vrot.slane %v1873_v8, 3  ;;  %v724_v37 = vpop.f32.mrb[35].mxu0  ;;  %v1021_v1 = vsel %vm988_vm1, %v1018_v41, %v1020_v44  ;;  %v1875_v54 = vpop.f32.mrb[35].mxu1 }
 0x13f   : > { %v1361_v13 = vrot.slane %v724_v37, 2  ;;  %1116 = vrot.lane.b32.xlu1 %v1021_v1, %s5638_s14  ;;  %v2705_v56 = vrot.slane %v1875_v54, 4  ;;  %v6270_v29 = vsel %vm1327_vm2, %v1357_v46, %v1359_v7 }
 0x140   : > { %9037 = vst [vmem:[#allocation49_spill] sm:$0xff] %v6270_v29  ;;  %5263 = vmatmul.mubr.msk.bf16.gmra.mrb[140].mxu0 %vm525_vm0, %v5537_v63  ;;  %v2367_v49 = vsel %vm2364_vm3, %v2365_v53, %v2366_v25  ;;  %v1023_v57 = vsel %vm988_vm1, %v1020_v44, %v1022_v26  ;;  %v6276_v8 = vsel %vm1327_vm2, %v2171_v45, %v2172_v59 }
 0x141   : > { %2462 = vrot.lane.b32.xlu0 %v2367_v49, %s5638_s14  ;;  %3423 = vmatprep.mubr.bf16.mxu0 %v9025_v15  ;;  %v6281_v37 = vsel %vm2703_vm4, %v2704_v39, %v2705_v56  ;;  %v6284_v1 = vsel %vm1327_vm2, %v1359_v7, %v1361_v13  ;;  %v5539_v49 = vld [vmem:[%s5759_s11 + $0xa0] sm:$0xff]  }
 0x142   : > { %9038 = vst [vmem:[#allocation50_spill] sm:$0xff] %v6281_v37  ;;  %9039 = vst [vmem:[#allocation51_spill] sm:$0xff] %v6284_v1 }
 0x143   : > { %1118 = vrot.lane.b32.xlu1 %v1023_v57, %s5638_s14  ;;  %v6287_v63 = vpop.f32.mrb[36].mxu0  ;;  %v1879_v54 = vpop.f32.mrb[36].mxu1 }
 0x144   : > { %9040 = vst [vmem:[#allocation52_spill] sm:$0xff] %v6287_v63  ;;  %v1024_v41 = vrot.slane %v6287_v63, 1  ;;  %v730_v46 = vpop.f32.mrb[37].mxu0  ;;  %v2174_v44 = vrot.slane %v1879_v54, 2  ;;  %v2368_v45 = vrot.slane %v1879_v54, 3  ;;  %v1881_v53 = vpop.f32.mrb[37].mxu1 }
 0x145   : > { %v1363_v60 = vrot.slane %v730_v46, 2  ;;  %v6291_v9 = vpop.f32.mrb[38].mxu0  ;;  %v2707_v39 = vrot.slane %v1881_v53, 4  ;;  %v1883_v3 = vpop.f32.mrb[38].mxu1 }
 0x146   : > { %9041 = vst [vmem:[#allocation53_spill] sm:$0xff] %v6291_v9  ;;  %v1026_v7 = vrot.slane %v6291_v9, 1  ;;  %v734_v31 = vpop.f32.mrb[39].mxu0  ;;  %v1025_v57 = vsel %vm988_vm1, %v1022_v26, %v1024_v41  ;;  %v2176_v22 = vrot.slane %v1883_v3, 2  ;;  %v2370_v61 = vrot.slane %v1883_v3, 3  ;;  %v1885_v55 = vpop.f32.mrb[39].mxu1 }
 0x147   : > { %v1365_v35 = vrot.slane %v734_v31, 2  ;;  %1120 = vrot.lane.b32.xlu1 %v1025_v57, %s5638_s14  ;;  %v2369_v54 = vsel %vm2364_vm3, %v2366_v25, %v2368_v45  ;;  %v2709_v63 = vrot.slane %v1885_v55, 4  ;;  %v6298_v46 = vsel %vm1327_vm2, %v1361_v13, %v1363_v60 }
 0x148   : > { %9042 = vst [vmem:[#allocation54_spill] sm:$0xff] %v6298_v46  ;;  %5264 = vmatmul.mubr.msk.bf16.gmra.mrb[144].mxu0 %vm525_vm0, %v5539_v49  ;;  %v1027_v53 = vsel %vm988_vm1, %v1024_v41, %v1026_v7  ;;  %v2371_v9 = vsel %vm2364_vm3, %v2368_v45, %v2370_v61  ;;  %v6304_v26 = vsel %vm1327_vm2, %v2172_v59, %v2174_v44 }
 0x149   : > { %v6307_v31 = vsel %vm2703_vm4, %v2705_v56, %v2707_v39  ;;  %1122 = vrot.lane.b32.xlu0 %v1027_v53, %s5638_s14  ;;  %3433 = vmatprep.mubr.bf16.mxu0 %v9025_v15  ;;  %v6312_v25 = vsel %vm1327_vm2, %v1363_v60, %v1365_v35  ;;  %v6315_v55 = vsel %vm1327_vm2, %v2174_v44, %v2176_v22  ;;  %v5540_v53 = vld [vmem:[%s5759_s11 + $0xa8] sm:$0xff]  }
 0x14a   : > { %9043 = vst [vmem:[#allocation55_spill] sm:$0xff] %v6307_v31  ;;  %9044 = vst [vmem:[#allocation56_spill] sm:$0xff] %v6312_v25  ;;  %v6318_v3 = vsel %vm2703_vm4, %v2707_v39, %v2709_v63 }
 0x14b   : > { %9045 = vst [vmem:[#allocation57_spill] sm:$0xff] %v6318_v3  ;;  %2464 = vrot.lane.b32.xlu1 %v2369_v54, %s5638_s14  ;;  %v6321_v59 = vpop.f32.mrb[40].mxu0  ;;  %v1889_v13 = vpop.f32.mrb[40].mxu1 }
 0x14c   : > { %9046 = vst [vmem:[#allocation58_spill] sm:$0xff] %v6321_v59  ;;  %v1028_v56 = vrot.slane %v6321_v59, 1  ;;  %v740_v41 = vpop.f32.mrb[41].mxu0  ;;  %v2178_v45 = vrot.slane %v1889_v13, 2  ;;  %v2372_v49 = vrot.slane %v1889_v13, 3  ;;  %v1891_v57 = vpop.f32.mrb[41].mxu1 }
 0x14d   : > { %v1367_v60 = vrot.slane %v740_v41, 2  ;;  %2466 = vrot.lane.b32.xlu0 %v2371_v9, %s5638_s14  ;;  %v6326_v44 = vpop.f32.mrb[42].mxu0  ;;  %v2711_v31 = vrot.slane %v1891_v57, 4  ;;  %v1893_v39 = vpop.f32.mrb[42].mxu1 }
 0x14e   : > { %9047 = vst [vmem:[#allocation59_spill] sm:$0xff] %v6326_v44  ;;  %v1030_v3 = vrot.slane %v6326_v44, 1  ;;  %v744_v54 = vpop.f32.mrb[43].mxu0  ;;  %v1029_v25 = vsel %vm988_vm1, %v1026_v7, %v1028_v56  ;;  %v2180_v46 = vrot.slane %v1893_v39, 2  ;;  %v2374_v18 = vrot.slane %v1893_v39, 3  ;;  %v1895_v59 = vpop.f32.mrb[43].mxu1 }
 0x14f   : > { %v1369_v1 = vrot.slane %v744_v54, 2  ;;  %1124 = vrot.lane.b32.xlu1 %v1029_v25, %s5638_s14  ;;  %v2373_v13 = vsel %vm2364_vm3, %v2370_v61, %v2372_v49  ;;  %v2713_v41 = vrot.slane %v1895_v59, 4  ;;  %v6333_v9 = vsel %vm1327_vm2, %v1365_v35, %v1367_v60 }
 0x150   : > { %9048 = vst [vmem:[#allocation60_spill] sm:$0xff] %v6333_v9  ;;  %5265 = vmatmul.mubr.msk.bf16.gmra.mrb[148].mxu0 %vm525_vm0, %v5540_v53  ;;  %v1031_v57 = vsel %vm988_vm1, %v1028_v56, %v1030_v3  ;;  %v2375_v44 = vsel %vm2364_vm3, %v2372_v49, %v2374_v18  ;;  %v6339_v7 = vsel %vm1327_vm2, %v2176_v22, %v2178_v45 }
 0x151   : > { %v6342_v39 = vsel %vm2703_vm4, %v2709_v63, %v2711_v31  ;;  %1126 = vrot.lane.b32.xlu0 %v1031_v57, %s5638_s14  ;;  %3443 = vmatprep.mubr.bf16.mxu0 %v9025_v15  ;;  %v6347_v35 = vsel %vm1327_vm2, %v1367_v60, %v1369_v1  ;;  %v6350_v61 = vsel %vm1327_vm2, %v2178_v45, %v2180_v46  ;;  %v5542_v57 = vld [vmem:[%s5759_s11 + $0xb0] sm:$0xff]  }
 0x152   : > { %9049 = vst [vmem:[#allocation61_spill] sm:$0xff] %v6342_v39  ;;  %9050 = vst [vmem:[#allocation62_spill] sm:$0xff] %v6347_v35  ;;  %v6353_v25 = vsel %vm2703_vm4, %v2711_v31, %v2713_v41 }
 0x153   : > { %9051 = vst [vmem:[#allocation63_spill] sm:$0xff] %v6353_v25  ;;  %2468 = vrot.lane.b32.xlu1 %v2373_v13, %s5638_s14  ;;  %v6356_v22 = vpop.f32.mrb[44].mxu0  ;;  %v1899_v59 = vpop.f32.mrb[44].mxu1 }
 0x154   : > { %9052 = vst [vmem:[#allocation64_spill] sm:$0xff] %v6356_v22  ;;  %v1032_v63 = vrot.slane %v6356_v22, 1  ;;  %v750_v56 = vpop.f32.mrb[45].mxu0  ;;  %v2182_v49 = vrot.slane %v1899_v59, 2  ;;  %v2376_v53 = vrot.slane %v1899_v59, 3  ;;  %v1901_v54 = vpop.f32.mrb[45].mxu1 }
 0x155   : > { %v1371_v60 = vrot.slane %v750_v56, 2  ;;  %2470 = vrot.lane.b32.xlu0 %v2375_v44, %s5638_s14  ;;  %v6361_v45 = vpop.f32.mrb[46].mxu0  ;;  %v2715_v39 = vrot.slane %v1901_v54, 4  ;;  %v1903_v31 = vpop.f32.mrb[46].mxu1 }
 0x156   : > { %9053 = vst [vmem:[#allocation65_spill] sm:$0xff] %v6361_v45  ;;  %v1034_v25 = vrot.slane %v6361_v45, 1  ;;  %v754_v13 = vpop.f32.mrb[47].mxu0  ;;  %v1033_v35 = vsel %vm988_vm1, %v1030_v3, %v1032_v63  ;;  %v2184_v9 = vrot.slane %v1903_v31, 2  ;;  %v2378_v12 = vrot.slane %v1903_v31, 3  ;;  %v1905_v22 = vpop.f32.mrb[47].mxu1 }
 0x157   : > { %v1373_v37 = vrot.slane %v754_v13, 2  ;;  %1128 = vrot.lane.b32.xlu1 %v1033_v35, %s5638_s14  ;;  %v2377_v59 = vsel %vm2364_vm3, %v2374_v18, %v2376_v53  ;;  %v2717_v56 = vrot.slane %v1905_v22, 4  ;;  %v6368_v44 = vsel %vm1327_vm2, %v1369_v1, %v1371_v60 }
 0x158   : > { %9054 = vst [vmem:[#allocation66_spill] sm:$0xff] %v6368_v44  ;;  %5266 = vmatmul.mubr.msk.bf16.gmra.mrb[152].mxu0 %vm525_vm0, %v5542_v57  ;;  %v1035_v54 = vsel %vm988_vm1, %v1032_v63, %v1034_v25  ;;  %v2379_v45 = vsel %vm2364_vm3, %v2376_v53, %v2378_v12  ;;  %v6374_v3 = vsel %vm1327_vm2, %v2180_v46, %v2182_v49 }
 0x159   : > { %v6377_v31 = vsel %vm2703_vm4, %v2713_v41, %v2715_v39  ;;  %1130 = vrot.lane.b32.xlu0 %v1035_v54, %s5638_s14  ;;  %3453 = vmatprep.mubr.bf16.mxu0 %v9025_v15  ;;  %v6382_v18 = vsel %vm1327_vm2, %v1371_v60, %v1373_v37  ;;  %v6385_v1 = vsel %vm1327_vm2, %v2182_v49, %v2184_v9  ;;  %v5543_v54 = vld [vmem:[%s5759_s11 + $0xb8] sm:$0xff]  }
 0x15a   : > { %9055 = vst [vmem:[#allocation67_spill] sm:$0xff] %v6377_v31  ;;  %9056 = vst [vmem:[#allocation68_spill] sm:$0xff] %v6382_v18  ;;  %v6388_v35 = vsel %vm2703_vm4, %v2715_v39, %v2717_v56 }
 0x15b   : > { %9057 = vst [vmem:[#allocation69_spill] sm:$0xff] %v6388_v35  ;;  %2472 = vrot.lane.b32.xlu1 %v2377_v59, %s5638_s14  ;;  %v6391_v46 = vpop.f32.mrb[48].mxu0  ;;  %v1909_v22 = vpop.f32.mrb[48].mxu1 }
 0x15c   : > { %9058 = vst [vmem:[#allocation70_spill] sm:$0xff] %v6391_v46  ;;  %v1036_v41 = vrot.slane %v6391_v46, 1  ;;  %v760_v63 = vpop.f32.mrb[49].mxu0  ;;  %v2186_v53 = vrot.slane %v1909_v22, 2  ;;  %v2380_v57 = vrot.slane %v1909_v22, 3  ;;  %v1911_v13 = vpop.f32.mrb[49].mxu1 }
 0x15d   : > { %v1375_v60 = vrot.slane %v760_v63, 2  ;;  %2474 = vrot.lane.b32.xlu0 %v2379_v45, %s5638_s14  ;;  %v6396_v49 = vpop.f32.mrb[50].mxu0  ;;  %v2719_v31 = vrot.slane %v1911_v13, 4  ;;  %v1913_v39 = vpop.f32.mrb[50].mxu1 }
 0x15e   : > { %9059 = vst [vmem:[#allocation71_spill] sm:$0xff] %v6396_v49  ;;  %v1038_v35 = vrot.slane %v6396_v49, 1  ;;  %v764_v59 = vpop.f32.mrb[51].mxu0  ;;  %v1037_v18 = vsel %vm988_vm1, %v1034_v25, %v1036_v41  ;;  %v2188_v44 = vrot.slane %v1913_v39, 2  ;;  %v2382_v29 = vrot.slane %v1913_v39, 3  ;;  %v1915_v46 = vpop.f32.mrb[51].mxu1 }
 0x15f   : > { %v1377_v20 = vrot.slane %v764_v59, 2  ;;  %1132 = vrot.lane.b32.xlu1 %v1037_v18, %s5638_s14  ;;  %v2381_v22 = vsel %vm2364_vm3, %v2378_v12, %v2380_v57  ;;  %v2721_v63 = vrot.slane %v1915_v46, 4  ;;  %v6403_v45 = vsel %vm1327_vm2, %v1373_v37, %v1375_v60 }
 0x160   : > { %9060 = vst [vmem:[#allocation72_spill] sm:$0xff] %v6403_v45  ;;  %5267 = vmatmul.mubr.msk.bf16.gmra.mrb[156].mxu0 %vm525_vm0, %v5543_v54  ;;  %v1039_v13 = vsel %vm988_vm1, %v1036_v41, %v1038_v35  ;;  %v2383_v49 = vsel %vm2364_vm3, %v2380_v57, %v2382_v29  ;;  %v6409_v25 = vsel %vm1327_vm2, %v2184_v9, %v2186_v53 }
 0x161   : > { %v6412_v39 = vsel %vm2703_vm4, %v2717_v56, %v2719_v31  ;;  %1134 = vrot.lane.b32.xlu0 %v1039_v13, %s5638_s14  ;;  %3463 = vmatprep.mubr.bf16.mxu0 %v9025_v15  ;;  %v6417_v12 = vsel %vm1327_vm2, %v1375_v60, %v1377_v20  ;;  %v6420_v37 = vsel %vm1327_vm2, %v2186_v53, %v2188_v44  ;;  %v5545_v13 = vld [vmem:[%s5759_s11 + $0xc0] sm:$0xff]  }
 0x162   : > { %9061 = vst [vmem:[#allocation73_spill] sm:$0xff] %v6412_v39  ;;  %9062 = vst [vmem:[#allocation74_spill] sm:$0xff] %v6417_v12  ;;  %v6423_v18 = vsel %vm2703_vm4, %v2719_v31, %v2721_v63 }
 0x163   : > { %9063 = vst [vmem:[#allocation75_spill] sm:$0xff] %v6423_v18  ;;  %2476 = vrot.lane.b32.xlu1 %v2381_v22, %s5638_s14  ;;  %v6426_v9 = vpop.f32.mrb[52].mxu0  ;;  %v1919_v46 = vpop.f32.mrb[52].mxu1 }
 0x164   : > { %9064 = vst [vmem:[#allocation76_spill] sm:$0xff] %v6426_v9  ;;  %v1040_v56 = vrot.slane %v6426_v9, 1  ;;  %v770_v41 = vpop.f32.mrb[53].mxu0  ;;  %v2190_v57 = vrot.slane %v1919_v46, 2  ;;  %v2384_v54 = vrot.slane %v1919_v46, 3  ;;  %v1921_v59 = vpop.f32.mrb[53].mxu1 }
 0x165   : > { %v1379_v60 = vrot.slane %v770_v41, 2  ;;  %2478 = vrot.lane.b32.xlu0 %v2383_v49, %s5638_s14  ;;  %v6431_v53 = vpop.f32.mrb[54].mxu0  ;;  %v2723_v39 = vrot.slane %v1921_v59, 4  ;;  %v1923_v31 = vpop.f32.mrb[54].mxu1 }
 0x166   : > { %9065 = vst [vmem:[#allocation77_spill] sm:$0xff] %v6431_v53  ;;  %v1042_v18 = vrot.slane %v6431_v53, 1  ;;  %v774_v22 = vpop.f32.mrb[55].mxu0  ;;  %v1041_v12 = vsel %vm988_vm1, %v1038_v35, %v1040_v56  ;;  %v2192_v45 = vrot.slane %v1923_v31, 2  ;;  %v2386_v48 = vrot.slane %v1923_v31, 3  ;;  %v1925_v9 = vpop.f32.mrb[55].mxu1 }
 0x167   : > { %v1381_v33 = vrot.slane %v774_v22, 2  ;;  %1136 = vrot.lane.b32.xlu1 %v1041_v12, %s5638_s14  ;;  %v2385_v46 = vsel %vm2364_vm3, %v2382_v29, %v2384_v54  ;;  %v2725_v41 = vrot.slane %v1925_v9, 4  ;;  %v6438_v49 = vsel %vm1327_vm2, %v1377_v20, %v1379_v60 }
 0x168   : > { %9066 = vst [vmem:[#allocation78_spill] sm:$0xff] %v6438_v49  ;;  %5268 = vmatmul.mubr.msk.bf16.gmra.mrb[160].mxu0 %vm525_vm0, %v5545_v13  ;;  %v1043_v59 = vsel %vm988_vm1, %v1040_v56, %v1042_v18  ;;  %v2387_v53 = vsel %vm2364_vm3, %v2384_v54, %v2386_v48  ;;  %v6444_v35 = vsel %vm1327_vm2, %v2188_v44, %v2190_v57 }
 0x169   : > { %v6447_v31 = vsel %vm2703_vm4, %v2721_v63, %v2723_v39  ;;  %1138 = vrot.lane.b32.xlu0 %v1043_v59, %s5638_s14  ;;  %3473 = vmatprep.mubr.bf16.mxu0 %v9025_v15  ;;  %v6452_v20 = vsel %vm1327_vm2, %v1379_v60, %v1381_v33  ;;  %v6455_v29 = vsel %vm1327_vm2, %v2190_v57, %v2192_v45  ;;  %v5546_v59 = vld [vmem:[%s5759_s11 + $0xc8] sm:$0xff]  }
 0x16a   : > { %9067 = vst [vmem:[#allocation79_spill] sm:$0xff] %v6447_v31  ;;  %9068 = vst [vmem:[#allocation80_spill] sm:$0xff] %v6452_v20  ;;  %v6458_v12 = vsel %vm2703_vm4, %v2723_v39, %v2725_v41 }
 0x16b   : > { %9069 = vst [vmem:[#allocation81_spill] sm:$0xff] %v6458_v12  ;;  %2480 = vrot.lane.b32.xlu1 %v2385_v46, %s5638_s14  ;;  %v6461_v44 = vpop.f32.mrb[56].mxu0  ;;  %v1929_v9 = vpop.f32.mrb[56].mxu1 }
 0x16c   : > { %9070 = vst [vmem:[#allocation82_spill] sm:$0xff] %v6461_v44  ;;  %v1044_v63 = vrot.slane %v6461_v44, 1  ;;  %v780_v56 = vpop.f32.mrb[57].mxu0  ;;  %v2194_v54 = vrot.slane %v1929_v9, 2  ;;  %v2388_v13 = vrot.slane %v1929_v9, 3  ;;  %v1931_v22 = vpop.f32.mrb[57].mxu1 }
 0x16d   : > { %v1383_v60 = vrot.slane %v780_v56, 2  ;;  %2482 = vrot.lane.b32.xlu0 %v2387_v53, %s5638_s14  ;;  %v6466_v57 = vpop.f32.mrb[58].mxu0  ;;  %v2727_v31 = vrot.slane %v1931_v22, 4  ;;  %v1933_v39 = vpop.f32.mrb[58].mxu1 }
 0x16e   : > { %9071 = vst [vmem:[#allocation83_spill] sm:$0xff] %v6466_v57  ;;  %v1046_v12 = vrot.slane %v6466_v57, 1  ;;  %v784_v46 = vpop.f32.mrb[59].mxu0  ;;  %v1045_v20 = vsel %vm988_vm1, %v1042_v18, %v1044_v63  ;;  %v2196_v49 = vrot.slane %v1933_v39, 2  ;;  %v2390_v27 = vrot.slane %v1933_v39, 3  ;;  %v1935_v44 = vpop.f32.mrb[59].mxu1 }
 0x16f   : > { %v1385_v51 = vrot.slane %v784_v46, 2  ;;  %1140 = vrot.lane.b32.xlu1 %v1045_v20, %s5638_s14  ;;  %v2389_v9 = vsel %vm2364_vm3, %v2386_v48, %v2388_v13  ;;  %v2729_v56 = vrot.slane %v1935_v44, 4  ;;  %v6473_v53 = vsel %vm1327_vm2, %v1381_v33, %v1383_v60  ;;  %v5548_v46 = vld [vmem:[%s5759_s11 + $0xd0] sm:$0xff]  }
 0x170   : > { %9072 = vst [vmem:[#allocation84_spill] sm:$0xff] %v6473_v53  ;;  %5269 = vmatmul.mubr.msk.bf16.gmra.mrb[164].mxu0 %vm525_vm0, %v5546_v59  ;;  %v1047_v22 = vsel %vm988_vm1, %v1044_v63, %v1046_v12  ;;  %v2391_v57 = vsel %vm2364_vm3, %v2388_v13, %v2390_v27  ;;  %v6479_v18 = vsel %vm1327_vm2, %v2192_v45, %v2194_v54 }
 0x171   : > { %9073 = vst [vmem:[#allocation85_spill] sm:$0xff] %v6479_v18  ;;  %v6482_v39 = vsel %vm2703_vm4, %v2725_v41, %v2727_v31  ;;  %1142 = vrot.lane.b32.xlu0 %v1047_v22, %s5638_s14  ;;  %3483 = vmatprep.mubr.bf16.mxu0 %v9025_v15  ;;  %v6487_v33 = vsel %vm1327_vm2, %v1383_v60, %v1385_v51 }
 0x172   : > { %9074 = vst [vmem:[#allocation86_spill] sm:$0xff] %v6482_v39  ;;  %9075 = vst [vmem:[#allocation87_spill] sm:$0xff] %v6487_v33  ;;  %v6490_v48 = vsel %vm1327_vm2, %v2194_v54, %v2196_v49  ;;  %v6493_v20 = vsel %vm2703_vm4, %v2727_v31, %v2729_v56 }
 0x173   : > { %9076 = vst [vmem:[#allocation88_spill] sm:$0xff] %v6490_v48  ;;  %9077 = vst [vmem:[#allocation89_spill] sm:$0xff] %v6493_v20  ;;  %v1087_v44 = vpop.permute.xlu0 %1086  ;;  %2484 = vrot.lane.b32.xlu1 %v2389_v9, %s5638_s14  ;;  %v6496_v45 = vpop.f32.mrb[60].mxu0 }
 0x174   : > { %9078 = vst [vmem:[#allocation90_spill] sm:$0xff] %v6496_v45  ;;  %v1230_v41 = vadd.f32 %v1087_v44, %v5980_v16  ;;  %v1048_v63 = vrot.slane %v6496_v45, 1  ;;  %v790_v13 = vpop.f32.mrb[61].mxu0  ;;  %v1939_v59 = vpop.f32.mrb[60].mxu1 }
 0x175   : > { %v1387_v60 = vrot.slane %v790_v13, 2  ;;  %2486 = vrot.lane.b32.xlu0 %v2391_v57, %s5638_s14  ;;  %v6502_v54 = vpop.f32.mrb[62].mxu0  ;;  %v2198_v22 = vrot.slane %v1939_v59, 2  ;;  %v2392_v31 = vrot.slane %v1939_v59, 3  ;;  %v1941_v20 = vpop.f32.mrb[61].mxu1 }
 0x176   : > { %9079 = vst [vmem:[#allocation91_spill] sm:$0xff] %v6502_v54  ;;  %v1473_v39 = vadd.f32 %v6008_v36, %v1230_v41  ;;  %v1050_v9 = vrot.slane %v6502_v54, 1  ;;  %v794_v33 = vpop.f32.mrb[63].mxu0  ;;  %v2731_v53 = vrot.slane %v1941_v20, 4  ;;  %v1049_v16 = vsel %vm988_vm1, %v1046_v12, %v1048_v63  ;;  %v1943_v44 = vpop.f32.mrb[62].mxu1 }
 0x177   : > { %v1389_v45 = vrot.slane %v794_v33, 2  ;;  %1144 = vrot.lane.b32.xlu1 %v1049_v16, %s5638_s14  ;;  %v2200_v13 = vrot.slane %v1943_v44, 2  ;;  %v2394_v48 = vrot.slane %v1943_v44, 3  ;;  %v1945_v57 = vpop.f32.mrb[63].mxu1  ;;  %v2393_v18 = vsel %vm2364_vm3, %v2390_v27, %v2392_v31 }
 0x178   : > { %v1051_v59 = vsel %vm988_vm1, %v1048_v63, %v1050_v9  ;;  %v2733_v2 = vrot.slane %v1945_v57, 4  ;;  %5270 = vmatmul.mubr.msk.bf16.gmra.mrb[168].mxu0 %vm525_vm0, %v5548_v46  ;;  %v6512_v36 = vadd.f32 %v6276_v8, %v1473_v39  ;;  %v6515_v20 = vsel %vm1327_vm2, %v1385_v51, %v1387_v60 }
 0x179   : > { %9080 = vst [vmem:[#allocation92_spill] sm:$0xff] %v6515_v20  ;;  %v1089_v12 = vpop.permute.xlu0 %1088  ;;  %1146 = vrot.lane.b32.xlu0 %v1051_v59, %s5638_s14  ;;  %v2395_v33 = vsel %vm2364_vm3, %v2392_v31, %v2394_v48  ;;  %v6520_v41 = vsel %vm1327_vm2, %v1387_v60, %v1389_v45  ;;  %v6523_v27 = vsel %vm1327_vm2, %v2196_v49, %v2198_v22 }
 0x17a   : > { %9081 = vst [vmem:[#allocation93_spill] sm:$0xff] %v6520_v41  ;;  %v6526_v63 = vsel %vm2703_vm4, %v2729_v56, %v2731_v53  ;;  %v1231_v8 = vadd.f32 %v1089_v12, %v5989_v23  ;;  %v6530_v39 = vsel %vm1327_vm2, %v2198_v22, %v2200_v13  ;;  %v6533_v51 = vsel %vm2703_vm4, %v2731_v53, %v2733_v2  ;;  %v9126_v41 = vld [vmem:[#allocation46_spill] sm:$0xff] }
 0x17b   : > { %9082 = vst [vmem:[#allocation94_spill] sm:$0xff] %v6526_v63  ;;  %9083 = vst [vmem:[#allocation95_spill] sm:$0xff] %v6533_v51  ;;  %3491 = vmatprep.mubr.bf16.mxu0 %v9025_v15  ;;  %v1949_v46 = vpop.f32.mrb[64].mxu1  ;;  %2488 = vrot.lane.b32.xlu1 %v2393_v18, %s5638_s14  ;;  %v6537_v60 = vpop.f32.mrb[64].mxu0 }
 0x17c   : > { %9084 = vst [vmem:[#allocation96_spill] sm:$0xff] %v6537_v60  ;;  %v1474_v49 = vadd.f32 %v6036_v58, %v1231_v8  ;;  %v2396_v31 = vrot.slane %v1949_v46, 3  ;;  %v1052_v56 = vrot.slane %v6537_v60, 1  ;;  %v800_v16 = vpop.f32.mrb[65].mxu0  ;;  %v1951_v23 = vpop.f32.mrb[65].mxu1  ;;  %v2202_v44 = vrot.slane %v1949_v46, 2 }
 0x17d   : > { %v1391_v22 = vrot.slane %v800_v16, 2  ;;  %v2735_v57 = vrot.slane %v1951_v23, 4  ;;  %v6541_v59 = vpop.f32.mrb[66].mxu1  ;;  %v1091_v53 = vpop.permute.xlu0 %1090  ;;  %2490 = vrot.lane.b32.xlu0 %v2395_v33, %s5638_s14 }
 0x17e   : > { %v2204_v15 = vrot.slane %v6541_v59, 2  ;;  %v2398_v18 = vrot.slane %v6541_v59, 3  ;;  %v1232_v12 = vadd.f32 %v1091_v53, %v6016_v38  ;;  %v6547_v58 = vpop.f32.mrb[66].mxu0  ;;  %v1053_v8 = vsel %vm988_vm1, %v1050_v9, %v1052_v56  ;;  %v1955_v60 = vpop.f32.mrb[67].mxu1 }
 0x17f   : > { %9085 = vst [vmem:[#allocation97_spill] sm:$0xff] %v6547_v58  ;;  %v1054_v46 = vrot.slane %v6547_v58, 1  ;;  %v804_v16 = vpop.f32.mrb[67].mxu0  ;;  %1148 = vrot.lane.b32.xlu1 %v1053_v8, %s5638_s14  ;;  %v2737_v23 = vrot.slane %v1955_v60, 4  ;;  %v2397_v54 = vsel %vm2364_vm3, %v2394_v48, %v2396_v31  ;;  %v6554_v33 = vadd.f32 %v6304_v26, %v1474_v49 }
 0x180   : > { %v1475_v59 = vadd.f32 %v6050_v62, %v1232_v12  ;;  %v1393_v51 = vrot.slane %v804_v16, 2  ;;  %v2399_v38 = vsel %vm2364_vm3, %v2396_v31, %v2398_v18  ;;  %v6559_v53 = vsel %vm1327_vm2, %v1389_v45, %v1391_v22 }
 0x181   : > { %9086 = vst [vmem:[#allocation98_spill] sm:$0xff] %v6559_v53  ;;  %v1093_v9 = vpop.permute.xlu1 %1092  ;;  %2494 = vrot.lane.b32.xlu0 %v2399_v38, %s5638_s14  ;;  %v1055_v58 = vsel %vm988_vm1, %v1052_v56, %v1054_v46  ;;  %v6564_v60 = vsel %vm1327_vm2, %v2202_v44, %v2204_v15  ;;  %v6567_v48 = vsel %vm2703_vm4, %v2735_v57, %v2737_v23 }
 0x182   : > { %9087 = vst [vmem:[#allocation99_spill] sm:$0xff] %v6567_v48  ;;  %v6570_v26 = vsel %vm1327_vm2, %v2200_v13, %v2202_v44  ;;  %v1233_v62 = vadd.f32 %v1093_v9, %v6024_v47  ;;  %v6574_v49 = vadd.f32 %v6315_v55, %v1475_v59  ;;  %v6577_v45 = vsel %vm2703_vm4, %v2733_v2, %v2735_v57 }
 0x183   : > { %9088 = vst [vmem:[#allocation100_spill] sm:$0xff] %v6577_v45  ;;  %v6580_v31 = vsel %vm1327_vm2, %v1391_v22, %v1393_v51  ;;  %v1959_v56 = vpop.f32.mrb[68].mxu1  ;;  %v1095_v12 = vpop.permute.xlu0 %1094  ;;  %2492 = vrot.lane.b32.xlu1 %v2397_v54, %s5638_s14 }
 0x184   : > { %9089 = vst [vmem:[#allocation101_spill] sm:$0xff] %v6580_v31  ;;  %v1476_v8 = vadd.f32 %v6076_v28, %v1233_v62  ;;  %v2400_v16 = vrot.slane %v1959_v56, 3  ;;  %v1234_v13 = vadd.f32 %v1095_v12, %v6056_v0  ;;  %v6585_v44 = vpop.f32.mrb[68].mxu0  ;;  %v1961_v47 = vpop.f32.mrb[69].mxu1  ;;  %v2206_v55 = vrot.slane %v1959_v56, 2 }
 0x185   : > { %9090 = vst [vmem:[#allocation102_spill] sm:$0xff] %v6585_v44  ;;  %v1056_v59 = vrot.slane %v6585_v44, 1  ;;  %v810_v2 = vpop.f32.mrb[69].mxu0  ;;  %v2739_v57 = vrot.slane %v1961_v47, 4  ;;  %v6588_v38 = vpop.f32.mrb[70].mxu1  ;;  %1150 = vrot.lane.b32.xlu0 %v1055_v58, %s5638_s14 }
 0x186   : > { %v1477_v22 = vadd.f32 %v6090_v32, %v1234_v13  ;;  %v1395_v54 = vrot.slane %v810_v2, 2  ;;  %v2208_v28 = vrot.slane %v6588_v38, 2  ;;  %v2402_v9 = vrot.slane %v6588_v38, 3  ;;  %v6594_v0 = vpop.f32.mrb[70].mxu0  ;;  %v1965_v62 = vpop.f32.mrb[71].mxu1 }
 0x187   : > { %9091 = vst [vmem:[#allocation103_spill] sm:$0xff] %v6594_v0  ;;  %v1058_v56 = vrot.slane %v6594_v0, 1  ;;  %v814_v12 = vpop.f32.mrb[71].mxu0  ;;  %v2401_v44 = vsel %vm2364_vm3, %v2398_v18, %v2400_v16  ;;  %v2741_v47 = vrot.slane %v1965_v62, 4  ;;  %v1057_v31 = vsel %vm988_vm1, %v1054_v46, %v1056_v59 }
 0x188   : > { %v1397_v45 = vrot.slane %v814_v12, 2  ;;  %2496 = vrot.lane.b32.xlu1 %v2401_v44, %s5638_s14  ;;  %v2403_v32 = vsel %vm2364_vm3, %v2400_v16, %v2402_v9  ;;  %v6602_v58 = vadd.f32 %v6339_v7, %v1476_v8  ;;  %v6605_v13 = vadd.f32 %v6350_v61, %v1477_v22 }
 0x189   : > { %v1097_v2 = vpop.permute.xlu1 %1096  ;;  %2498 = vrot.lane.b32.xlu0 %v2403_v32, %s5638_s14  ;;  %v6609_v38 = vsel %vm988_vm1, %v1056_v59, %v1058_v56  ;;  %v9092_v18 = vrot.slane %v5982_v17, 1  ;;  %v6617_v44 = vsel %vm1327_vm2, %v2204_v15, %v2206_v55  ;;  %v6620_v7 = vsel %vm2703_vm4, %v2737_v23, %v2739_v57 }
 0x18a   : > { %9093 = vst [vmem:[#allocation104_spill] sm:$0xff] %v6620_v7  ;;  %v1235_v61 = vadd.f32 %v1097_v2, %v6064_v10  ;;  %v6624_v8 = vsel %vm1327_vm2, %v2206_v55, %v2208_v28  ;;  %v6627_v16 = vsel %vm2703_vm4, %v2739_v57, %v2741_v47  ;;  %v6630_v59 = vsel %vm1327_vm2, %v1393_v51, %v1395_v54  ;;  %v9115_v7 = vld [vmem:[#allocation88_spill] sm:$0xff] }
 0x18b   : > { %v6614_v46 = vsel %vm988_vm1, %v1058_v56, %v9092_v18  ;;  %9094 = vst [vmem:[#allocation105_spill] sm:$0xff] %v6627_v16  ;;  %9095 = vst [vmem:[#allocation106_spill] sm:$0xff] %v6630_v59  ;;  %v1969_v22 = vpop.f32.mrb[72].mxu1  ;;  %v1099_v62 = vpop.permute.xlu0 %1098  ;;  %v6633_v15 = vsel %vm1327_vm2, %v1395_v54, %v1397_v45  ;;  %v9097_v23 = vrot.slane %v5986_v21, 2 }
 0x18c   : > { %9096 = vst [vmem:[#allocation107_spill] sm:$0xff] %v6633_v15  ;;  %v1478_v10 = vadd.f32 %v6116_v6, %v1235_v61  ;;  %v2210_v55 = vrot.slane %v1969_v22, 2  ;;  %v2404_v12 = vrot.slane %v1969_v22, 3  ;;  %v1236_v57 = vadd.f32 %v1099_v62, %v6096_v34  ;;  %1152 = vrot.lane.b32.xlu1 %v1057_v31, %s5638_s14  ;;  %v3245_v51 = vpop.f32.mrb[72].mxu0  ;;  %v1971_v32 = vpop.f32.mrb[73].mxu1 }
 0x18d   : > { %v6638_v56 = vsel %vm1327_vm2, %v1397_v45, %v9097_v23  ;;  %v3547_v2 = vrot.slane %v3245_v51, 4  ;;  %v3741_v18 = vrot.slane %v3245_v51, 5  ;;  %v3247_v17 = vpop.f32.mrb[73].mxu0  ;;  %v2743_v54 = vrot.slane %v1971_v32, 4  ;;  %v6643_v0 = vpop.f32.mrb[74].mxu1 }
 0x18e   : > { %9098 = vst [vmem:[#allocation108_spill] sm:$0xff] %v6638_v56  ;;  %v1479_v21 = vadd.f32 %v6130_v11, %v1236_v57  ;;  %v4080_v45 = vrot.slane %v3247_v17, 6  ;;  %v3249_v23 = vpop.f32.mrb[74].mxu0  ;;  %v2405_v6 = vsel %vm2364_vm3, %v2402_v9, %v2404_v12  ;;  %v2212_v61 = vrot.slane %v6643_v0, 2  ;;  %v6648_v34 = vpop.f32.mrb[75].mxu1 }
 0x18f   : > { %v3548_v31 = vrot.slane %v3249_v23, 4  ;;  %v3742_v22 = vrot.slane %v3249_v23, 5  ;;  %v3251_v62 = vpop.f32.mrb[75].mxu0  ;;  %v2406_v51 = vrot.slane %v6643_v0, 3  ;;  %v2745_v32 = vrot.slane %v6648_v34, 4 }
 0x190   : > { %v4081_v56 = vrot.slane %v3251_v62, 6  ;;  %2500 = vrot.lane.b32.xlu1 %v2405_v6, %s5638_s14  ;;  %v6654_v11 = vadd.f32 %v6374_v3, %v1478_v10  ;;  %v6657_v17 = vadd.f32 %v6385_v1, %v1479_v21  ;;  %v6660_v9 = vsel %vm1327_vm2, %v2208_v28, %v2210_v55 }
 0x191   : > { %v1101_v57 = vpop.permute.xlu1 %1100  ;;  %v3743_v23 = vsel %vm3740_vm5, %v3741_v18, %v3742_v22  ;;  %v2407_v15 = vsel %vm2364_vm3, %v2404_v12, %v2406_v51  ;;  %v6665_v0 = vsel %vm2703_vm4, %v2741_v47, %v2743_v54  ;;  %v6668_v34 = vsel %vm2703_vm4, %v3547_v2, %v3548_v31 }
 0x192   : > { %9099 = vst [vmem:[#allocation109_spill] sm:$0xff] %v6665_v0  ;;  %v1237_v3 = vadd.f32 %v1101_v57, %v6104_v50  ;;  %3838 = vrot.lane.b32.xlu0 %v3743_v23, %s5638_s14  ;;  %v6673_v1 = vsel %vm4079_vm6, %v4080_v45, %v4081_v56  ;;  %v6676_v28 = vsel %vm1327_vm2, %v2210_v55, %v2212_v61 }
 0x193   : > { %9100 = vst [vmem:[#allocation110_spill] sm:$0xff] %v6673_v1  ;;  %v6679_v10 = vsel %vm2703_vm4, %v2743_v54, %v2745_v32  ;;  %v1103_v12 = vpop.permute.xlu0 %1102  ;;  %v3255_v18 = vpop.f32.mrb[76].mxu0 }
 0x194   : > { %9101 = vst [vmem:[#allocation111_spill] sm:$0xff] %v6679_v10  ;;  %v1480_v47 = vadd.f32 %v6156_v24, %v1237_v3  ;;  %v1238_v2 = vadd.f32 %v1103_v12, %v6136_v14  ;;  %v3744_v21 = vrot.slane %v3255_v18, 5  ;;  %v3257_v6 = vpop.f32.mrb[77].mxu0  ;;  %v1979_v50 = vpop.f32.mrb[76].mxu1  ;;  %v3550_v62 = vrot.slane %v3255_v18, 4 }
 0x195   : > { %v4083_v57 = vrot.slane %v3257_v6, 6  ;;  %v6683_v23 = vpop.f32.mrb[78].mxu0  ;;  %v2214_v45 = vrot.slane %v1979_v50, 2  ;;  %v2408_v1 = vrot.slane %v1979_v50, 3  ;;  %v1981_v55 = vpop.f32.mrb[77].mxu1 }
 0x196   : > { %v1481_v0 = vadd.f32 %v6170_v4, %v1238_v2  ;;  %2502 = vrot.lane.b32.xlu0 %v2407_v15, %s5638_s14  ;;  %v3746_v24 = vrot.slane %v6683_v23, 5  ;;  %v6689_v3 = vpop.f32.mrb[79].mxu0  ;;  %v2747_v14 = vrot.slane %v1981_v55, 4  ;;  %v6691_v12 = vpop.f32.mrb[78].mxu1  ;;  %v3745_v6 = vsel %vm3740_vm5, %v3742_v22, %v3744_v21 }
 0x197   : > { %v4085_v18 = vrot.slane %v6689_v3, 6  ;;  %v2216_v50 = vrot.slane %v6691_v12, 2  ;;  %v2410_v10 = vrot.slane %v6691_v12, 3  ;;  %v6697_v4 = vpop.f32.mrb[79].mxu1  ;;  %3840 = vrot.lane.b32.xlu1 %v3745_v6, %s5638_s14  ;;  %v2409_v2 = vsel %vm2364_vm3, %v2406_v51, %v2408_v1 }
 0x198   : > { %v3747_v15 = vsel %vm3740_vm5, %v3744_v21, %v3746_v24  ;;  %v2749_v55 = vrot.slane %v6697_v4, 4  ;;  %v6704_v54 = vadd.f32 %v6409_v25, %v1480_v47  ;;  %v6708_v59 = vadd.f32 %v6420_v37, %v1481_v0 }
 0x199   : > { %v1105_v3 = vpop.permute.xlu1 %1104  ;;  %v2411_v22 = vsel %vm2364_vm3, %v2408_v1, %v2410_v10  ;;  %v6711_v12 = vsel %vm2703_vm4, %v3548_v31, %v3550_v62  ;;  %v6714_v6 = vsel %vm4079_vm6, %v4081_v56, %v4083_v57  ;;  %v9103_v51 = vrot.slane %v6683_v23, 4 }
 0x19a   : > { %9102 = vst [vmem:[#allocation112_spill] sm:$0xff] %v6714_v6  ;;  %v1239_v21 = vadd.f32 %v1105_v3, %v6144_v43  ;;  %3842 = vrot.lane.b32.xlu0 %v3747_v15, %s5638_s14  ;;  %v6724_v1 = vsel %vm4079_vm6, %v4083_v57, %v4085_v18  ;;  %v6727_v37 = vsel %vm1327_vm2, %v2212_v61, %v2214_v45 }
 0x19b   : > { %v6721_v25 = vsel %vm2703_vm4, %v3550_v62, %v9103_v51  ;;  %9104 = vst [vmem:[#allocation113_spill] sm:$0xff] %v6724_v1  ;;  %v1107_v31 = vpop.permute.xlu0 %1106  ;;  %v3265_v0 = vpop.f32.mrb[80].mxu0  ;;  %v6730_v56 = vsel %vm2703_vm4, %v2745_v32, %v2747_v14  ;;  %v6733_v43 = vsel %vm1327_vm2, %v2214_v45, %v2216_v50  ;;  %v6736_v47 = vsel %vm2703_vm4, %v2747_v14, %v2749_v55 }
 0x19c   : > { %9105 = vst [vmem:[#allocation114_spill] sm:$0xff] %v6730_v56  ;;  %9106 = vst [vmem:[#allocation115_spill] sm:$0xff] %v6736_v47  ;;  %v1482_v62 = vadd.f32 %v6196_v40, %v1239_v21  ;;  %v1240_v4 = vadd.f32 %v1107_v31, %v6176_v30  ;;  %2504 = vrot.lane.b32.xlu1 %v2409_v2, %s5638_s14  ;;  %v3748_v57 = vrot.slane %v3265_v0, 5  ;;  %v3267_v61 = vpop.f32.mrb[81].mxu0  ;;  %v1989_v15 = vpop.f32.mrb[80].mxu1  ;;  %v3554_v3 = vrot.slane %v3265_v0, 4 }
 0x19d   : > { %v4087_v51 = vrot.slane %v3267_v61, 6  ;;  %v6741_v1 = vpop.f32.mrb[82].mxu0  ;;  %v2218_v32 = vrot.slane %v1989_v15, 2  ;;  %v2412_v56 = vrot.slane %v1989_v15, 3  ;;  %v1991_v45 = vpop.f32.mrb[81].mxu1 }
 0x19e   : > { %v1483_v6 = vadd.f32 %v6210_v52, %v1240_v4  ;;  %2506 = vrot.lane.b32.xlu0 %v2411_v22, %s5638_s14  ;;  %v3750_v30 = vrot.slane %v6741_v1, 5  ;;  %v6747_v14 = vpop.f32.mrb[83].mxu0  ;;  %v2751_v2 = vrot.slane %v1991_v45, 4  ;;  %v6749_v21 = vpop.f32.mrb[82].mxu1  ;;  %v3749_v0 = vsel %vm3740_vm5, %v3746_v24, %v3748_v57 }
 0x19f   : > { %v4089_v31 = vrot.slane %v6747_v14, 6  ;;  %v2220_v61 = vrot.slane %v6749_v21, 2  ;;  %v2414_v15 = vrot.slane %v6749_v21, 3  ;;  %v6755_v52 = vpop.f32.mrb[83].mxu1  ;;  %v2413_v4 = vsel %vm2364_vm3, %v2410_v10, %v2412_v56 }
 0x1a0   : > { %3844 = vrot.lane.b32.xlu1 %v3749_v0, %s5638_s14  ;;  %v3751_v22 = vsel %vm3740_vm5, %v3748_v57, %v3750_v30  ;;  %v2753_v45 = vrot.slane %v6755_v52, 4  ;;  %v6762_v40 = vadd.f32 %v6444_v35, %v1482_v62  ;;  %v6766_v47 = vadd.f32 %v6455_v29, %v1483_v6 }
 0x1a1   : > { %v1109_v14 = vpop.permute.xlu1 %1108  ;;  %v2415_v24 = vsel %vm2364_vm3, %v2412_v56, %v2414_v15  ;;  %v9107_v21 = vrot.slane %v6683_v23, 4  ;;  %v6774_v57 = vsel %vm4079_vm6, %v4085_v18, %v4087_v51  ;;  %v9109_v35 = vrot.slane %v6741_v1, 4 }
 0x1a2   : > { %9108 = vst [vmem:[#allocation116_spill] sm:$0xff] %v6774_v57  ;;  %v1241_v10 = vadd.f32 %v1109_v14, %v6184_v42  ;;  %3846 = vrot.lane.b32.xlu0 %v3751_v22, %s5638_s14  ;;  %v6784_v29 = vsel %vm4079_vm6, %v4087_v51, %v4089_v31  ;;  %v6787_v23 = vsel %vm1327_vm2, %v2216_v50, %v2218_v32 }
 0x1a3   : > { %v6771_v16 = vsel %vm2703_vm4, %v9107_v21, %v3554_v3  ;;  %v6781_v62 = vsel %vm2703_vm4, %v3554_v3, %v9109_v35  ;;  %9110 = vst [vmem:[#allocation117_spill] sm:$0xff] %v6784_v29  ;;  %v1111_v6 = vpop.permute.xlu0 %1110  ;;  %v3275_v56 = vpop.f32.mrb[84].mxu0  ;;  %v6790_v18 = vsel %vm2703_vm4, %v2749_v55, %v2751_v2  ;;  %v6793_v42 = vsel %vm1327_vm2, %v2218_v32, %v2220_v61  ;;  %v9113_v29 = vld [vmem:[#allocation42_spill] sm:$0xff] }
 0x1a4   : > { %9111 = vst [vmem:[#allocation118_spill] sm:$0xff] %v6790_v18  ;;  %v6796_v0 = vsel %vm2703_vm4, %v2751_v2, %v2753_v45  ;;  %v1484_v3 = vadd.f32 %v6229_v5, %v1241_v10  ;;  %v1242_v52 = vadd.f32 %v1111_v6, %v6216_v19  ;;  %2508 = vrot.lane.b32.xlu1 %v2413_v4, %s5638_s14  ;;  %v3752_v51 = vrot.slane %v3275_v56, 5  ;;  %v3277_v50 = vpop.f32.mrb[85].mxu0  ;;  %v1999_v22 = vpop.f32.mrb[84].mxu1  ;;  %v9114_v5 = vld [vmem:[#allocation85_spill] sm:$0xff] }
 0x1a5   : > { %9112 = vst [vmem:[#allocation119_spill] sm:$0xff] %v6796_v0  ;;  %v3558_v14 = vrot.slane %v3275_v56, 4  ;;  %v4091_v21 = vrot.slane %v3277_v50, 6  ;;  %v6801_v35 = vpop.f32.mrb[86].mxu0  ;;  %v2222_v55 = vrot.slane %v1999_v22, 2  ;;  %v2416_v18 = vrot.slane %v1999_v22, 3 }
 0x1a6   : > { %v2001_v32 = vpop.f32.mrb[85].mxu1  ;;  %v1485_v57 = vadd.f32 %v9113_v29, %v1242_v52  ;;  %2510 = vrot.lane.b32.xlu0 %v2415_v24, %s5638_s14  ;;  %v3754_v19 = vrot.slane %v6801_v35, 5  ;;  %v6807_v2 = vpop.f32.mrb[87].mxu0  ;;  %v3753_v56 = vsel %vm3740_vm5, %v3750_v30, %v3752_v51  ;;  %v6822_v0 = vadd.f32 %v9114_v5, %v1484_v3 }
 0x1a7   : > { %v2755_v4 = vrot.slane %v2001_v32, 4  ;;  %v6809_v10 = vpop.f32.mrb[86].mxu1  ;;  %v4093_v6 = vrot.slane %v6807_v2, 6  ;;  %v2417_v52 = vsel %vm2364_vm3, %v2414_v15, %v2416_v18  ;;  %v9119_v15 = vld [vmem:[#allocation39_spill] sm:$0xff]  ;;  %v9120_v3 = vrot.slane %v6801_v35, 4 }
 0x1a8   : > { %v2224_v50 = vrot.slane %v6809_v10, 2  ;;  %v2418_v22 = vrot.slane %v6809_v10, 3  ;;  %v6815_v29 = vpop.f32.mrb[87].mxu1  ;;  %3848 = vrot.lane.b32.xlu1 %v3753_v56, %s5638_s14  ;;  %v3755_v24 = vsel %vm3740_vm5, %v3752_v51, %v3754_v19  ;;  %v6826_v48 = vadd.f32 %v9115_v7, %v1485_v57 }
 0x1a9   : > { %v2757_v32 = vrot.slane %v6815_v29, 4  ;;  %v1113_v2 = vpop.permute.xlu1 %1112  ;;  %v9117_v10 = vrot.slane %v6741_v1, 4  ;;  %v6834_v51 = vsel %vm4079_vm6, %v4089_v31, %v4091_v21  ;;  %v6841_v5 = vsel %vm2703_vm4, %v3558_v14, %v9120_v3 }
 0x1aa   : > { %v2419_v30 = vsel %vm2364_vm3, %v2416_v18, %v2418_v22  ;;  %9116 = vst [vmem:[#allocation42_spill] sm:$0xff] %v6826_v48  ;;  %9118 = vst [vmem:[#allocation85_spill] sm:$0xff] %v6834_v51  ;;  %v1243_v56 = vadd.f32 %v1113_v2, %v9119_v15  ;;  %3850 = vrot.lane.b32.xlu0 %v3755_v24, %s5638_s14  ;;  %v6844_v7 = vsel %vm4079_vm6, %v4091_v21, %v4093_v6  ;;  %v9124_v2 = vld [vmem:[#allocation45_spill] sm:$0xff] }
 0x1ab   : > { %v6831_v53 = vsel %vm2703_vm4, %v9117_v10, %v3558_v14  ;;  %9121 = vst [vmem:[#allocation88_spill] sm:$0xff] %v6844_v7  ;;  %v6847_v1 = vsel %vm1327_vm2, %v2220_v61, %v2222_v55  ;;  %v1115_v57 = vpop.permute.xlu0 %1114  ;;  %v3285_v18 = vpop.f32.mrb[88].mxu0  ;;  %v6850_v31 = vsel %vm2703_vm4, %v2753_v45, %v2755_v4  ;;  %v6853_v29 = vsel %vm1327_vm2, %v2222_v55, %v2224_v50  ;;  %v9125_v10 = vld [vmem:[#allocation43_spill] sm:$0xff] }
 0x1ac   : > { %9122 = vst [vmem:[#allocation39_spill] sm:$0xff] %v6850_v31  ;;  %v6856_v24 = vsel %vm2703_vm4, %v2755_v4, %v2757_v32  ;;  %v1486_v14 = vadd.f32 %v9124_v2, %v1243_v56  ;;  %v1244_v15 = vadd.f32 %v1115_v57, %v9125_v10  ;;  %2512 = vrot.lane.b32.xlu1 %v2417_v52, %s5638_s14  ;;  %v3756_v21 = vrot.slane %v3285_v18, 5  ;;  %v3287_v61 = vpop.f32.mrb[89].mxu0  ;;  %v2009_v3 = vpop.f32.mrb[88].mxu1 }
 0x1ad   : > { %9123 = vst [vmem:[#allocation120_spill] sm:$0xff] %v6856_v24  ;;  %v3562_v7 = vrot.slane %v3285_v18, 4  ;;  %v4095_v51 = vrot.slane %v3287_v61, 6  ;;  %v6861_v63 = vpop.f32.mrb[90].mxu0  ;;  %v2226_v45 = vrot.slane %v2009_v3, 2  ;;  %v2420_v31 = vrot.slane %v2009_v3, 3 }
 0x1ae   : > { %v2011_v55 = vpop.f32.mrb[89].mxu1  ;;  %v1487_v20 = vadd.f32 %v9126_v41, %v1244_v15  ;;  %2514 = vrot.lane.b32.xlu0 %v2419_v30, %s5638_s14  ;;  %v3758_v56 = vrot.slane %v6861_v63, 5  ;;  %v6867_v57 = vpop.f32.mrb[91].mxu0  ;;  %v3757_v10 = vsel %vm3740_vm5, %v3754_v19, %v3756_v21  ;;  %v6882_v4 = vadd.f32 %v6523_v27, %v1486_v14 }
 0x1af   : > { %v2759_v52 = vrot.slane %v2011_v55, 4  ;;  %v6869_v2 = vpop.f32.mrb[90].mxu1  ;;  %v2421_v15 = vsel %vm2364_vm3, %v2418_v22, %v2420_v31  ;;  %v9129_v24 = vrot.slane %v6801_v35, 4  ;;  %v9131_v22 = vld [vmem:[#allocation44_spill] sm:$0xff]  ;;  %v9132_v27 = vrot.slane %v6861_v63, 4 }
 0x1b0   : > { %v2422_v3 = vrot.slane %v6869_v2, 3  ;;  %v6875_v41 = vpop.f32.mrb[91].mxu1  ;;  %3852 = vrot.lane.b32.xlu1 %v3757_v10, %s5638_s14  ;;  %v3759_v30 = vsel %vm3740_vm5, %v3756_v21, %v3758_v56  ;;  %9127 = vst [vmem:[#allocation45_spill] sm:$0xff] %v6882_v4  ;;  %v6886_v61 = vadd.f32 %v6530_v39, %v1487_v20  ;;  %v6894_v21 = vsel %vm4079_vm6, %v4093_v6, %v4095_v51 }
 0x1b1   : > { %v2761_v55 = vrot.slane %v6875_v41, 4  ;;  %v1117_v18 = vpop.permute.xlu1 %1116  ;;  %v6891_v48 = vsel %vm2703_vm4, %v9129_v24, %v3562_v7  ;;  %9130 = vst [vmem:[#allocation46_spill] sm:$0xff] %v6894_v21  ;;  %v6901_v14 = vsel %vm2703_vm4, %v3562_v7, %v9132_v27  ;;  %v9133_v20 = vrot.slane %v6867_v57, 6 }
 0x1b2   : > { %v2423_v19 = vsel %vm2364_vm3, %v2420_v31, %v2422_v3  ;;  %9128 = vst [vmem:[#allocation43_spill] sm:$0xff] %v6886_v61  ;;  %v1245_v10 = vadd.f32 %v1117_v18, %v9131_v22  ;;  %3854 = vrot.lane.b32.xlu0 %v3759_v30, %s5638_s14  ;;  %v6909_v35 = vsel %vm1327_vm2, %v2224_v50, %v2226_v45  ;;  %v9137_v18 = vrot.slane %v6869_v2, 2  ;;  %v9140_v30 = vld [vmem:[#allocation49_spill] sm:$0xff] }
 0x1b3   : > { %v6906_v39 = vsel %vm4079_vm6, %v4095_v51, %v9133_v20  ;;  %9135 = vst [vmem:[#allocation121_spill] sm:$0xff] %v6909_v35  ;;  %v2463_v31 = vpop.permute.xlu0 %2462  ;;  %v3295_v6 = vpop.f32.mrb[92].mxu0  ;;  %v6912_v24 = vsel %vm2703_vm4, %v2757_v32, %v2759_v52  ;;  %v6920_v7 = vsel %vm2703_vm4, %v2759_v52, %v2761_v55  ;;  %v9142_v52 = vld [vmem:[#allocation47_spill] sm:$0xff] }
 0x1b4   : > { %9134 = vst [vmem:[#allocation44_spill] sm:$0xff] %v6906_v39  ;;  %9136 = vst [vmem:[#allocation122_spill] sm:$0xff] %v6912_v24  ;;  %v6917_v41 = vsel %vm1327_vm2, %v2226_v45, %v9137_v18  ;;  %v1488_v22 = vadd.f32 %v9140_v30, %v1245_v10  ;;  %v2606_v51 = vadd.f32 %v2463_v31, %v6512_v36  ;;  %2516 = vrot.lane.b32.xlu1 %v2421_v15, %s5638_s14  ;;  %v3297_v27 = vpop.f32.mrb[93].mxu0  ;;  %v2019_v20 = vpop.f32.mrb[92].mxu1  ;;  %v9141_v18 = vld [vmem:[#allocation50_spill] sm:$0xff] }
 0x1b5   : > { %9138 = vst [vmem:[#allocation123_spill] sm:$0xff] %v6917_v41  ;;  %9139 = vst [vmem:[#allocation124_spill] sm:$0xff] %v6920_v7  ;;  %v3760_v50 = vrot.slane %v3295_v6, 5  ;;  %v3566_v39 = vrot.slane %v3295_v6, 4  ;;  %v4099_v32 = vrot.slane %v3297_v27, 6  ;;  %v1119_v24 = vpop.permute.xlu1 %1118  ;;  %v6925_v21 = vpop.f32.mrb[94].mxu0 }
 0x1b6   : > { %v2230_v61 = vrot.slane %v2019_v20, 2  ;;  %v2424_v45 = vrot.slane %v2019_v20, 3  ;;  %v2849_v4 = vadd.f32 %v9141_v18, %v2606_v51  ;;  %v1246_v7 = vadd.f32 %v1119_v24, %v9142_v52  ;;  %2518 = vrot.lane.b32.xlu0 %v2423_v19, %s5638_s14  ;;  %v6932_v10 = vpop.f32.mrb[95].mxu0  ;;  %v6934_v31 = vpop.f32.mrb[93].mxu1  ;;  %v9143_v51 = vld [vmem:[#allocation51_spill] sm:$0xff] }
 0x1b7   : > { %v3762_v15 = vrot.slane %v6925_v21, 5  ;;  %v3761_v27 = vsel %vm3740_vm5, %v3758_v56, %v3760_v50  ;;  %v6939_v20 = vpop.f32.mrb[94].mxu1  ;;  %v6950_v30 = vadd.f32 %v6570_v26, %v1488_v22  ;;  %v9149_v26 = vrot.slane %v6867_v57, 6 }
 0x1b8   : > { %v2425_v24 = vsel %vm2364_vm3, %v2422_v3, %v2424_v45  ;;  %v1489_v19 = vadd.f32 %v9143_v51, %v1246_v7  ;;  %3856 = vrot.lane.b32.xlu1 %v3761_v27, %s5638_s14  ;;  %v2426_v18 = vrot.slane %v6939_v20, 3  ;;  %v6946_v36 = vpop.f32.mrb[95].mxu1  ;;  %v6953_v56 = vadd.f32 %v6668_v34, %v2849_v4  ;;  %v9147_v27 = vld [vmem:[#allocation48_spill] sm:$0xff] }
 0x1b9   : > { %v3763_v52 = vsel %vm3740_vm5, %v3760_v50, %v3762_v15  ;;  %v1121_v41 = vpop.permute.xlu1 %1120  ;;  %9144 = vst [vmem:[#allocation49_spill] sm:$0xff] %v6950_v30  ;;  %v9146_v3 = vrot.slane %v6861_v63, 4  ;;  %v6969_v22 = vsel %vm4079_vm6, %v9149_v26, %v4099_v32  ;;  %v9151_v63 = vrot.slane %v6925_v21, 4 }
 0x1ba   : > { %9145 = vst [vmem:[#allocation50_spill] sm:$0xff] %v6953_v56  ;;  %v1247_v51 = vadd.f32 %v1121_v41, %v9147_v27  ;;  %3858 = vrot.lane.b32.xlu0 %v3763_v52, %s5638_s14  ;;  %v2427_v50 = vsel %vm2364_vm3, %v2424_v45, %v2426_v18  ;;  %v6964_v6 = vadd.f32 %v6564_v60, %v1489_v19  ;;  %9150 = vst [vmem:[#allocation51_spill] sm:$0xff] %v6969_v22  ;;  %v9158_v27 = vld [vmem:[#allocation54_spill] sm:$0xff]  ;;  %v9159_v22 = vld [vmem:[#allocation52_spill] sm:$0xff] }
 0x1bb   : > { %v6958_v7 = vsel %vm2703_vm4, %v9146_v3, %v3566_v39  ;;  %v1123_v34 = vpop.permute.xlu0 %1122  ;;  %v3305_v4 = vpop.f32.mrb[96].mxu0  ;;  %v6974_v3 = vsel %vm2703_vm4, %v3566_v39, %v9151_v63  ;;  %v9152_v41 = vrot.slane %v6932_v10, 6  ;;  %v9154_v60 = vrot.slane %v6869_v2, 2 }
 0x1bc   : > { %9148 = vst [vmem:[#allocation47_spill] sm:$0xff] %v6964_v6  ;;  %v9156_v57 = vrot.slane %v6934_v31, 4  ;;  %v1490_v26 = vadd.f32 %v9158_v27, %v1247_v51  ;;  %v1248_v39 = vadd.f32 %v1123_v34, %v9159_v22  ;;  %2520 = vrot.lane.b32.xlu1 %v2425_v24, %s5638_s14  ;;  %v3764_v63 = vrot.slane %v3305_v4, 5  ;;  %v6994_v56 = vpop.f32.mrb[97].mxu0  ;;  %v9162_v22 = vld [vmem:[#allocation56_spill] sm:$0xff] }
 0x1bd   : > { %v6979_v52 = vsel %vm4079_vm6, %v4099_v32, %v9152_v41  ;;  %v6984_v45 = vsel %vm1327_vm2, %v9154_v60, %v2230_v61  ;;  %v6996_v32 = vpop.f32.mrb[96].mxu1  ;;  %v2465_v41 = vpop.permute.xlu1 %2464  ;;  %v3570_v24 = vrot.slane %v3305_v4, 4 }
 0x1be   : > { %9153 = vst [vmem:[#allocation48_spill] sm:$0xff] %v6979_v52  ;;  %9155 = vst [vmem:[#allocation125_spill] sm:$0xff] %v6984_v45  ;;  %v6989_v19 = vsel %vm2703_vm4, %v2761_v55, %v9156_v57  ;;  %v6999_v60 = vpop.f32.mrb[98].mxu0  ;;  %v2428_v52 = vrot.slane %v6996_v32, 3  ;;  %v9160_v55 = vrot.slane %v6939_v20, 2  ;;  %v1491_v34 = vadd.f32 %v9162_v22, %v1248_v39  ;;  %2522 = vrot.lane.b32.xlu0 %v2427_v50, %s5638_s14 }
 0x1bf   : > { %9157 = vst [vmem:[#allocation126_spill] sm:$0xff] %v6989_v19  ;;  %v2607_v57 = vadd.f32 %v2465_v41, %v6554_v33  ;;  %v3766_v27 = vrot.slane %v6999_v60, 5  ;;  %v7011_v2 = vpop.f32.mrb[99].mxu0  ;;  %v7013_v19 = vpop.f32.mrb[97].mxu1  ;;  %v9163_v33 = vld [vmem:[#allocation55_spill] sm:$0xff] }
 0x1c0   : > { %v7005_v51 = vsel %vm1327_vm2, %v2230_v61, %v9160_v55  ;;  %v2467_v45 = vpop.permute.xlu0 %2466  ;;  %v3765_v61 = vsel %vm3740_vm5, %v3762_v15, %v3764_v63  ;;  %v2429_v39 = vsel %vm2364_vm3, %v2426_v18, %v2428_v52  ;;  %v7019_v4 = vpop.f32.mrb[98].mxu1  ;;  %v7032_v15 = vadd.f32 %v6624_v8, %v1491_v34  ;;  %v9166_v18 = vld [vmem:[#allocation57_spill] sm:$0xff] }
 0x1c1   : > { %9161 = vst [vmem:[#allocation54_spill] sm:$0xff] %v7005_v51  ;;  %v2850_v41 = vadd.f32 %v9163_v33, %v2607_v57  ;;  %v2608_v50 = vadd.f32 %v2467_v45, %v6574_v49  ;;  %3860 = vrot.lane.b32.xlu1 %v3765_v61, %s5638_s14  ;;  %v3767_v55 = vsel %vm3740_vm5, %v3764_v63, %v3766_v27  ;;  %v7025_v22 = vpop.f32.mrb[99].mxu1  ;;  %v1125_v30 = vpop.permute.xlu1 %1124  ;;  %v2430_v6 = vrot.slane %v7019_v4, 3  ;;  %v9167_v57 = vld [vmem:[#allocation53_spill] sm:$0xff] }
 0x1c2   : > { %v7029_v51 = vadd.f32 %v6617_v44, %v1490_v26  ;;  %9165 = vst [vmem:[#allocation56_spill] sm:$0xff] %v7032_v15  ;;  %v1249_v33 = vadd.f32 %v1125_v30, %v9167_v57  ;;  %3862 = vrot.lane.b32.xlu0 %v3767_v55, %s5638_s14  ;;  %v9169_v45 = vrot.slane %v6946_v36, 4  ;;  %v9170_v63 = vrot.slane %v6934_v31, 4  ;;  %v9179_v57 = vld [vmem:[#allocation58_spill] sm:$0xff] }
 0x1c3   : > { %v2851_v35 = vadd.f32 %v9166_v18, %v2608_v50  ;;  %v7038_v49 = vadd.f32 %v6711_v12, %v2850_v41  ;;  %v7047_v26 = vpop.f32.mrb[100].mxu0  ;;  %v7050_v8 = vsel %vm2364_vm3, %v2428_v52, %v2430_v6  ;;  %v9172_v30 = vrot.slane %v6925_v21, 4  ;;  %v9178_v18 = vld [vmem:[#allocation60_spill] sm:$0xff] }
 0x1c4   : > { %9164 = vst [vmem:[#allocation52_spill] sm:$0xff] %v7029_v51  ;;  %v7045_v61 = vsel %vm2703_vm4, %v9170_v63, %v9169_v45  ;;  %v1127_v44 = vpop.permute.xlu0 %1126  ;;  %v9173_v12 = vrot.slane %v6994_v56, 6  ;;  %v9174_v41 = vrot.slane %v6932_v10, 6  ;;  %v9176_v50 = vrot.slane %v6999_v60, 4  ;;  %v7073_v63 = vpop.f32.mrb[101].mxu0 }
 0x1c5   : > { %9168 = vst [vmem:[#allocation55_spill] sm:$0xff] %v7038_v49  ;;  %9171 = vst [vmem:[#allocation57_spill] sm:$0xff] %v7045_v61  ;;  %v7055_v34 = vsel %vm2703_vm4, %v9172_v30, %v3570_v24  ;;  %v1492_v52 = vadd.f32 %v9178_v18, %v1249_v33  ;;  %v1250_v45 = vadd.f32 %v1127_v44, %v9179_v57  ;;  %2524 = vrot.lane.b32.xlu1 %v2429_v39, %s5638_s14  ;;  %v7075_v30 = vpop.f32.mrb[100].mxu1  ;;  %v9181_v44 = vld [vmem:[#allocation62_spill] sm:$0xff] }
 0x1c6   : > { %v7062_v31 = vsel %vm4079_vm6, %v9174_v41, %v9173_v12  ;;  %v7067_v55 = vsel %vm2703_vm4, %v3570_v24, %v9176_v50  ;;  %v3768_v21 = vrot.slane %v7047_v26, 5  ;;  %v2469_v12 = vpop.permute.xlu1 %2468  ;;  %v7078_v41 = vpop.f32.mrb[102].mxu0  ;;  %v2432_v24 = vrot.slane %v7075_v30, 3 }
 0x1c7   : > { %9175 = vst [vmem:[#allocation53_spill] sm:$0xff] %v7062_v31  ;;  %9177 = vst [vmem:[#allocation127_spill] sm:$0xff] %v7067_v55  ;;  %v7082_v50 = vadd.f32 %v6721_v25, %v2851_v35  ;;  %v1493_v39 = vadd.f32 %v9181_v44, %v1250_v45  ;;  %v2609_v18 = vadd.f32 %v2469_v12, %v6602_v58  ;;  %v3770_v57 = vrot.slane %v7078_v41, 5  ;;  %v7088_v31 = vpop.f32.mrb[103].mxu0  ;;  %v7090_v61 = vpop.f32.mrb[101].mxu1  ;;  %v9182_v45 = vld [vmem:[#allocation61_spill] sm:$0xff] }
 0x1c8   : > { %v2471_v15 = vpop.permute.xlu0 %2470  ;;  %v3769_v25 = vsel %vm3740_vm5, %v3766_v27, %v3768_v21  ;;  %v7096_v35 = vsel %vm2364_vm3, %v2430_v6, %v2432_v24  ;;  %v7098_v33 = vpop.f32.mrb[102].mxu1  ;;  %v7109_v6 = vadd.f32 %v6660_v9, %v1492_v52  ;;  %v9189_v51 = vrot.slane %v6994_v56, 6 }
 0x1c9   : > { %9180 = vst [vmem:[#allocation60_spill] sm:$0xff] %v7082_v50  ;;  %v2852_v58 = vadd.f32 %v9182_v45, %v2609_v18  ;;  %v2610_v12 = vadd.f32 %v2471_v15, %v6605_v13  ;;  %3864 = vrot.lane.b32.xlu1 %v3769_v25, %s5638_s14  ;;  %v3771_v44 = vsel %vm3740_vm5, %v3768_v21, %v3770_v57  ;;  %v7104_v50 = vpop.f32.mrb[103].mxu1  ;;  %v2434_v27 = vrot.slane %v7098_v33, 3  ;;  %v9185_v18 = vld [vmem:[#allocation63_spill] sm:$0xff] }
 0x1ca   : > { %v1129_v10 = vpop.permute.xlu1 %1128  ;;  %3866 = vrot.lane.b32.xlu0 %v3771_v44, %s5638_s14  ;;  %9183 = vst [vmem:[#allocation58_spill] sm:$0xff] %v7109_v6  ;;  %v7112_v49 = vadd.f32 %v6676_v28, %v1493_v39  ;;  %v9186_v13 = vld [vmem:[#allocation59_spill] sm:$0xff]  ;;  %v9188_v21 = vrot.slane %v7011_v2, 6  ;;  %v9191_v52 = vrot.slane %v6996_v32, 2  ;;  %v9194_v39 = vrot.slane %v7013_v19, 4 }
 0x1cb   : > { %v2853_v45 = vadd.f32 %v9185_v18, %v2610_v12  ;;  %v1251_v15 = vadd.f32 %v1129_v10, %v9186_v13  ;;  %v7117_v25 = vadd.f32 %v6771_v16, %v2852_v58  ;;  %v7126_v9 = vpop.f32.mrb[104].mxu0  ;;  %v7129_v28 = vsel %vm2364_vm3, %v2432_v24, %v2434_v27  ;;  %v9200_v18 = vld [vmem:[#allocation66_spill] sm:$0xff] }
 0x1cc   : > { %9184 = vst [vmem:[#allocation62_spill] sm:$0xff] %v7112_v49  ;;  %v7124_v44 = vsel %vm4079_vm6, %v9189_v51, %v9188_v21  ;;  %v1131_v55 = vpop.permute.xlu0 %1130  ;;  %v9192_v10 = vrot.slane %v6939_v20, 2  ;;  %v9195_v56 = vrot.slane %v6946_v36, 4  ;;  %v9197_v58 = vrot.slane %v7047_v26, 4  ;;  %v9201_v20 = vld [vmem:[#allocation64_spill] sm:$0xff] }
 0x1cd   : > { %9187 = vst [vmem:[#allocation61_spill] sm:$0xff] %v7117_v25  ;;  %9190 = vst [vmem:[#allocation63_spill] sm:$0xff] %v7124_v44  ;;  %v9198_v12 = vrot.slane %v6999_v60, 4  ;;  %v1494_v13 = vadd.f32 %v9200_v18, %v1251_v15  ;;  %v1252_v21 = vadd.f32 %v1131_v55, %v9201_v20  ;;  %v7157_v44 = vpop.f32.mrb[104].mxu1  ;;  %v3576_v55 = vrot.slane %v7078_v41, 4  ;;  %v9203_v15 = vld [vmem:[#allocation68_spill] sm:$0xff] }
 0x1ce   : > { %v7136_v16 = vsel %vm1327_vm2, %v9192_v10, %v9191_v52  ;;  %v7143_v51 = vsel %vm2703_vm4, %v9195_v56, %v9194_v39  ;;  %v3772_v52 = vrot.slane %v7126_v9, 5  ;;  %v7155_v10 = vpop.f32.mrb[105].mxu0  ;;  %v4107_v39 = vrot.slane %v7073_v63, 6  ;;  %v2473_v56 = vpop.permute.xlu1 %2472 }
 0x1cf   : > { %9193 = vst [vmem:[#allocation59_spill] sm:$0xff] %v7136_v16  ;;  %9196 = vst [vmem:[#allocation128_spill] sm:$0xff] %v7143_v51  ;;  %v7150_v24 = vsel %vm2703_vm4, %v9198_v12, %v9197_v58  ;;  %v7161_v51 = vpop.f32.mrb[106].mxu0  ;;  %v2436_v60 = vrot.slane %v7157_v44, 3  ;;  %v7165_v58 = vadd.f32 %v6781_v62, %v2853_v45  ;;  %v1495_v12 = vadd.f32 %v9203_v15, %v1252_v21  ;;  %v7173_v36 = vpop.f32.mrb[105].mxu1  ;;  %v9205_v21 = vld [vmem:[#allocation67_spill] sm:$0xff] }
 0x1d0   : > { %9199 = vst [vmem:[#allocation129_spill] sm:$0xff] %v7150_v24  ;;  %v2611_v18 = vadd.f32 %v2473_v56, %v6654_v11  ;;  %v3774_v20 = vrot.slane %v7161_v51, 5  ;;  %v7171_v25 = vpop.f32.mrb[107].mxu0  ;;  %9204 = vst [vmem:[#allocation64_spill] sm:$0xff] %v7173_v36  ;;  %v2475_v6 = vpop.permute.xlu0 %2474  ;;  %v3773_v62 = vsel %vm3740_vm5, %v3770_v57, %v3772_v52  ;;  %v7194_v16 = vadd.f32 %v6727_v37, %v1494_v13 }
 0x1d1   : > { %9202 = vst [vmem:[#allocation66_spill] sm:$0xff] %v7165_v58  ;;  %v7179_v45 = vsel %vm2364_vm3, %v2434_v27, %v2436_v60  ;;  %v7181_v41 = vpop.f32.mrb[106].mxu1  ;;  %v2612_v15 = vadd.f32 %v2475_v6, %v6657_v17  ;;  %3868 = vrot.lane.b32.xlu1 %v3773_v62, %s5638_s14  ;;  %v9208_v17 = vld [vmem:[#allocation69_spill] sm:$0xff]  ;;  %v9211_v49 = vrot.slane %v7011_v2, 6  ;;  %v9216_v2 = vrot.slane %v7126_v9, 4 }
 0x1d2   : > { %v2854_v56 = vadd.f32 %v9205_v21, %v2611_v18  ;;  %v3775_v63 = vsel %vm3740_vm5, %v3772_v52, %v3774_v20  ;;  %v7188_v58 = vpop.f32.mrb[107].mxu1  ;;  %v1133_v57 = vpop.permute.xlu1 %1132  ;;  %v2438_v27 = vrot.slane %v7181_v41, 3  ;;  %9206 = vst [vmem:[#allocation68_spill] sm:$0xff] %v7194_v16  ;;  %v7197_v18 = vadd.f32 %v6733_v43, %v1495_v12  ;;  %v9209_v62 = vld [vmem:[#allocation65_spill] sm:$0xff] }
 0x1d3   : > { %3870 = vrot.lane.b32.xlu0 %v3775_v63, %s5638_s14  ;;  %v2855_v6 = vadd.f32 %v9208_v17, %v2612_v15  ;;  %v1253_v21 = vadd.f32 %v1133_v57, %v9209_v62  ;;  %v7207_v11 = vsel %vm4079_vm6, %v9211_v49, %v4107_v39  ;;  %v7209_v24 = vpop.f32.mrb[108].mxu0  ;;  %v9213_v43 = vrot.slane %v7047_v26, 4  ;;  %v9217_v15 = vld [vmem:[#allocation72_spill] sm:$0xff]  ;;  %v9218_v57 = vld [vmem:[#allocation70_spill] sm:$0xff] }
 0x1d4   : > { %9207 = vst [vmem:[#allocation67_spill] sm:$0xff] %v7197_v18  ;;  %v7202_v52 = vadd.f32 %v6831_v53, %v2854_v56  ;;  %9212 = vst [vmem:[#allocation65_spill] sm:$0xff] %v7207_v11  ;;  %v1135_v63 = vpop.permute.xlu0 %1134  ;;  %v7212_v37 = vsel %vm2364_vm3, %v2436_v60, %v2438_v27  ;;  %v9214_v12 = vrot.slane %v7088_v31, 6  ;;  %v7227_v49 = vsel %vm2703_vm4, %v3576_v55, %v9216_v2  ;;  %v7233_v62 = vpop.f32.mrb[109].mxu0 }
 0x1d5   : > { %v7217_v13 = vsel %vm2703_vm4, %v9213_v43, %v3576_v55  ;;  %v1496_v60 = vadd.f32 %v9217_v15, %v1253_v21  ;;  %v1254_v17 = vadd.f32 %v1135_v63, %v9218_v57  ;;  %v3776_v26 = vrot.slane %v7209_v24, 5  ;;  %v7235_v43 = vpop.f32.mrb[108].mxu1  ;;  %v9220_v15 = vld [vmem:[#allocation74_spill] sm:$0xff] }
 0x1d6   : > { %9210 = vst [vmem:[#allocation69_spill] sm:$0xff] %v7202_v52  ;;  %v7222_v53 = vsel %vm4079_vm6, %v4107_v39, %v9214_v12  ;;  %v2477_v11 = vpop.permute.xlu1 %2476  ;;  %v7239_v39 = vpop.f32.mrb[110].mxu0  ;;  %v2440_v21 = vrot.slane %v7235_v43, 3  ;;  %v7245_v63 = vadd.f32 %v6841_v5, %v2855_v6  ;;  %v4111_v2 = vrot.slane %v7155_v10, 6 }
 0x1d7   : > { %9215 = vst [vmem:[#allocation130_spill] sm:$0xff] %v7222_v53  ;;  %2526 = vrot.lane.b32.xlu0 %v7050_v8, %s5638_s14  ;;  %v1497_v57 = vadd.f32 %v9220_v15, %v1254_v17  ;;  %v2613_v56 = vadd.f32 %v2477_v11, %v6704_v54  ;;  %v3778_v53 = vrot.slane %v7239_v39, 5  ;;  %v7251_v8 = vpop.f32.mrb[111].mxu0  ;;  %v7253_v52 = vpop.f32.mrb[109].mxu1  ;;  %v3777_v5 = vsel %vm3740_vm5, %v3774_v20, %v3776_v26  ;;  %v9221_v17 = vld [vmem:[#allocation73_spill] sm:$0xff] }
 0x1d8   : > { %9219 = vst [vmem:[#allocation72_spill] sm:$0xff] %v7245_v63  ;;  %v2479_v18 = vpop.permute.xlu0 %2478  ;;  %v7259_v6 = vsel %vm2364_vm3, %v2438_v27, %v2440_v21  ;;  %v7261_v10 = vpop.f32.mrb[110].mxu1  ;;  %3872 = vrot.lane.b32.xlu1 %v3777_v5, %s5638_s14  ;;  %v7274_v16 = vadd.f32 %v6787_v23, %v1496_v60  ;;  %v9227_v55 = vrot.slane %v7088_v31, 6  ;;  %v9230_v60 = vrot.slane %v7126_v9, 4 }
 0x1d9   : > { %v2856_v54 = vadd.f32 %v9221_v17, %v2613_v56  ;;  %v2614_v11 = vadd.f32 %v2479_v18, %v6708_v59  ;;  %v3779_v15 = vsel %vm3740_vm5, %v3776_v26, %v3778_v53  ;;  %v7268_v63 = vpop.f32.mrb[111].mxu1  ;;  %v2442_v27 = vrot.slane %v7261_v10, 3  ;;  %v9224_v18 = vld [vmem:[#allocation75_spill] sm:$0xff] }
 0x1da   : > { %v1137_v12 = vpop.permute.xlu1 %1136  ;;  %9222 = vst [vmem:[#allocation70_spill] sm:$0xff] %v7274_v16  ;;  %v7277_v59 = vadd.f32 %v6793_v42, %v1497_v57  ;;  %v9225_v26 = vld [vmem:[#allocation71_spill] sm:$0xff]  ;;  %v9229_v42 = vrot.slane %v7161_v51, 4  ;;  %v9234_v57 = vrot.slane %v6996_v32, 2  ;;  %v3582_v32 = vrot.slane %v7209_v24, 4 }
 0x1db   : > { %3874 = vrot.lane.b32.xlu0 %v3779_v15, %s5638_s14  ;;  %v2857_v56 = vadd.f32 %v9224_v18, %v2614_v11  ;;  %v1255_v5 = vadd.f32 %v1137_v12, %v9225_v26  ;;  %v7282_v17 = vadd.f32 %v6891_v48, %v2856_v54  ;;  %v7287_v15 = vsel %vm4079_vm6, %v9227_v55, %v4111_v2  ;;  %v7289_v36 = vpop.f32.mrb[112].mxu0  ;;  %v9236_v18 = vld [vmem:[#allocation76_spill] sm:$0xff] }
 0x1dc   : > { %9223 = vst [vmem:[#allocation74_spill] sm:$0xff] %v7277_v59  ;;  %9228 = vst [vmem:[#allocation75_spill] sm:$0xff] %v7287_v15  ;;  %v1139_v20 = vpop.permute.xlu0 %1138  ;;  %v7292_v23 = vsel %vm2364_vm3, %v2440_v21, %v2442_v27  ;;  %v7299_v12 = vsel %vm2703_vm4, %v9230_v60, %v9229_v42  ;;  %v9231_v48 = vrot.slane %v7171_v25, 6  ;;  %v9233_v55 = vrot.slane %v7019_v4, 2  ;;  %v9235_v21 = vld [vmem:[#allocation78_spill] sm:$0xff]  ;;  %2528 = vrot.lane.b32.xlu1 %v7096_v35, %s5638_s14  ;;  %v7318_v42 = vpop.f32.mrb[113].mxu0 }
 0x1dd   : > { %9226 = vst [vmem:[#allocation73_spill] sm:$0xff] %v7282_v17  ;;  %v1498_v11 = vadd.f32 %v9235_v21, %v1255_v5  ;;  %v1256_v26 = vadd.f32 %v1139_v20, %v9236_v18  ;;  %v3780_v9 = vrot.slane %v7289_v36, 5  ;;  %v7321_v60 = vpop.f32.mrb[112].mxu1  ;;  %v7326_v5 = vpop.f32.mrb[114].mxu0  ;;  %v9238_v21 = vld [vmem:[#allocation80_spill] sm:$0xff] }
 0x1de   : > { %v7304_v31 = vsel %vm4079_vm6, %v4111_v2, %v9231_v48  ;;  %v7311_v54 = vsel %vm1327_vm2, %v9234_v57, %v9233_v55  ;;  %v2481_v48 = vpop.permute.xlu1 %2480  ;;  %v2444_v35 = vrot.slane %v7321_v60, 3  ;;  %v7331_v55 = vadd.f32 %v6901_v14, %v2857_v56 }
 0x1df   : > { %9232 = vst [vmem:[#allocation71_spill] sm:$0xff] %v7304_v31  ;;  %1154 = vrot.lane.b32.xlu0 %v6609_v38, %s5638_s14  ;;  %v1499_v18 = vadd.f32 %v9238_v21, %v1256_v26  ;;  %v2615_v2 = vadd.f32 %v2481_v48, %v6762_v40  ;;  %v3782_v24 = vrot.slane %v7326_v5, 5  ;;  %v7337_v31 = vpop.f32.mrb[115].mxu0  ;;  %v7339_v38 = vpop.f32.mrb[113].mxu1  ;;  %v3781_v17 = vsel %vm3740_vm5, %v3778_v53, %v3780_v9  ;;  %v9240_v26 = vld [vmem:[#allocation79_spill] sm:$0xff] }
 0x1e0   : > { %9237 = vst [vmem:[#allocation78_spill] sm:$0xff] %v7331_v55  ;;  %9239 = vst [vmem:[#allocation76_spill] sm:$0xff] %v7339_v38  ;;  %v2483_v20 = vpop.permute.xlu0 %2482  ;;  %v7345_v56 = vsel %vm2364_vm3, %v2442_v27, %v2444_v35  ;;  %v7347_v57 = vpop.f32.mrb[114].mxu1  ;;  %3876 = vrot.lane.b32.xlu1 %v3781_v17, %s5638_s14  ;;  %v7360_v59 = vadd.f32 %v6847_v1, %v1498_v11  ;;  %v9244_v17 = vld [vmem:[#allocation77_spill] sm:$0xff]  ;;  %v9246_v40 = vrot.slane %v7025_v22, 4  ;;  %v9250_v11 = vrot.slane %v7161_v51, 4 }
 0x1e1   : > { %v2858_v48 = vadd.f32 %v9240_v26, %v2615_v2  ;;  %v2616_v21 = vadd.f32 %v2483_v20, %v6766_v47  ;;  %v3783_v15 = vsel %vm3740_vm5, %v3780_v9, %v3782_v24  ;;  %v7354_v55 = vpop.f32.mrb[115].mxu1  ;;  %v2446_v14 = vrot.slane %v7347_v57, 3  ;;  %v9243_v47 = vld [vmem:[#allocation81_spill] sm:$0xff] }
 0x1e2   : > { %v1141_v53 = vpop.permute.xlu1 %1140  ;;  %9241 = vst [vmem:[#allocation80_spill] sm:$0xff] %v7360_v59  ;;  %v7363_v2 = vadd.f32 %v6853_v29, %v1499_v18  ;;  %v7385_v18 = vsel %vm2703_vm4, %v9250_v11, %v3582_v32  ;;  %v9263_v59 = vld [vmem:[#allocation121_spill] sm:$0xff] }
 0x1e3   : > { %3878 = vrot.lane.b32.xlu0 %v3783_v15, %s5638_s14  ;;  %v2859_v20 = vadd.f32 %v9243_v47, %v2616_v21  ;;  %v1257_v26 = vadd.f32 %v1141_v53, %v9244_v17  ;;  %v7368_v9 = vadd.f32 %v6958_v7, %v2858_v48  ;;  %v9247_v15 = vrot.slane %v7013_v19, 4  ;;  %v7377_v1 = vpop.f32.mrb[116].mxu0  ;;  %v9255_v53 = vld [vmem:[#allocation84_spill] sm:$0xff]  ;;  %v9256_v47 = vld [vmem:[#allocation82_spill] sm:$0xff]  ;;  %v7407_v11 = vpop.f32.mrb[116].mxu1 }
 0x1e4   : > { %9242 = vst [vmem:[#allocation79_spill] sm:$0xff] %v7363_v2  ;;  %v1143_v16 = vpop.permute.xlu0 %1142  ;;  %v7380_v29 = vsel %vm2364_vm3, %v2444_v35, %v2446_v14  ;;  %v9251_v7 = vrot.slane %v7233_v62, 6  ;;  %v9252_v48 = vrot.slane %v7171_v25, 6  ;;  %1156 = vrot.lane.b32.xlu1 %v6614_v46, %s5638_s14  ;;  %v3784_v51 = vrot.slane %v7377_v1, 5 }
 0x1e5   : > { %9245 = vst [vmem:[#allocation81_spill] sm:$0xff] %v7368_v9  ;;  %v7375_v27 = vsel %vm2703_vm4, %v9247_v15, %v9246_v40  ;;  %9249 = vst [vmem:[#allocation131_spill] sm:$0xff] %v7380_v29  ;;  %v9254_v40 = vrot.slane %v7239_v39, 4  ;;  %v1500_v35 = vadd.f32 %v9255_v53, %v1257_v26  ;;  %v1258_v17 = vadd.f32 %v1143_v16, %v9256_v47  ;;  %v7404_v15 = vpop.f32.mrb[117].mxu0  ;;  %v9258_v53 = vld [vmem:[#allocation87_spill] sm:$0xff] }
 0x1e6   : > { %9248 = vst [vmem:[#allocation77_spill] sm:$0xff] %v7375_v27  ;;  %v7392_v19 = vsel %vm4079_vm6, %v9252_v48, %v9251_v7  ;;  %v2485_v48 = vpop.permute.xlu1 %2484  ;;  %v2448_v46 = vrot.slane %v7407_v11, 3  ;;  %v7417_v26 = vadd.f32 %v6974_v3, %v2859_v20  ;;  %v3785_v9 = vsel %vm3740_vm5, %v3782_v24, %v3784_v51 }
 0x1e7   : > { %9253 = vst [vmem:[#allocation132_spill] sm:$0xff] %v7392_v19  ;;  %v7397_v21 = vsel %vm2703_vm4, %v3582_v32, %v9254_v40  ;;  %2530 = vrot.lane.b32.xlu0 %v7129_v28, %s5638_s14  ;;  %v7412_v32 = vpop.f32.mrb[118].mxu0  ;;  %v1501_v47 = vadd.f32 %v9258_v53, %v1258_v17  ;;  %v2617_v25 = vadd.f32 %v2485_v48, %v6822_v0  ;;  %v7425_v28 = vpop.f32.mrb[117].mxu1  ;;  %v9261_v17 = vld [vmem:[#allocation86_spill] sm:$0xff]  ;;  %v9265_v0 = vld [vmem:[#allocation123_spill] sm:$0xff]  ;;  %v9270_v29 = vrot.slane %v7251_v8, 6 }
 0x1e8   : > { %9257 = vst [vmem:[#allocation84_spill] sm:$0xff] %v7417_v26  ;;  %v3786_v7 = vrot.slane %v7412_v32, 5  ;;  %v7423_v19 = vpop.f32.mrb[119].mxu0  ;;  %v2487_v16 = vpop.permute.xlu0 %2486  ;;  %v7431_v20 = vsel %vm2364_vm3, %v2446_v14, %v2448_v46  ;;  %v9262_v53 = vld [vmem:[#allocation42_spill] sm:$0xff]  ;;  %3880 = vrot.lane.b32.xlu1 %v3785_v9, %s5638_s14  ;;  %v9268_v9 = vld [vmem:[#allocation83_spill] sm:$0xff] }
 0x1e9   : > { %9259 = vst [vmem:[#allocation82_spill] sm:$0xff] %v7431_v20  ;;  %v7433_v40 = vpop.f32.mrb[118].mxu1  ;;  %v2860_v48 = vadd.f32 %v9261_v17, %v2617_v25  ;;  %v2618_v26 = vadd.f32 %v2487_v16, %v9262_v53  ;;  %v7446_v20 = vadd.f32 %v9263_v59, %v1500_v35  ;;  %v7449_v25 = vadd.f32 %v9265_v0, %v1501_v47  ;;  %v9267_v16 = vld [vmem:[#allocation89_spill] sm:$0xff] }
 0x1ea   : > { %9260 = vst [vmem:[#allocation87_spill] sm:$0xff] %v7433_v40  ;;  %v3787_v27 = vsel %vm3740_vm5, %v3784_v51, %v3786_v7  ;;  %v7440_v2 = vpop.f32.mrb[119].mxu1  ;;  %v1145_v24 = vpop.permute.xlu1 %1144  ;;  %v2450_v3 = vrot.slane %v7433_v40, 3  ;;  %v9275_v47 = vrot.slane %v7019_v4, 2  ;;  %v9276_v0 = vrot.slane %v7090_v61, 4  ;;  %v9282_v4 = vld [vmem:[#allocation90_spill] sm:$0xff] }
 0x1eb   : > { %3882 = vrot.lane.b32.xlu0 %v3787_v27, %s5638_s14  ;;  %9264 = vst [vmem:[#allocation86_spill] sm:$0xff] %v7446_v20  ;;  %9266 = vst [vmem:[#allocation42_spill] sm:$0xff] %v7449_v25  ;;  %v2861_v17 = vadd.f32 %v9267_v16, %v2618_v26  ;;  %v1259_v53 = vadd.f32 %v1145_v24, %v9268_v9  ;;  %v7454_v51 = vadd.f32 %v7055_v34, %v2860_v48  ;;  %v7463_v59 = vpop.f32.mrb[120].mxu0  ;;  %v9281_v16 = vld [vmem:[#allocation92_spill] sm:$0xff] }
 0x1ec   : > { %v9271_v27 = vrot.slane %v7233_v62, 6  ;;  %v1147_v38 = vpop.permute.xlu0 %1146  ;;  %v7466_v35 = vsel %vm2364_vm3, %v2448_v46, %v2450_v3  ;;  %v9274_v26 = vrot.slane %v7075_v30, 2  ;;  %v9277_v62 = vrot.slane %v7025_v22, 4  ;;  %2532 = vrot.lane.b32.xlu1 %v7179_v45, %s5638_s14  ;;  %v7494_v22 = vpop.f32.mrb[121].mxu0 }
 0x1ed   : > { %9269 = vst [vmem:[#allocation121_spill] sm:$0xff] %v7454_v51  ;;  %9273 = vst [vmem:[#allocation89_spill] sm:$0xff] %v7466_v35  ;;  %v9279_v48 = vrot.slane %v7289_v36, 4  ;;  %v9280_v24 = vrot.slane %v7239_v39, 4  ;;  %v1502_v9 = vadd.f32 %v9281_v16, %v1259_v53  ;;  %v7502_v53 = vpop.f32.mrb[122].mxu0 }
 0x1ee   : > { %v7461_v14 = vsel %vm4079_vm6, %v9271_v27, %v9270_v29  ;;  %v7473_v34 = vsel %vm1327_vm2, %v9275_v47, %v9274_v26  ;;  %v7480_v29 = vsel %vm2703_vm4, %v9277_v62, %v9276_v0  ;;  %v1260_v27 = vadd.f32 %v1147_v38, %v9282_v4  ;;  %v7497_v0 = vpop.f32.mrb[120].mxu1  ;;  %v2489_v62 = vpop.permute.xlu1 %2488  ;;  %v9287_v47 = vld [vmem:[#allocation93_spill] sm:$0xff] }
 0x1ef   : > { %9272 = vst [vmem:[#allocation123_spill] sm:$0xff] %v7461_v14  ;;  %9278 = vst [vmem:[#allocation83_spill] sm:$0xff] %v7480_v29  ;;  %v7487_v46 = vsel %vm2703_vm4, %v9280_v24, %v9279_v48  ;;  %v3788_v26 = vrot.slane %v7463_v59, 5  ;;  %v9284_v48 = vld [vmem:[#allocation7_spill] sm:$0xff]  ;;  %v2452_v45 = vrot.slane %v7497_v0, 3  ;;  %v9288_v14 = vld [vmem:[#allocation45_spill] sm:$0xff] }
 0x1f0   : > { %9283 = vst [vmem:[#allocation92_spill] sm:$0xff] %v7497_v0  ;;  %1158 = vrot.lane.b32.xlu0 %v9284_v48, %s5638_s14  ;;  %v9285_v24 = vld [vmem:[#allocation127_spill] sm:$0xff]  ;;  %v1503_v29 = vadd.f32 %v9287_v47, %v1260_v27  ;;  %v2619_v51 = vadd.f32 %v2489_v62, %v9288_v14  ;;  %v3790_v39 = vrot.slane %v7502_v53, 5  ;;  %v7513_v25 = vpop.f32.mrb[123].mxu0  ;;  %v7515_v48 = vpop.f32.mrb[121].mxu1  ;;  %v9293_v14 = vld [vmem:[#allocation94_spill] sm:$0xff] }
 0x1f1   : > { %v7507_v16 = vadd.f32 %v9285_v24, %v2861_v17  ;;  %9289 = vst [vmem:[#allocation7_spill] sm:$0xff] %v7515_v48  ;;  %v2491_v20 = vpop.permute.xlu0 %2490  ;;  %v3789_v38 = vsel %vm3740_vm5, %v3786_v7, %v3788_v26  ;;  %v7520_v17 = vsel %vm2364_vm3, %v2450_v3, %v2452_v45  ;;  %v9291_v24 = vld [vmem:[#allocation125_spill] sm:$0xff]  ;;  %v7525_v27 = vpop.f32.mrb[122].mxu1  ;;  %v9294_v62 = vld [vmem:[#allocation43_spill] sm:$0xff]  ;;  %v9295_v0 = vld [vmem:[#allocation54_spill] sm:$0xff]  ;;  %v9302_v3 = vrot.slane %v7251_v8, 6 }
 0x1f2   : > { %9290 = vst [vmem:[#allocation127_spill] sm:$0xff] %v7520_v17  ;;  %v7523_v4 = vadd.f32 %v9291_v24, %v1502_v9  ;;  %v2862_v47 = vadd.f32 %v9293_v14, %v2619_v51  ;;  %3884 = vrot.lane.b32.xlu1 %v3789_v38, %s5638_s14  ;;  %v3791_v48 = vsel %vm3740_vm5, %v3788_v26, %v3790_v39  ;;  %v7534_v35 = vpop.f32.mrb[123].mxu1  ;;  %v1149_v24 = vpop.permute.xlu1 %1148  ;;  %v9297_v14 = vld [vmem:[#allocation95_spill] sm:$0xff] }
 0x1f3   : > { %9286 = vst [vmem:[#allocation90_spill] sm:$0xff] %v7507_v16  ;;  %v2620_v16 = vadd.f32 %v2491_v20, %v9294_v62  ;;  %v7532_v7 = vadd.f32 %v9295_v0, %v1503_v29  ;;  %v2454_v20 = vrot.slane %v7525_v27, 3  ;;  %v9298_v62 = vld [vmem:[#allocation91_spill] sm:$0xff]  ;;  %v9301_v0 = vrot.slane %v7318_v42, 6 }
 0x1f4   : > { %9292 = vst [vmem:[#allocation93_spill] sm:$0xff] %v7523_v4  ;;  %3886 = vrot.lane.b32.xlu0 %v3791_v48, %s5638_s14  ;;  %v1261_v26 = vadd.f32 %v1149_v24, %v9298_v62  ;;  %v9299_v4 = vld [vmem:[#allocation129_spill] sm:$0xff]  ;;  %v7553_v48 = vpop.f32.mrb[124].mxu0  ;;  %v9306_v24 = vrot.slane %v7289_v36, 4  ;;  %v9311_v62 = vrot.slane %v7075_v30, 2  ;;  %v9314_v36 = vld [vmem:[#allocation47_spill] sm:$0xff] }
 0x1f5   : > { %9296 = vst [vmem:[#allocation45_spill] sm:$0xff] %v7532_v7  ;;  %v2863_v38 = vadd.f32 %v9297_v14, %v2620_v16  ;;  %v7544_v29 = vadd.f32 %v9299_v4, %v2862_v47  ;;  %v7551_v9 = vsel %vm4079_vm6, %v9302_v3, %v9301_v0  ;;  %v2495_v7 = vpop.permute.xlu0 %2494  ;;  %v7556_v51 = vsel %vm2364_vm3, %v2452_v45, %v2454_v20  ;;  %v7584_v42 = vpop.f32.mrb[125].mxu0 }
 0x1f6   : > { %9303 = vst [vmem:[#allocation94_spill] sm:$0xff] %v7551_v9  ;;  %9304 = vst [vmem:[#allocation43_spill] sm:$0xff] %v7556_v51  ;;  %v9305_v16 = vrot.slane %v7326_v5, 4  ;;  %v9307_v47 = vrot.slane %v7337_v31, 6  ;;  %v9308_v8 = vmov %v9301_v0  ;;  %v9310_v14 = vrot.slane %v7098_v33, 2  ;;  %v9313_v0 = vld [vmem:[#allocation98_spill] sm:$0xff] }
 0x1f7   : > { %9300 = vst [vmem:[#allocation125_spill] sm:$0xff] %v7544_v29  ;;  %v1504_v9 = vadd.f32 %v9313_v0, %v1261_v26  ;;  %v2622_v29 = vadd.f32 %v2495_v7, %v9314_v36  ;;  %v7593_v7 = vpop.f32.mrb[126].mxu0  ;;  %v7597_v0 = vadd.f32 %v7217_v13, %v2863_v38  ;;  %v9323_v36 = vld [vmem:[#allocation96_spill] sm:$0xff] }
 0x1f8   : > { %v7563_v4 = vsel %vm2703_vm4, %v9306_v24, %v9305_v16  ;;  %v7570_v3 = vsel %vm4079_vm6, %v9308_v8, %v9307_v47  ;;  %v7577_v45 = vsel %vm1327_vm2, %v9311_v62, %v9310_v14  ;;  %v9315_v16 = vld [vmem:[#allocation11_spill] sm:$0xff]  ;;  %v3792_v24 = vrot.slane %v7553_v48, 5  ;;  %v7587_v8 = vpop.f32.mrb[124].mxu1  ;;  %v2493_v62 = vpop.permute.xlu1 %2492  ;;  %2534 = vrot.lane.b32.xlu0 %v7212_v37, %s5638_s14 }
 0x1f9   : > { %9309 = vst [vmem:[#allocation54_spill] sm:$0xff] %v7570_v3  ;;  %9312 = vst [vmem:[#allocation95_spill] sm:$0xff] %v7577_v45  ;;  %1160 = vrot.lane.b32.xlu1 %v9315_v16, %s5638_s14  ;;  %v2456_v26 = vrot.slane %v7587_v8, 3  ;;  %v9318_v16 = vld [vmem:[#allocation99_spill] sm:$0xff]  ;;  %v9319_v3 = vld [vmem:[#allocation49_spill] sm:$0xff]  ;;  %v3794_v30 = vrot.slane %v7593_v7, 5  ;;  %v1151_v17 = vpop.permute.xlu0 %1150 }
 0x1fa   : > { %9316 = vst [vmem:[#allocation91_spill] sm:$0xff] %v7587_v8  ;;  %9317 = vst [vmem:[#allocation129_spill] sm:$0xff] %v7597_v0  ;;  %v2865_v47 = vadd.f32 %v9318_v16, %v2622_v29  ;;  %v2621_v45 = vadd.f32 %v2493_v62, %v9319_v3  ;;  %v7603_v14 = vpop.f32.mrb[127].mxu0  ;;  %v7605_v51 = vpop.f32.mrb[125].mxu1  ;;  %v3793_v40 = vsel %vm3740_vm5, %v3790_v39, %v3792_v24  ;;  %v9321_v8 = vld [vmem:[#allocation59_spill] sm:$0xff]  ;;  %v9322_v62 = vld [vmem:[#allocation100_spill] sm:$0xff] }
 0x1fb   : > { %9320 = vst [vmem:[#allocation98_spill] sm:$0xff] %v7605_v51  ;;  %v7610_v13 = vadd.f32 %v9321_v8, %v1504_v9  ;;  %v7613_v38 = vsel %vm2364_vm3, %v2454_v20, %v2456_v26  ;;  %v7615_v29 = vpop.f32.mrb[126].mxu1  ;;  %v1262_v0 = vadd.f32 %v1151_v17, %v9323_v36  ;;  %v3795_v37 = vsel %vm3740_vm5, %v3792_v24, %v3794_v30  ;;  %v7650_v3 = vpop.f32.mrb[128].mxu0 }
 0x1fc   : > { %v2864_v16 = vadd.f32 %v9322_v62, %v2621_v45  ;;  %v7622_v51 = vpop.f32.mrb[127].mxu1  ;;  %3890 = vrot.lane.b32.xlu0 %v3795_v37, %s5638_s14  ;;  %v2458_v20 = vrot.slane %v7615_v29, 3  ;;  %v7629_v8 = vadd.f32 %v7299_v12, %v2865_v47  ;;  %v9325_v45 = vld [vmem:[#allocation101_spill] sm:$0xff]  ;;  %v2497_v17 = vpop.permute.xlu1 %2496  ;;  %v9326_v24 = vrot.slane %v7104_v50, 4  ;;  %v9331_v47 = vld [vmem:[#allocation52_spill] sm:$0xff] }
 0x1fd   : > { %3888 = vrot.lane.b32.xlu1 %v3793_v40, %s5638_s14  ;;  %v1505_v62 = vadd.f32 %v9325_v45, %v1262_v0  ;;  %v9327_v36 = vrot.slane %v7090_v61, 4  ;;  %v9329_v37 = vrot.slane %v7377_v1, 4  ;;  %v9330_v9 = vrot.slane %v7326_v5, 4  ;;  %v2499_v45 = vpop.permute.xlu0 %2498  ;;  %v9340_v1 = vld [vmem:[#allocation104_spill] sm:$0xff] }
 0x1fe   : > { %9324 = vst [vmem:[#allocation47_spill] sm:$0xff] %v7629_v8  ;;  %v7633_v40 = vadd.f32 %v7227_v49, %v2864_v16  ;;  %v2623_v0 = vadd.f32 %v2497_v17, %v9331_v47  ;;  %v7653_v49 = vsel %vm2364_vm3, %v2456_v26, %v2458_v20  ;;  %v9333_v61 = vrot.slane %v7404_v15, 6 }
 0x1ff   : > { %v7640_v39 = vsel %vm2703_vm4, %v9327_v36, %v9326_v24  ;;  %v7647_v12 = vsel %vm2703_vm4, %v9330_v9, %v9329_v37  ;;  %9332 = vst [vmem:[#allocation99_spill] sm:$0xff] %v7653_v49  ;;  %v9334_v16 = vrot.slane %v7337_v31, 6  ;;  %v9336_v5 = vrot.slane %v7412_v32, 4  ;;  %v7674_v31 = vpop.f32.mrb[129].mxu0 }
 0x200   : > { %9328 = vst [vmem:[#allocation11_spill] sm:$0xff] %v7640_v39  ;;  %v9337_v9 = vmov %v9329_v37  ;;  %v9338_v37 = vld [vmem:[#allocation56_spill] sm:$0xff]  ;;  %v3796_v26 = vrot.slane %v7650_v3, 5  ;;  %v9343_v39 = vld [vmem:[#allocation105_spill] sm:$0xff]  ;;  %v1153_v8 = vpop.permute.xlu1 %1152 }
 0x201   : > { %v7660_v24 = vsel %vm4079_vm6, %v9334_v16, %v9333_v61  ;;  %v7667_v36 = vsel %vm2703_vm4, %v9337_v9, %v9336_v5  ;;  %v2624_v47 = vadd.f32 %v2499_v45, %v9338_v37  ;;  %2536 = vrot.lane.b32.xlu1 %v7259_v6, %s5638_s14  ;;  %v7676_v61 = vpop.f32.mrb[128].mxu1  ;;  %v7679_v16 = vadd.f32 %v7311_v54, %v1505_v62  ;;  %v9341_v45 = vld [vmem:[#allocation13_spill] sm:$0xff]  ;;  %v7686_v37 = vpop.f32.mrb[130].mxu0 }
 0x202   : > { %9335 = vst [vmem:[#allocation49_spill] sm:$0xff] %v7660_v24  ;;  %v2866_v24 = vadd.f32 %v9340_v1, %v2623_v0  ;;  %1162 = vrot.lane.b32.xlu0 %v9341_v45, %s5638_s14  ;;  %v2460_v6 = vrot.slane %v7676_v61, 3  ;;  %v7689_v17 = vpop.f32.mrb[129].mxu1  ;;  %v3798_v62 = vrot.slane %v7686_v37, 5  ;;  %v3797_v0 = vsel %vm3740_vm5, %v3794_v30, %v3796_v26  ;;  %v7695_v1 = vpop.f32.mrb[131].mxu0  ;;  %v9344_v9 = vld [vmem:[#allocation97_spill] sm:$0xff] }
 0x203   : > { %9339 = vst [vmem:[#allocation59_spill] sm:$0xff] %v7679_v16  ;;  %9342 = vst [vmem:[#allocation100_spill] sm:$0xff] %v7689_v17  ;;  %v2867_v49 = vadd.f32 %v9343_v39, %v2624_v47  ;;  %v1263_v5 = vadd.f32 %v1153_v8, %v9344_v9  ;;  %v4137_v45 = vrot.slane %v7695_v1, 6  ;;  %v2113_v39 = vpop.f32.mrb[130].mxu1  ;;  %v9345_v30 = vrot.slane %v7423_v19, 6 }
 0x204   : > { %v7700_v16 = vadd.f32 %v7385_v18, %v2866_v24  ;;  %v7703_v17 = vsel %vm2364_vm3, %v2458_v20, %v2460_v6  ;;  %v3799_v47 = vsel %vm3740_vm5, %v3796_v26, %v3798_v62  ;;  %v9346_v8 = vrot.slane %v7404_v15, 6  ;;  %v2114_v6 = vpop.f32.mrb[131].mxu1 }
 0x205   : > { %3892 = vrot.lane.b32.xlu1 %v3797_v0, %s5638_s14  ;;  %v7708_v54 = vadd.f32 %v7397_v21, %v2867_v49  ;;  %v9347_v18 = vrot.slane %v7157_v44, 2  ;;  %v9348_v20 = vrot.slane %v7098_v33, 2  ;;  %v9349_v0 = vld [vmem:[#allocation106_spill] sm:$0xff]  ;;  %v9350_v21 = vld [vmem:[#allocation64_spill] sm:$0xff]  ;;  %v9352_v1 = vrot.slane %v7104_v50, 4 }
 0x206   : > { %v7715_v9 = vsel %vm4079_vm6, %v9346_v8, %v9345_v30  ;;  %v1506_v26 = vadd.f32 %v9349_v0, %v1263_v5  ;;  %3894 = vrot.lane.b32.xlu0 %v3799_v47, %s5638_s14  ;;  %v9351_v49 = vrot.slane %v9350_v21, 4  ;;  %v9354_v39 = vrot.slane %v7463_v59, 4 }
 0x207   : > { %v7722_v24 = vsel %vm1327_vm2, %v9348_v20, %v9347_v18  ;;  %v9355_v30 = vrot.slane %v7412_v32, 4  ;;  %v9356_v8 = vrot.slane %v7494_v22, 6  ;;  %v9357_v5 = vrot.slane %v7423_v19, 6  ;;  %v2501_v18 = vpop.permute.xlu1 %2500  ;;  %v3395_v22 = vpop.f32.mrb[132].mxu0 }
 0x208   : > { %v7731_v15 = vsel %vm2703_vm4, %v9352_v1, %v9351_v49  ;;  %v9359_v50 = vrot.slane %v7502_v53, 4  ;;  %v9360_v20 = vmov %v9354_v39  ;;  %v9361_v32 = vrot.slane %v7513_v25, 6 }
 0x209   : > { %9353 = vst [vmem:[#allocation96_spill] sm:$0xff] %v7731_v15  ;;  %v7738_v33 = vsel %vm2703_vm4, %v9355_v30, %v9354_v39  ;;  %v7745_v47 = vsel %vm4079_vm6, %v9357_v5, %v9356_v8  ;;  %v9362_v0 = vmov %v9356_v8  ;;  %v9364_v19 = vrot.slane %v7181_v41, 2  ;;  %v9370_v5 = vld [vmem:[#allocation58_spill] sm:$0xff] }
 0x20a   : > { %9358 = vst [vmem:[#allocation101_spill] sm:$0xff] %v7745_v47  ;;  %v7752_v6 = vsel %vm2703_vm4, %v9360_v20, %v9359_v50  ;;  %v7759_v49 = vsel %vm4079_vm6, %v9362_v0, %v9361_v32  ;;  %v9365_v1 = vrot.slane %v7157_v44, 2  ;;  %v9367_v30 = vrot.slane %v7188_v58, 4  ;;  %2538 = vrot.lane.b32.xlu0 %v7292_v23, %s5638_s14 }
 0x20b   : > { %9363 = vst [vmem:[#allocation52_spill] sm:$0xff] %v7759_v49  ;;  %v9368_v59 = vrot.slane %v9350_v21, 4  ;;  %v2625_v50 = vadd.f32 %v2501_v18, %v9370_v5  ;;  %v7777_v20 = vadd.f32 %v7473_v34, %v1506_v26  ;;  %v9371_v32 = vrot.slane %v7553_v48, 4  ;;  %v9376_v18 = vld [vmem:[#allocation17_spill] sm:$0xff] }
 0x20c   : > { %v7766_v39 = vsel %vm1327_vm2, %v9365_v1, %v9364_v19  ;;  %v9372_v44 = vrot.slane %v7502_v53, 4  ;;  %v9373_v19 = vrot.slane %v7584_v42, 6  ;;  %v9374_v21 = vrot.slane %v7513_v25, 6  ;;  %1164 = vrot.lane.b32.xlu1 %v9376_v18, %s5638_s14  ;;  %v9383_v18 = vld [vmem:[#allocation50_spill] sm:$0xff]  ;;  %v7823_v42 = vld [vmem:[%s8930_s2] ss:$0 sm:$0xff] }
 0x20d   : > { %9366 = vst [vmem:[#allocation56_spill] sm:$0xff] %v7766_v39  ;;  %v7773_v8 = vsel %vm2703_vm4, %v9368_v59, %v9367_v30  ;;  %v3839_v30 = vpop.permute.xlu0 %3838  ;;  %v3606_v34 = vrot.slane %v3395_v22, 4  ;;  %v3800_v26 = vrot.slane %v3395_v22, 5  ;;  %v3397_v59 = vpop.f32.mrb[133].mxu0  ;;  %v9377_v5 = vrot.slane %v7593_v7, 4  ;;  %v9453_v39 = vld [vmem:[#allocation82_spill] sm:$0xff] }
 0x20e   : > { %9369 = vst [vmem:[#allocation104_spill] sm:$0xff] %v7773_v8  ;;  %v7784_v0 = vsel %vm2703_vm4, %v9372_v44, %v9371_v32  ;;  %v7791_v1 = vsel %vm4079_vm6, %v9374_v21, %v9373_v19  ;;  %v9378_v53 = vmov %v9371_v32  ;;  %v9379_v44 = vrot.slane %v7603_v14, 6  ;;  %v9382_v21 = vld [vmem:[#allocation109_spill] sm:$0xff]  ;;  %v3399_v49 = vpop.f32.mrb[134].mxu0 }
 0x20f   : > { %9375 = vst [vmem:[#allocation13_spill] sm:$0xff] %v7791_v1  ;;  %v7800_v32 = vsel %vm2703_vm4, %v9378_v53, %v9377_v5  ;;  %v9380_v25 = vmov %v9373_v19  ;;  %v2868_v1 = vadd.f32 %v9382_v21, %v2625_v50  ;;  %v3982_v8 = vadd.f32 %v3839_v30, %v9383_v18 }
 0x210   : > { %v7807_v19 = vsel %vm4079_vm6, %v9380_v25, %v9379_v44  ;;  %v4139_v22 = vrot.slane %v3397_v59, 6  ;;  %v9384_v48 = vrot.slane %v7235_v43, 2  ;;  %v9385_v5 = vrot.slane %v7181_v41, 2  ;;  %v3401_v59 = vpop.f32.mrb[135].mxu0  ;;  %v9390_v41 = vld [vmem:[#allocation110_spill] sm:$0xff] }
 0x211   : > { %9381 = vst [vmem:[#allocation105_spill] sm:$0xff] %v7807_v19  ;;  %v3608_v50 = vrot.slane %v3399_v49, 4  ;;  %v3802_v44 = vrot.slane %v3399_v49, 5  ;;  %v3801_v30 = vsel %vm3740_vm5, %v3798_v62, %v3800_v26  ;;  %v9387_v23 = vrot.slane %v7253_v52, 4 }
 0x212   : > { %v7818_v53 = vsel %vm1327_vm2, %v9385_v5, %v9384_v48  ;;  %v9388_v25 = vrot.slane %v7188_v58, 4  ;;  %v4225_v18 = vadd.f32 %v9390_v41, %v3982_v8  ;;  %v4141_v48 = vrot.slane %v3401_v59, 6  ;;  %3896 = vrot.lane.b32.xlu1 %v3801_v30, %s5638_s14 }
 0x213   : > { %9386 = vst [vmem:[#allocation97_spill] sm:$0xff] %v7818_v53  ;;  %v7835_v5 = vadd.f32 %v7487_v46, %v2868_v1  ;;  %v9391_v19 = vrot.slane %v7650_v3, 4  ;;  %v9392_v49 = vrot.slane %v7593_v7, 4  ;;  %v2503_v53 = vpop.permute.xlu0 %2502  ;;  %v3803_v58 = vsel %vm3740_vm5, %v3800_v26, %v3802_v44 }
 0x214   : > { %v7831_v21 = vsel %vm2703_vm4, %v9388_v25, %v9387_v23  ;;  %v9393_v23 = vrot.slane %v7674_v31, 6  ;;  %v9394_v8 = vrot.slane %v7603_v14, 6  ;;  %v9396_v46 = vrot.slane %v7686_v37, 4  ;;  %v9400_v25 = vld [vmem:[#allocation62_spill] sm:$0xff]  ;;  %3898 = vrot.lane.b32.xlu0 %v3803_v58, %s5638_s14 }
 0x215   : > { %9389 = vst [vmem:[#allocation106_spill] sm:$0xff] %v7831_v21  ;;  %v7842_v62 = vsel %vm2703_vm4, %v9392_v49, %v9391_v19  ;;  %v9397_v1 = vmov %v9391_v19  ;;  %v4280_v26 = vadd.f32 %v7823_v42, %v4225_v18  ;;  %v2626_v41 = vadd.f32 %v2503_v53, %v9400_v25 }
 0x216   : > { %v7851_v59 = vsel %vm4079_vm6, %v9394_v8, %v9393_v23  ;;  %v7858_v7 = vsel %vm2703_vm4, %v9397_v1, %v9396_v46  ;;  %v9398_v19 = vmov %v9393_v23  ;;  %v9401_v14 = vrot.slane %v7261_v10, 2  ;;  %v3841_v46 = vpop.permute.xlu1 %3840  ;;  %2540 = vrot.lane.b32.xlu1 %v7345_v56, %s5638_s14  ;;  %v9420_v56 = vld [vmem:[#allocation60_spill] sm:$0xff] }
 0x217   : > { %9395 = vst [vmem:[#allocation64_spill] sm:$0xff] %v7851_v59  ;;  %v7863_v30 = vsel %vm4079_vm6, %v9398_v19, %v4137_v45  ;;  %v9402_v49 = vrot.slane %v7235_v43, 2  ;;  %v9404_v23 = vrot.slane %v7268_v63, 4  ;;  %v9405_v31 = vrot.slane %v7253_v52, 4  ;;  %v9410_v52 = vld [vmem:[#allocation111_spill] sm:$0xff] }
 0x218   : > { %9399 = vst [vmem:[#allocation58_spill] sm:$0xff] %v7863_v30  ;;  %v9407_v18 = vrot.slane %v7686_v37, 4  ;;  %v7888_v58 = vsel %vm4079_vm6, %v4137_v45, %v4139_v22  ;;  %v7891_v43 = vsel %vm2703_vm4, %v3606_v34, %v3608_v50  ;;  %v7894_v1 = vsel %vm4079_vm6, %v4139_v22, %v4141_v48  ;;  %v9419_v37 = vld [vmem:[#allocation112_spill] sm:$0xff]  ;;  %v9421_v59 = vld [vmem:[#allocation19_spill] sm:$0xff] }
 0x219   : > { %v7873_v3 = vsel %vm1327_vm2, %v9402_v49, %v9401_v14  ;;  %v7880_v8 = vsel %vm2703_vm4, %v9405_v31, %v9404_v23  ;;  %9408 = vst [vmem:[#allocation50_spill] sm:$0xff] %v7888_v58  ;;  %9409 = vst [vmem:[#allocation110_spill] sm:$0xff] %v7894_v1  ;;  %v4376_v19 = vmul.f32 0.01, %v4280_v26  ;;  %v2869_v25 = vadd.f32 %v9410_v52, %v2626_v41  ;;  %v9411_v14 = vld [vmem:[#allocation55_spill] sm:$0xff]  ;;  %v3405_v23 = vpop.f32.mrb[136].mxu0  ;;  %v3843_v31 = vpop.permute.xlu0 %3842 }
 0x21a   : > { %9403 = vst [vmem:[#allocation17_spill] sm:$0xff] %v7873_v3  ;;  %9406 = vst [vmem:[#allocation109_spill] sm:$0xff] %v7880_v8  ;;  %v7885_v53 = vsel %vm2703_vm4, %v9407_v18, %v3606_v34  ;;  %v3983_v49 = vadd.f32 %v3841_v46, %v9411_v14  ;;  %v3610_v45 = vrot.slane %v3405_v23, 4  ;;  %v3804_v18 = vrot.slane %v3405_v23, 5  ;;  %v3407_v58 = vpop.f32.mrb[137].mxu0  ;;  %v9415_v41 = vld [vmem:[#allocation76_spill] sm:$0xff]  ;;  %1166 = vrot.lane.b32.xlu0 %v9421_v59, %s5638_s14 }
 0x21b   : > { %v9412_v34 = vrot.slane %v7321_v60, 2  ;;  %v9413_v22 = vrot.slane %v7261_v10, 2  ;;  %v9416_v52 = vrot.slane %v9415_v41, 4  ;;  %v9417_v46 = vrot.slane %v7268_v63, 4  ;;  %v7919_v3 = vpop.f32.mrb[138].mxu0 }
 0x21c   : > { %v4226_v8 = vadd.f32 %v9419_v37, %v3983_v49  ;;  %v3984_v30 = vadd.f32 %v3843_v31, %v9420_v56  ;;  %v4143_v23 = vrot.slane %v3407_v58, 6  ;;  %v7922_v10 = vadd.f32 %v7563_v4, %v2869_v25  ;;  %v9422_v58 = vld [vmem:[#allocation113_spill] sm:$0xff]  ;;  %v9423_v31 = vld [vmem:[#allocation68_spill] sm:$0xff] }
 0x21d   : > { %v7906_v1 = vsel %vm1327_vm2, %v9413_v22, %v9412_v34  ;;  %v7913_v14 = vsel %vm2703_vm4, %v9417_v46, %v9416_v52  ;;  %v2505_v34 = vpop.permute.xlu1 %2504  ;;  %v3612_v22 = vrot.slane %v7919_v3, 4  ;;  %v3806_v63 = vrot.slane %v7919_v3, 5  ;;  %v3411_v46 = vpop.f32.mrb[139].mxu0 }
 0x21e   : > { %9414 = vst [vmem:[#allocation62_spill] sm:$0xff] %v7906_v1  ;;  %9418 = vst [vmem:[#allocation111_spill] sm:$0xff] %v7913_v14  ;;  %v3805_v52 = vsel %vm3740_vm5, %v3802_v44, %v3804_v18  ;;  %vm4328_vm7 = vcmp.ge.f32.partialorder %v4280_v26, 0.0  ;;  %v4281_v49 = vadd.f32 %v7823_v42, %v4226_v8  ;;  %v4227_v37 = vadd.f32 %v9422_v58, %v3984_v30  ;;  %v2507_v14 = vpop.permute.xlu0 %2506  ;;  %v9426_v58 = vld [vmem:[#allocation67_spill] sm:$0xff] }
 0x21f   : > { %v2627_v59 = vadd.f32 %v2505_v34, %v9423_v31  ;;  %v4145_v56 = vrot.slane %v3411_v46, 6  ;;  %3900 = vrot.lane.b32.xlu1 %v3805_v52, %s5638_s14  ;;  %v3807_v4 = vsel %vm3740_vm5, %v3804_v18, %v3806_v63  ;;  %v7933_v25 = vsel %vm2703_vm4, %v3608_v50, %v3610_v45  ;;  %v9425_v34 = vld [vmem:[#allocation114_spill] sm:$0xff] }
 0x220   : > { %v7936_v44 = vsel %vm4079_vm6, %v4141_v48, %v4143_v23  ;;  %v7939_v3 = vsel %vm2703_vm4, %v3610_v45, %v3612_v22  ;;  %v4377_v8 = vmul.f32 0.01, %v4281_v49  ;;  %v4282_v30 = vadd.f32 %v7823_v42, %v4227_v37  ;;  %3902 = vrot.lane.b32.xlu0 %v3807_v4, %s5638_s14  ;;  %v5549_v4 = vld [vmem:[%s5759_s11 + $0xd0] sm:$0xff]  }
 0x221   : > { %9424 = vst [vmem:[#allocation55_spill] sm:$0xff] %v7936_v44  ;;  %v2870_v46 = vadd.f32 %v9425_v34, %v2627_v59  ;;  %v2628_v31 = vadd.f32 %v2507_v14, %v9426_v58  ;;  %v3845_v52 = vpop.permute.xlu1 %3844  ;;  %vm4329_vm8 = vcmp.ge.f32.partialorder %v4281_v49, 0.0  ;;  %v7946_v50 = vsel %vm4079_vm6, %v4143_v23, %v4145_v56  ;;  %v9434_v34 = vld [vmem:[#allocation115_spill] sm:$0xff]  ;;  %v9435_v44 = vld [vmem:[#allocation61_spill] sm:$0xff]  ;;  %5151 = vmatmul.mubr.msk.bf16.gmra.mrb[132].mxu1 %vm525_vm0, %v5549_v4 }
 0x222   : > { %9427 = vst [vmem:[#allocation76_spill] sm:$0xff] %v7946_v50  ;;  %v9428_v48 = vrot.slane %v7347_v57, 2  ;;  %v9429_v18 = vrot.slane %v7321_v60, 2  ;;  %v9431_v37 = vrot.slane %v7354_v55, 4  ;;  %v9432_v59 = vrot.slane %v9415_v41, 4  ;;  %v3415_v50 = vpop.f32.mrb[140].mxu0 }
 0x223   : > { %v2871_v58 = vadd.f32 %v9434_v34, %v2628_v31  ;;  %v3985_v23 = vadd.f32 %v3845_v52, %v9435_v44  ;;  %v7966_v1 = vsel %vm4328_vm7, %v4280_v26, %v4376_v19  ;;  %v7968_v60 = vsel %vm4329_vm8, %v4281_v49, %v4377_v8  ;;  %v3417_v21 = vpop.f32.mrb[141].mxu0  ;;  %v9437_v44 = vld [vmem:[#allocation116_spill] sm:$0xff]  ;;  %v9438_v19 = vld [vmem:[#allocation66_spill] sm:$0xff]  ;;  %v9439_v52 = vld [vmem:[#allocation131_spill] sm:$0xff] }
 0x224   : > { %v7953_v45 = vsel %vm1327_vm2, %v9429_v18, %v9428_v48  ;;  %v7960_v14 = vsel %vm2703_vm4, %v9432_v59, %v9431_v37  ;;  %v3847_v48 = vpop.permute.xlu0 %3846  ;;  %v9436_v18 = vld [vmem:[#allocation23_spill] sm:$0xff]  ;;  %v3808_v41 = vrot.slane %v3415_v50, 5  ;;  %v7975_v31 = vadd.f32 %v7647_v12, %v2870_v46  ;;  %2542 = vrot.lane.b32.xlu0 %v9439_v52, %s5638_s14  ;;  %v7982_v59 = vpop.f32.mrb[142].mxu0 }
 0x225   : > { %9430 = vst [vmem:[#allocation112_spill] sm:$0xff] %v7953_v45  ;;  %9433 = vst [vmem:[#allocation60_spill] sm:$0xff] %v7960_v14  ;;  %1168 = vrot.lane.b32.xlu1 %v9436_v18, %s5638_s14  ;;  %v3614_v45 = vrot.slane %v3415_v50, 4  ;;  %v4228_v26 = vadd.f32 %v9437_v44, %v3985_v23  ;;  %v3986_v49 = vadd.f32 %v3847_v48, %v9438_v19  ;;  %v4147_v8 = vrot.slane %v3417_v21, 6  ;;  %v2509_v18 = vpop.permute.xlu1 %2508  ;;  %v7990_v23 = vpop.f32.mrb[143].mxu0  ;;  %v9440_v48 = vld [vmem:[#allocation117_spill] sm:$0xff] }
 0x226   : > { %v7985_v50 = vadd.f32 %v7667_v36, %v2871_v58  ;;  %v4378_v34 = vmul.f32 0.01, %v4282_v30  ;;  %v3810_v46 = vrot.slane %v7982_v59, 5  ;;  %v3809_v4 = vsel %vm3740_vm5, %v3806_v63, %v3808_v41  ;;  %v9441_v19 = vld [vmem:[#allocation70_spill] sm:$0xff] }
 0x227   : > { %v4283_v21 = vadd.f32 %v7823_v42, %v4228_v26  ;;  %v4229_v44 = vadd.f32 %v9440_v48, %v3986_v49  ;;  %v2629_v52 = vadd.f32 %v2509_v18, %v9441_v19  ;;  %vm4330_vm9 = vcmp.ge.f32.partialorder %v4282_v30, 0.0  ;;  %v9443_v26 = vld [vmem:[#allocation118_spill] sm:$0xff]  ;;  %v9445_v18 = vld [vmem:[#allocation92_spill] sm:$0xff] }
 0x228   : > { %v2511_v36 = vpop.permute.xlu0 %2510  ;;  %v3811_v58 = vsel %vm3740_vm5, %v3808_v41, %v3810_v46  ;;  %v7999_v12 = vsel %vm2703_vm4, %v3612_v22, %v3614_v45  ;;  %v8002_v63 = vsel %vm4079_vm6, %v4145_v56, %v4147_v8  ;;  %v9444_v49 = vld [vmem:[#allocation74_spill] sm:$0xff]  ;;  %v9446_v41 = vrot.slane %v7982_v59, 4 }
 0x229   : > { %3904 = vrot.lane.b32.xlu1 %v3809_v4, %s5638_s14  ;;  %9442 = vst [vmem:[#allocation19_spill] sm:$0xff] %v8002_v63  ;;  %v4379_v14 = vmul.f32 0.01, %v4283_v21  ;;  %v2872_v47 = vadd.f32 %v9443_v26, %v2629_v52  ;;  %v2630_v48 = vadd.f32 %v2511_v36, %v9444_v49  ;;  %3906 = vrot.lane.b32.xlu0 %v3811_v58, %s5638_s14  ;;  %v3849_v37 = vpop.permute.xlu1 %3848  ;;  %vm4331_vm10 = vcmp.ge.f32.partialorder %v4283_v21, 0.0  ;;  %v5550_v52 = vld [vmem:[%s8931_s3] sm:$0xff]   ;;  %v9449_v36 = vld [vmem:[#allocation119_spill] sm:$0xff] }
 0x22a   : > { %v4284_v4 = vadd.f32 %v7823_v42, %v4229_v44  ;;  %v8012_v22 = vsel %vm2703_vm4, %v3614_v45, %v9446_v41  ;;  %v9447_v56 = vrot.slane %v7990_v23, 6  ;;  %v9450_v26 = vld [vmem:[#allocation69_spill] sm:$0xff]  ;;  %v8024_v49 = vpop.f32.mrb[144].mxu0  ;;  %v8027_v19 = vsel %vm4330_vm9, %v4282_v30, %v4378_v34  ;;  %5304 = vmatprep.mubr.msk.bf16.mxu1 %vm525_vm0, %v5550_v52  ;;  %v9457_v34 = vld [vmem:[#allocation72_spill] sm:$0xff] }
 0x22b   : > { %v2873_v58 = vadd.f32 %v9449_v36, %v2630_v48  ;;  %v3987_v44 = vadd.f32 %v3849_v37, %v9450_v26  ;;  %9451 = vst [vmem:[#allocation68_spill] sm:$0xff] %v8027_v19  ;;  %v8029_v45 = vsel %vm4331_vm10, %v4283_v21, %v4379_v14  ;;  %v8040_v48 = vadd.f32 %v7738_v33, %v2872_v47  ;;  %v9456_v30 = vld [vmem:[#allocation85_spill] sm:$0xff]  ;;  %v9461_v26 = vld [vmem:[#allocation80_spill] sm:$0xff] }
 0x22c   : > { %v8017_v63 = vsel %vm4079_vm6, %v4147_v8, %v9447_v56  ;;  %9452 = vst [vmem:[#allocation114_spill] sm:$0xff] %v8029_v45  ;;  %v3851_v41 = vpop.permute.xlu0 %3850  ;;  %v3812_v8 = vrot.slane %v8024_v49, 5  ;;  %v8034_v56 = vpop.f32.mrb[145].mxu0  ;;  %v3618_v37 = vrot.slane %v8024_v49, 4  ;;  %vm4332_vm11 = vcmp.ge.f32.partialorder %v4284_v4, 0.0 }
 0x22d   : > { %9448 = vst [vmem:[#allocation113_spill] sm:$0xff] %v8017_v63  ;;  %2544 = vrot.lane.b32.xlu1 %v9453_v39, %s5638_s14  ;;  %v9454_v63 = vld [vmem:[#allocation7_spill] sm:$0xff]  ;;  %9455 = vst [vmem:[#allocation67_spill] sm:$0xff] %v8040_v48  ;;  %v4230_v14 = vadd.f32 %v9456_v30, %v3987_v44  ;;  %v3988_v21 = vadd.f32 %v3851_v41, %v9457_v34  ;;  %v9458_v39 = vld [vmem:[#allocation25_spill] sm:$0xff]  ;;  %v8047_v36 = vpop.f32.mrb[146].mxu0  ;;  %v8051_v15 = vadd.f32 %v7752_v6, %v2873_v58  ;;  %v2513_v47 = vpop.permute.xlu1 %2512 }
 0x22e   : > { %1170 = vrot.lane.b32.xlu0 %v9458_v39, %s5638_s14  ;;  %v4151_v33 = vrot.slane %v8034_v56, 6  ;;  %v3814_v52 = vrot.slane %v8047_v36, 5  ;;  %v3813_v44 = vsel %vm3740_vm5, %v3810_v46, %v3812_v8  ;;  %v8057_v41 = vpop.f32.mrb[147].mxu0  ;;  %v4380_v30 = vmul.f32 0.01, %v4284_v4  ;;  %v9460_v39 = vld [vmem:[#allocation88_spill] sm:$0xff] }
 0x22f   : > { %9459 = vst [vmem:[#allocation115_spill] sm:$0xff] %v8051_v15  ;;  %v4285_v34 = vadd.f32 %v7823_v42, %v4230_v14  ;;  %v4231_v48 = vadd.f32 %v9460_v39, %v3988_v21  ;;  %v2631_v19 = vadd.f32 %v2513_v47, %v9461_v26  ;;  %v9462_v49 = vrot.slane %v7407_v11, 2  ;;  %v9468_v47 = vld [vmem:[#allocation39_spill] sm:$0xff] }
 0x230   : > { %v2515_v6 = vpop.permute.xlu0 %2514  ;;  %v3815_v58 = vsel %vm3740_vm5, %v3812_v8, %v3814_v52  ;;  %v9463_v56 = vrot.slane %v7347_v57, 2  ;;  %v9465_v15 = vrot.slane %v7425_v28, 4  ;;  %v9466_v14 = vrot.slane %v7354_v55, 4  ;;  %v9469_v39 = vld [vmem:[#allocation79_spill] sm:$0xff]  ;;  %v9475_v8 = vld [vmem:[#allocation73_spill] sm:$0xff] }
 0x231   : > { %3908 = vrot.lane.b32.xlu1 %v3813_v44, %s5638_s14  ;;  %v4381_v26 = vmul.f32 0.01, %v4285_v34  ;;  %v2874_v44 = vadd.f32 %v9468_v47, %v2631_v19  ;;  %v2632_v45 = vadd.f32 %v2515_v6, %v9469_v39  ;;  %v4286_v57 = vadd.f32 %v7823_v42, %v4231_v48  ;;  %v9474_v19 = vld [vmem:[#allocation120_spill] sm:$0xff]  ;;  %v8095_v39 = vpop.f32.mrb[148].mxu0 }
 0x232   : > { %v8069_v46 = vsel %vm1327_vm2, %v9463_v56, %v9462_v49  ;;  %v8076_v21 = vsel %vm2703_vm4, %v9466_v14, %v9465_v15  ;;  %3910 = vrot.lane.b32.xlu0 %v3815_v58, %s5638_s14  ;;  %v3853_v49 = vpop.permute.xlu1 %3852  ;;  %vm4333_vm12 = vcmp.ge.f32.partialorder %v4285_v34, 0.0  ;;  %v9470_v56 = vrot.slane %v7982_v59, 4 }
 0x233   : > { %9464 = vst [vmem:[#allocation61_spill] sm:$0xff] %v8069_v46  ;;  %9467 = vst [vmem:[#allocation23_spill] sm:$0xff] %v8076_v21  ;;  %v9472_v15 = vrot.slane %v7990_v23, 6  ;;  %v2875_v47 = vadd.f32 %v9474_v19, %v2632_v45  ;;  %v3989_v6 = vadd.f32 %v3853_v49, %v9475_v8  ;;  %v8098_v48 = vsel %vm4332_vm11, %v4284_v4, %v4380_v30  ;;  %v9478_v21 = vld [vmem:[#allocation29_spill] sm:$0xff]  ;;  %v9480_v4 = vld [vmem:[#allocation46_spill] sm:$0xff] }
 0x234   : > { %v8086_v55 = vsel %vm2703_vm4, %v9470_v56, %v3618_v37  ;;  %9476 = vst [vmem:[#allocation131_spill] sm:$0xff] %v8098_v48  ;;  %v8100_v58 = vsel %vm4333_vm12, %v4285_v34, %v4381_v26  ;;  %v3855_v56 = vpop.permute.xlu0 %3854  ;;  %v3816_v23 = vrot.slane %v8095_v39, 5  ;;  %v8111_v8 = vadd.f32 %v7784_v0, %v2874_v44  ;;  %v9481_v34 = vld [vmem:[#allocation78_spill] sm:$0xff]  ;;  %v9482_v49 = vld [vmem:[#allocation89_spill] sm:$0xff] }
 0x235   : > { %9471 = vst [vmem:[#allocation116_spill] sm:$0xff] %v8086_v55  ;;  %v8091_v14 = vsel %vm4079_vm6, %v9472_v15, %v4151_v33  ;;  %9477 = vst [vmem:[#allocation117_spill] sm:$0xff] %v8100_v58  ;;  %1172 = vrot.lane.b32.xlu1 %v9478_v21, %s5638_s14  ;;  %v8106_v15 = vpop.f32.mrb[149].mxu0  ;;  %v4232_v30 = vadd.f32 %v9480_v4, %v3989_v6  ;;  %v3990_v26 = vadd.f32 %v3855_v56, %v9481_v34  ;;  %v9484_v6 = vld [vmem:[#allocation91_spill] sm:$0xff]  ;;  %v9485_v56 = vld [vmem:[#allocation98_spill] sm:$0xff] }
 0x236   : > { %9473 = vst [vmem:[#allocation66_spill] sm:$0xff] %v8091_v14  ;;  %9479 = vst [vmem:[#allocation70_spill] sm:$0xff] %v8111_v8  ;;  %2546 = vrot.lane.b32.xlu0 %v9482_v49, %s5638_s14  ;;  %v8117_v19 = vpop.f32.mrb[150].mxu0  ;;  %v8121_v59 = vadd.f32 %v7800_v32, %v2875_v47  ;;  %v2517_v14 = vpop.permute.xlu1 %2516  ;;  %v3817_v0 = vsel %vm3740_vm5, %v3814_v52, %v3816_v23  ;;  %v4382_v46 = vmul.f32 0.01, %v4286_v57  ;;  %v9486_v8 = vld [vmem:[#allocation44_spill] sm:$0xff] }
 0x237   : > { %v3818_v45 = vrot.slane %v8117_v19, 5  ;;  %v8125_v44 = vpop.f32.mrb[151].mxu0  ;;  %v4287_v49 = vadd.f32 %v7823_v42, %v4232_v30  ;;  %v4233_v48 = vadd.f32 %v9486_v8, %v3990_v26  ;;  %v9487_v21 = vld [vmem:[#allocation86_spill] sm:$0xff]  ;;  %vm4334_vm13 = vcmp.ge.f32.partialorder %v4286_v57, 0.0 }
 0x238   : > { %9483 = vst [vmem:[#allocation118_spill] sm:$0xff] %v8121_v59  ;;  %v2633_v58 = vadd.f32 %v2517_v14, %v9487_v21  ;;  %v2519_v32 = vpop.permute.xlu0 %2518  ;;  %v9488_v52 = vrot.slane %v8047_v36, 4  ;;  %v9490_v34 = vrot.slane %v8057_v41, 6  ;;  %v3622_v8 = vrot.slane %v8095_v39, 4  ;;  %v9492_v14 = vld [vmem:[#allocation122_spill] sm:$0xff] }
 0x239   : > { %3912 = vrot.lane.b32.xlu1 %v3817_v0, %s5638_s14  ;;  %v3819_v47 = vsel %vm3740_vm5, %v3816_v23, %v3818_v45  ;;  %v4383_v30 = vmul.f32 0.01, %v4287_v49  ;;  %v9493_v21 = vld [vmem:[#allocation42_spill] sm:$0xff]  ;;  %v4288_v23 = vadd.f32 %v7823_v42, %v4233_v48  ;;  %vm4335_vm14 = vcmp.ge.f32.partialorder %v4287_v49, 0.0 }
 0x23a   : > { %v8137_v59 = vsel %vm2703_vm4, %v3618_v37, %v9488_v52  ;;  %v8142_v4 = vsel %vm4079_vm6, %v4151_v33, %v9490_v34  ;;  %v2876_v26 = vadd.f32 %v9492_v14, %v2633_v58  ;;  %v2634_v0 = vadd.f32 %v2519_v32, %v9493_v21  ;;  %3914 = vrot.lane.b32.xlu0 %v3819_v47, %s5638_s14  ;;  %v3857_v55 = vpop.permute.xlu1 %3856  ;;  %v9494_v37 = vld [vmem:[#allocation87_spill] sm:$0xff]  ;;  %v9501_v32 = vld [vmem:[#allocation124_spill] sm:$0xff]  ;;  %v9502_v14 = vld [vmem:[#allocation81_spill] sm:$0xff]  ;;  %v8165_v21 = vpop.f32.mrb[152].mxu0 }
 0x23b   : > { %9489 = vst [vmem:[#allocation74_spill] sm:$0xff] %v8137_v59  ;;  %9491 = vst [vmem:[#allocation92_spill] sm:$0xff] %v8142_v4  ;;  %v9495_v52 = vrot.slane %v9494_v37, 2  ;;  %v9496_v59 = vrot.slane %v7407_v11, 2  ;;  %v9498_v34 = vrot.slane %v7440_v2, 4  ;;  %v9499_v39 = vrot.slane %v7425_v28, 4 }
 0x23c   : > { %v2877_v47 = vadd.f32 %v9501_v32, %v2634_v0  ;;  %v3991_v48 = vadd.f32 %v3857_v55, %v9502_v14  ;;  %v8168_v4 = vsel %vm4334_vm13, %v4286_v57, %v4382_v46  ;;  %v8170_v11 = vsel %vm4335_vm14, %v4287_v49, %v4383_v30  ;;  %v9505_v46 = vld [vmem:[#allocation51_spill] sm:$0xff]  ;;  %v9506_v49 = vld [vmem:[#allocation84_spill] sm:$0xff] }
 0x23d   : > { %v8154_v33 = vsel %vm1327_vm2, %v9496_v59, %v9495_v52  ;;  %v8161_v58 = vsel %vm2703_vm4, %v9499_v39, %v9498_v34  ;;  %v4155_v59 = vrot.slane %v8106_v15, 6  ;;  %v3859_v52 = vpop.permute.xlu0 %3858  ;;  %v3820_v28 = vrot.slane %v8165_v21, 5  ;;  %v8176_v34 = vpop.f32.mrb[153].mxu0  ;;  %v9507_v15 = vld [vmem:[#allocation31_spill] sm:$0xff] }
 0x23e   : > { %9497 = vst [vmem:[#allocation119_spill] sm:$0xff] %v8154_v33  ;;  %9500 = vst [vmem:[#allocation69_spill] sm:$0xff] %v8161_v58  ;;  %v9503_v33 = vld [vmem:[#allocation127_spill] sm:$0xff]  ;;  %v8181_v0 = vadd.f32 %v7842_v62, %v2876_v26  ;;  %v4234_v57 = vadd.f32 %v9505_v46, %v3991_v48  ;;  %v3992_v30 = vadd.f32 %v3859_v52, %v9506_v49  ;;  %1174 = vrot.lane.b32.xlu0 %v9507_v15, %s5638_s14  ;;  %v8187_v39 = vpop.f32.mrb[154].mxu0  ;;  %v2521_v62 = vpop.permute.xlu1 %2520  ;;  %v9509_v15 = vld [vmem:[#allocation48_spill] sm:$0xff] }
 0x23f   : > { %2548 = vrot.lane.b32.xlu1 %v9503_v33, %s5638_s14  ;;  %v8191_v32 = vadd.f32 %v7858_v7, %v2877_v47  ;;  %v3822_v26 = vrot.slane %v8187_v39, 5  ;;  %v3821_v48 = vsel %vm3740_vm5, %v3818_v45, %v3820_v28  ;;  %v8197_v52 = vpop.f32.mrb[155].mxu0  ;;  %v4384_v46 = vmul.f32 0.01, %v4288_v23  ;;  %v9510_v33 = vld [vmem:[#allocation93_spill] sm:$0xff] }
 0x240   : > { %9504 = vst [vmem:[#allocation82_spill] sm:$0xff] %v8181_v0  ;;  %v4289_v49 = vadd.f32 %v7823_v42, %v4234_v57  ;;  %v4235_v58 = vadd.f32 %v9509_v15, %v3992_v30  ;;  %v2635_v0 = vadd.f32 %v2521_v62, %v9510_v33  ;;  %vm4336_vm15 = vcmp.ge.f32.partialorder %v4288_v23, 0.0  ;;  %v9515_v30 = vld [vmem:[#allocation126_spill] sm:$0xff]  ;;  %v9516_v33 = vld [vmem:[#allocation45_spill] sm:$0xff] }
 0x241   : > { %9508 = vst [vmem:[#allocation7_spill] sm:$0xff] %v8191_v32  ;;  %v2523_v7 = vpop.permute.xlu0 %2522  ;;  %v3823_v47 = vsel %vm3740_vm5, %v3820_v28, %v3822_v26  ;;  %v9511_v55 = vrot.slane %v8047_v36, 4  ;;  %v9513_v45 = vrot.slane %v8057_v41, 6 }
 0x242   : > { %v4385_v57 = vmul.f32 0.01, %v4289_v49  ;;  %v2878_v15 = vadd.f32 %v9515_v30, %v2635_v0  ;;  %v2636_v62 = vadd.f32 %v2523_v7, %v9516_v33  ;;  %3918 = vrot.lane.b32.xlu0 %v3823_v47, %s5638_s14  ;;  %v3861_v36 = vpop.permute.xlu1 %3860  ;;  %vm4337_vm1 = vcmp.ge.f32.partialorder %v4289_v49, 0.0  ;;  %v9521_v0 = vld [vmem:[#allocation57_spill] sm:$0xff]  ;;  %v8231_v33 = vpop.f32.mrb[156].mxu0 }
 0x243   : > { %3916 = vrot.lane.b32.xlu1 %v3821_v48, %s5638_s14  ;;  %v8207_v14 = vsel %vm2703_vm4, %v9511_v55, %v3622_v8  ;;  %v8212_v32 = vsel %vm4079_vm6, %v9513_v45, %v4155_v59  ;;  %v4290_v48 = vadd.f32 %v7823_v42, %v4235_v58  ;;  %v9517_v55 = vrot.slane %v8117_v19, 4  ;;  %v9522_v30 = vld [vmem:[#allocation121_spill] sm:$0xff] }
 0x244   : > { %9512 = vst [vmem:[#allocation85_spill] sm:$0xff] %v8207_v14  ;;  %9514 = vst [vmem:[#allocation72_spill] sm:$0xff] %v8212_v32  ;;  %v9519_v45 = vrot.slane %v8125_v44, 6  ;;  %v2879_v7 = vadd.f32 %v9521_v0, %v2636_v62  ;;  %v3993_v47 = vadd.f32 %v3861_v36, %v9522_v30  ;;  %v8234_v58 = vsel %vm4336_vm15, %v4288_v23, %v4384_v46  ;;  %v9524_v46 = vld [vmem:[#allocation53_spill] sm:$0xff]  ;;  %v9526_v0 = vld [vmem:[#allocation43_spill] sm:$0xff] }
 0x245   : > { %v8222_v41 = vsel %vm2703_vm4, %v3622_v8, %v9517_v55  ;;  %v8236_v28 = vsel %vm4337_vm1, %v4289_v49, %v4385_v57  ;;  %v3626_v14 = vrot.slane %v8165_v21, 4  ;;  %v3863_v8 = vpop.permute.xlu0 %3862  ;;  %v9523_v55 = vld [vmem:[#allocation35_spill] sm:$0xff]  ;;  %v8247_v36 = vadd.f32 %v7885_v53, %v2878_v15  ;;  %v9525_v57 = vld [vmem:[#allocation90_spill] sm:$0xff] }
 0x246   : > { %9518 = vst [vmem:[#allocation25_spill] sm:$0xff] %v8222_v41  ;;  %v8227_v32 = vsel %vm4079_vm6, %v4155_v59, %v9519_v45  ;;  %v3824_v59 = vrot.slane %v8231_v33, 5  ;;  %v8242_v45 = vpop.f32.mrb[157].mxu0  ;;  %v4159_v23 = vrot.slane %v8176_v34, 6  ;;  %v4236_v49 = vadd.f32 %v9524_v46, %v3993_v47  ;;  %2550 = vrot.lane.b32.xlu0 %v9526_v0, %s5638_s14  ;;  %v2525_v53 = vpop.permute.xlu1 %2524 }
 0x247   : > { %9520 = vst [vmem:[#allocation88_spill] sm:$0xff] %v8227_v32  ;;  %1176 = vrot.lane.b32.xlu1 %v9523_v55, %s5638_s14  ;;  %v3994_v21 = vadd.f32 %v3863_v8, %v9525_v57  ;;  %v8254_v30 = vpop.f32.mrb[158].mxu0  ;;  %v8257_v55 = vadd.f32 %v7891_v43, %v2879_v7  ;;  %v3628_v32 = vrot.slane %v8187_v39, 4  ;;  %v4161_v62 = vrot.slane %v8197_v52, 6  ;;  %v9527_v57 = vld [vmem:[#allocation63_spill] sm:$0xff] }
 0x248   : > { %v3826_v15 = vrot.slane %v8254_v30, 5  ;;  %v3825_v34 = vsel %vm3740_vm5, %v3822_v26, %v3824_v59  ;;  %v8263_v47 = vpop.f32.mrb[159].mxu0  ;;  %v4386_v8 = vmul.f32 0.01, %v4290_v48  ;;  %v4291_v46 = vadd.f32 %v7823_v42, %v4236_v49 }
 0x249   : > { %v4237_v0 = vadd.f32 %v9527_v57, %v3994_v21  ;;  %v2637_v41 = vadd.f32 %v2525_v53, %v7610_v13  ;;  %vm4338_vm3 = vcmp.ge.f32.partialorder %v4290_v48, 0.0  ;;  %v9528_v39 = vrot.slane %v9445_v18, 2 }
 0x24a   : > { %v3827_v43 = vsel %vm3740_vm5, %v3824_v59, %v3826_v15  ;;  %v9529_v52 = vrot.slane %v9494_v37, 2  ;;  %v9530_v7 = vrot.slane %v9454_v63, 4  ;;  %v9531_v49 = vrot.slane %v7440_v2, 4  ;;  %v3865_v57 = vpop.permute.xlu1 %3864 }
 0x24b   : > { %3920 = vrot.lane.b32.xlu1 %v3825_v34, %s5638_s14  ;;  %v4387_v13 = vmul.f32 0.01, %v4291_v46  ;;  %v3630_v53 = vrot.slane %v8231_v33, 4  ;;  %v9533_v34 = vld [vmem:[#allocation128_spill] sm:$0xff]  ;;  %3922 = vrot.lane.b32.xlu0 %v3827_v43, %s5638_s14  ;;  %vm4339_vm7 = vcmp.ge.f32.partialorder %v4291_v46, 0.0  ;;  %v4292_v37 = vadd.f32 %v7823_v42, %v4237_v0  ;;  %v3867_v43 = vpop.permute.xlu0 %3866 }
 0x24c   : > { %v8275_v26 = vsel %vm1327_vm2, %v9529_v52, %v9528_v39  ;;  %v8282_v21 = vsel %vm2703_vm4, %v9531_v49, %v9530_v7  ;;  %v2880_v59 = vadd.f32 %v9533_v34, %v2637_v41  ;;  %v9534_v39 = vrot.slane %v8117_v19, 4  ;;  %v9537_v41 = vld [vmem:[#allocation125_spill] sm:$0xff]  ;;  %v8302_v34 = vpop.f32.mrb[160].mxu0 }
 0x24d   : > { %9532 = vst [vmem:[#allocation80_spill] sm:$0xff] %v8282_v21  ;;  %v9535_v2 = vrot.slane %v8125_v44, 6  ;;  %v8299_v33 = vsel %vm2703_vm4, %v3626_v14, %v3628_v32  ;;  %v3995_v49 = vadd.f32 %v3865_v57, %v9537_v41  ;;  %v8305_v0 = vsel %vm4338_vm3, %v4290_v48, %v4386_v8  ;;  %v8317_v57 = vpop.f32.mrb[161].mxu0 }
 0x24e   : > { %v8291_v52 = vsel %vm2703_vm4, %v9534_v39, %v3626_v14  ;;  %v8307_v19 = vsel %vm4339_vm7, %v4291_v46, %v4387_v13  ;;  %v8310_v39 = vadd.f32 %v7933_v25, %v2880_v59  ;;  %v4163_v44 = vrot.slane %v8242_v45, 6  ;;  %v9539_v46 = vld [vmem:[#allocation65_spill] sm:$0xff]  ;;  %v8326_v59 = vpop.f32.mrb[162].mxu0 }
 0x24f   : > { %v8296_v7 = vsel %vm4079_vm6, %v9535_v2, %v4159_v23  ;;  %v9538_v2 = vld [vmem:[#allocation129_spill] sm:$0xff]  ;;  %2552 = vrot.lane.b32.xlu1 %v7613_v38, %s5638_s14  ;;  %v3828_v14 = vrot.slane %v8302_v34, 5  ;;  %v3632_v8 = vrot.slane %v8254_v30, 4  ;;  %v4238_v13 = vadd.f32 %v9539_v46, %v3995_v49  ;;  %v8334_v30 = vpop.f32.mrb[163].mxu0 }
 0x250   : > { %9536 = vst [vmem:[#allocation39_spill] sm:$0xff] %v8296_v7  ;;  %v3996_v7 = vadd.f32 %v3867_v43, %v9538_v2  ;;  %v4165_v25 = vrot.slane %v8263_v47, 6  ;;  %v9540_v45 = vld [vmem:[#allocation37_spill] sm:$0xff]  ;;  %v8329_v38 = vsel %vm4079_vm6, %v4159_v23, %v4161_v62  ;;  %v4388_v41 = vmul.f32 0.01, %v4292_v37  ;;  %v9542_v43 = vld [vmem:[#allocation130_spill] sm:$0xff] }
 0x251   : > { %1178 = vrot.lane.b32.xlu0 %v9540_v45, %s5638_s14  ;;  %9541 = vst [vmem:[#allocation79_spill] sm:$0xff] %v8329_v38  ;;  %v3830_v21 = vrot.slane %v8326_v59, 5  ;;  %v3829_v48 = vsel %vm3740_vm5, %v3826_v15, %v3828_v14  ;;  %v4293_v49 = vadd.f32 %v7823_v42, %v4238_v13  ;;  %v3634_v47 = vrot.slane %v8302_v34, 4 }
 0x252   : > { %v4239_v2 = vadd.f32 %v9542_v43, %v3996_v7  ;;  %v4167_v46 = vrot.slane %v8317_v57, 6  ;;  %vm4340_vm8 = vcmp.ge.f32.partialorder %v4292_v37, 0.0  ;;  %v9543_v7 = vrot.slane %v7525_v27, 2 }
 0x253   : > { %3924 = vrot.lane.b32.xlu1 %v3829_v48, %s5638_s14  ;;  %v3831_v23 = vsel %vm3740_vm5, %v3828_v14, %v3830_v21  ;;  %v9544_v43 = vrot.slane %v9445_v18, 2  ;;  %v9546_v13 = vrot.slane %v7534_v35, 4  ;;  %v9547_v34 = vrot.slane %v9454_v63, 4 }
 0x254   : > { %v4294_v45 = vadd.f32 %v7823_v42, %v4239_v2  ;;  %v4389_v38 = vmul.f32 0.01, %v4293_v49  ;;  %vm4341_vm9 = vcmp.ge.f32.partialorder %v4293_v49, 0.0  ;;  %v8358_v14 = vsel %vm2703_vm4, %v3628_v32, %v3630_v53  ;;  %v3869_v2 = vpop.permute.xlu1 %3868 }
 0x255   : > { %v8347_v15 = vsel %vm1327_vm2, %v9544_v43, %v9543_v7  ;;  %v8354_v57 = vsel %vm2703_vm4, %v9547_v34, %v9546_v13  ;;  %3926 = vrot.lane.b32.xlu0 %v3831_v23, %s5638_s14  ;;  %v8361_v48 = vsel %vm4079_vm6, %v4161_v62, %v4163_v44  ;;  %v3636_v18 = vrot.slane %v8326_v59, 4  ;;  %v3871_v13 = vpop.permute.xlu0 %3870  ;;  %v8373_v34 = vpop.f32.mrb[164].mxu0 }
 0x256   : > { %9545 = vst [vmem:[#allocation120_spill] sm:$0xff] %v8347_v15  ;;  %9548 = vst [vmem:[#allocation73_spill] sm:$0xff] %v8354_v57  ;;  %v8364_v7 = vsel %vm4340_vm8, %v4292_v37, %v4388_v41  ;;  %v8367_v63 = vsel %vm2703_vm4, %v3630_v53, %v3632_v8  ;;  %v8370_v43 = vsel %vm4079_vm6, %v4163_v44, %v4165_v25  ;;  %v9551_v62 = vrot.slane %v9484_v6, 2  ;;  %v9563_v15 = vld [vmem:[#allocation59_spill] sm:$0xff] }
 0x257   : > { %9549 = vst [vmem:[#allocation29_spill] sm:$0xff] %v8361_v48  ;;  %9550 = vst [vmem:[#allocation46_spill] sm:$0xff] %v8370_v43  ;;  %v3997_v23 = vadd.f32 %v3869_v2, %v7633_v40  ;;  %v8375_v32 = vsel %vm4341_vm9, %v4293_v49, %v4389_v38  ;;  %v9552_v59 = vrot.slane %v7525_v27, 2  ;;  %v9554_v53 = vrot.slane %v9485_v56, 4  ;;  %v9557_v2 = vld [vmem:[#allocation47_spill] sm:$0xff]  ;;  %v9558_v38 = vld [vmem:[#allocation40_spill] sm:$0xff] }
 0x258   : > { %v9555_v41 = vrot.slane %v7534_v35, 4  ;;  %v4390_v40 = vmul.f32 0.01, %v4294_v45  ;;  %v3998_v43 = vadd.f32 %v3871_v13, %v9557_v2  ;;  %1180 = vrot.lane.b32.xlu1 %v9558_v38, %s5638_s14  ;;  %v3832_v49 = vrot.slane %v8373_v34, 5  ;;  %v8395_v48 = vpop.f32.mrb[165].mxu0  ;;  %v9561_v2 = vld [vmem:[#allocation71_spill] sm:$0xff] }
 0x259   : > { %v8382_v37 = vsel %vm1327_vm2, %v9552_v59, %v9551_v62  ;;  %v9559_v62 = vld [vmem:[#allocation75_spill] sm:$0xff]  ;;  %v4169_v35 = vrot.slane %v8334_v30, 6  ;;  %vm4342_vm10 = vcmp.ge.f32.partialorder %v4294_v45, 0.0  ;;  %v8406_v13 = vsel %vm2703_vm4, %v3632_v8, %v3634_v47  ;;  %v2527_v57 = vpop.permute.xlu0 %2526 }
 0x25a   : > { %9553 = vst [vmem:[#allocation78_spill] sm:$0xff] %v8382_v37  ;;  %v8389_v44 = vsel %vm2703_vm4, %v9555_v41, %v9554_v53  ;;  %v4240_v59 = vadd.f32 %v9559_v62, %v3997_v23  ;;  %v9560_v53 = vld [vmem:[#allocation99_spill] sm:$0xff]  ;;  %v8403_v41 = vpop.f32.mrb[166].mxu0  ;;  %v4241_v38 = vadd.f32 %v9561_v2, %v3998_v43  ;;  %v3833_v37 = vsel %vm3740_vm5, %v3830_v21, %v3832_v49 }
 0x25b   : > { %9556 = vst [vmem:[#allocation89_spill] sm:$0xff] %v8389_v44  ;;  %2554 = vrot.lane.b32.xlu0 %v9560_v53, %s5638_s14  ;;  %v2266_v44 = vrot.slane %v7676_v61, 2  ;;  %v3834_v27 = vrot.slane %v8403_v41, 5  ;;  %v8412_v23 = vpop.f32.mrb[167].mxu0  ;;  %v3638_v62 = vrot.slane %v8373_v34, 4  ;;  %v4171_v53 = vrot.slane %v8395_v48, 6 }
 0x25c   : > { %v4295_v30 = vadd.f32 %v7823_v42, %v4240_v59  ;;  %v8418_v8 = vsel %vm4079_vm6, %v4165_v25, %v4167_v46  ;;  %v2638_v43 = vadd.f32 %v2527_v57, %v9563_v15  ;;  %3928 = vrot.lane.b32.xlu1 %v3833_v37, %s5638_s14  ;;  %v8423_v21 = vsel %vm4342_vm10, %v4294_v45, %v4390_v40  ;;  %v9567_v34 = vld [vmem:[#allocation77_spill] sm:$0xff]  ;;  %v3873_v40 = vpop.permute.xlu1 %3872 }
 0x25d   : > { %9562 = vst [vmem:[#allocation91_spill] sm:$0xff] %v8418_v8  ;;  %v3835_v61 = vsel %vm3740_vm5, %v3832_v49, %v3834_v27  ;;  %v8426_v2 = vsel %vm2703_vm4, %v3634_v47, %v3636_v18  ;;  %v8430_v48 = vsel %vm4079_vm6, %v4167_v46, %v4169_v35  ;;  %v9565_v25 = vrot.slane %v7615_v29, 2  ;;  %v3485_v8 = vpop.f32.mrb[168].mxu0 }
 0x25e   : > { %v4391_v59 = vmul.f32 0.01, %v4295_v30  ;;  %vm4343_vm11 = vcmp.ge.f32.partialorder %v4295_v30, 0.0  ;;  %9564 = vst [vmem:[#allocation98_spill] sm:$0xff] %v8430_v48  ;;  %v9566_v15 = vrot.slane %v9484_v6, 2  ;;  %v4296_v45 = vadd.f32 %v7823_v42, %v4241_v38  ;;  %v3875_v6 = vpop.permute.xlu0 %3874 }
 0x25f   : > { %3930 = vrot.lane.b32.xlu0 %v3835_v61, %s5638_s14  ;;  %v2881_v37 = vadd.f32 %v9567_v34, %v2638_v43  ;;  %v3640_v47 = vrot.slane %v8403_v41, 4  ;;  %v9568_v49 = vrot.slane %v7622_v51, 4  ;;  %v9569_v61 = vrot.slane %v9485_v56, 4 }
 0x260   : > { %v8437_v57 = vsel %vm1327_vm2, %v9566_v15, %v9565_v25  ;;  %v3999_v48 = vadd.f32 %v3873_v40, %v7700_v16  ;;  %v8450_v25 = vsel %vm4343_vm11, %v4295_v30, %v4391_v59  ;;  %v8453_v38 = vsel %vm2703_vm4, %v3636_v18, %v3638_v62  ;;  %2556 = vrot.lane.b32.xlu1 %v7703_v17, %s5638_s14  ;;  %v3487_v16 = vpop.f32.mrb[169].mxu0  ;;  %v9571_v40 = vld [vmem:[#allocation132_spill] sm:$0xff] }
 0x261   : > { %v8447_v46 = vsel %vm2703_vm4, %v9569_v61, %v9568_v49  ;;  %v8456_v43 = vsel %vm4079_vm6, %v4169_v35, %v4171_v53  ;;  %v4000_v41 = vadd.f32 %v3875_v6, %v7708_v54  ;;  %v4173_v56 = vrot.slane %v8412_v23, 6  ;;  %v9572_v35 = vld [vmem:[#allocation100_spill] sm:$0xff]  ;;  %v3489_v61 = vpop.f32.mrb[170].mxu0  ;;  %v9573_v54 = vld [vmem:[#allocation123_spill] sm:$0xff] }
 0x262   : > { %9570 = vst [vmem:[#allocation44_spill] sm:$0xff] %v8456_v43  ;;  %v3642_v15 = vrot.slane %v3485_v8, 4  ;;  %v3836_v34 = vrot.slane %v3485_v8, 5  ;;  %v4242_v49 = vadd.f32 %v9571_v40, %v3999_v48  ;;  %v8464_v30 = vadd.f32 %v7939_v3, %v2881_v37  ;;  %v2529_v43 = vpop.permute.xlu1 %2528  ;;  %v3490_v3 = vpop.f32.mrb[171].mxu0 }
 0x263   : > { %v2799_v59 = vrot.slane %v9572_v35, 4  ;;  %v4243_v6 = vadd.f32 %v9573_v54, %v4000_v41  ;;  %v9574_v23 = vrot.slane %v7615_v29, 2  ;;  %v8477_v48 = vsel %vm2703_vm4, %v3638_v62, %v3640_v47  ;;  %v1155_v61 = vpop.permute.xlu0 %1154  ;;  %v9576_v29 = vld [vmem:[#allocation102_spill] sm:$0xff] }
 0x264   : > { %v3837_v17 = vsel %vm3740_vm5, %v3834_v27, %v3836_v34  ;;  %v4392_v37 = vmul.f32 0.01, %v4296_v45  ;;  %v4297_v40 = vadd.f32 %v7823_v42, %v4242_v49  ;;  %v2639_v35 = vadd.f32 %v2529_v43, %v7777_v20  ;;  %v9577_v49 = vld [vmem:[#allocation83_spill] sm:$0xff] }
 0x265   : > { %v8474_v8 = vsel %vm1327_vm2, %v9574_v23, %v2266_v44  ;;  %v9575_v41 = vrot.slane %v7622_v51, 4  ;;  %vm4344_vm5 = vcmp.ge.f32.partialorder %v4296_v45, 0.0  ;;  %v1264_v27 = vadd.f32 %v1155_v61, %v9576_v29  ;;  %3932 = vrot.lane.b32.xlu1 %v3837_v17, %s5638_s14  ;;  %v9579_v43 = vld [vmem:[#allocation107_spill] sm:$0xff] }
 0x266   : > { %v8489_v44 = vsel %vm4079_vm6, %v4171_v53, %v4173_v56  ;;  %v4175_v62 = vrot.slane %v3487_v16, 6  ;;  %vm4345_vm2 = vcmp.ge.f32.partialorder %v4297_v40, 0.0  ;;  %v4393_v34 = vmul.f32 0.01, %v4297_v40  ;;  %v3877_v3 = vpop.permute.xlu1 %3876 }
 0x267   : > { %v8484_v54 = vsel %vm2703_vm4, %v9575_v41, %v2799_v59  ;;  %v2882_v23 = vadd.f32 %v9577_v49, %v2639_v35  ;;  %v8493_v20 = vsel %vm2703_vm4, %v3640_v47, %v3642_v15  ;;  %v4298_v51 = vadd.f32 %v7823_v42, %v4243_v6  ;;  %v3879_v53 = vpop.permute.xlu0 %3878  ;;  %v9580_v15 = vld [vmem:[#allocation95_spill] sm:$0xff]  ;;  %v9581_v6 = vld [vmem:[#allocation94_spill] sm:$0xff] }
 0x268   : > { %9578 = vst [vmem:[#allocation86_spill] sm:$0xff] %v8493_v20  ;;  %v1507_v59 = vadd.f32 %v9579_v43, %v1264_v27  ;;  %v8498_v61 = vsel %vm4079_vm6, %v4173_v56, %v4175_v62  ;;  %v4001_v17 = vadd.f32 %v3877_v3, %v7835_v5  ;;  %v4440_v41 = vsel %vm4344_vm5, %v4296_v45, %v4392_v37  ;;  %v9582_v43 = vld [vmem:[#allocation54_spill] sm:$0xff]  ;;  %v9586_v3 = vld [vmem:[#allocation11_spill] sm:$0xff] }
 0x269   : > { %v4441_v16 = vsel %vm4345_vm2, %v4297_v40, %v4393_v34  ;;  %v8502_v29 = vadd.f32 %v7999_v12, %v2882_v23  ;;  %v4002_v35 = vadd.f32 %v3879_v53, %v7922_v10  ;;  %v4394_v27 = vmul.f32 0.01, %v4298_v51  ;;  %v9584_v10 = vld [vmem:[#allocation103_spill] sm:$0xff]  ;;  %v9585_v23 = vld [vmem:[#allocation108_spill] sm:$0xff] }
 0x26a   : > { %v4488_v47 = vpack.c.bf16 %v4441_v16, %v4440_v41  ;;  %v2350_v49 = vadd.f32 %v9580_v15, %v1507_v59  ;;  %v4244_v18 = vadd.f32 %v9581_v6, %v4001_v17  ;;  %v1157_v56 = vpop.permute.xlu1 %1156  ;;  %v9583_v5 = vpack.c.bf16 %v7968_v60, %v7966_v1  ;;  %v9587_v6 = vld [vmem:[#allocation49_spill] sm:$0xff] }
 0x26b   : > { %v4245_v20 = vadd.f32 %v9582_v43, %v4002_v35  ;;  %vm4346_vm4 = vcmp.ge.f32.partialorder %v4298_v51, 0.0  ;;  %v1265_v37 = vadd.f32 %v1157_v56, %v9584_v10  ;;  %v2531_v40 = vpop.permute.xlu0 %2530 }
 0x26c   : > { %5356 = vmatprep.subr.msk.bf16.mxu1 %vm525_vm0, %v4488_v47  ;;  %v4585_v45 = vsel %vm525_vm0, %v9583_v5, 0  ;;  %v4299_v12 = vadd.f32 %v7823_v42, %v4244_v18  ;;  %v2640_v62 = vadd.f32 %v2531_v40, %v2350_v49  ;;  %v4442_v41 = vsel %vm4346_vm4, %v4298_v51, %v4394_v27  ;;  %v9588_v51 = vld [vmem:[#allocation114_spill] sm:$0xff] }
 0x26d   : > { %5289 = vmatpush3.bf16.xpose.msra.mxu1 %v4585_v45  ;;  %v1508_v59 = vadd.f32 %v9585_v23, %v1265_v37  ;;  %v4300_v1 = vadd.f32 %v7823_v42, %v4245_v20  ;;  %v5554_v37 = vld [vmem:[%s5759_s11 + $0xd8] sm:$0xff]   ;;  %v4505_v40 = vld [vmem:[%s8932_s4 + $0x8] sm:$0xff]  ;;  %s274_s11 = sand.u32 1, %s5619_s22  }
 0x26e   : > { %vm4347_vm6 = vcmp.ge.f32.partialorder %v4299_v12, 0.0  ;;  %v4395_v34 = vmul.f32 0.01, %v4299_v12  ;;  %v2883_v17 = vadd.f32 %v9586_v3, %v2640_v62  ;;  %v3881_v53 = vpop.permute.xlu1 %3880  ;;  %4519 = vperm.xlu1 %5436, %v4505_v40   ;;  %v9593_v3 = vld [vmem:[#allocation8_spill] sm:$0xff]  ;;  %5271 = vmatmul.mubr.msk.bf16.gmra.mrb[172].mxu0 %vm525_vm0, %v5554_v37  ;;  %v4509_v40 = vld [vmem:[%s8932_s4 + $0x28] sm:$0xff]  ;;  %s5372_s17 = smul.u32 192, %s274_s11 }
 0x26f   : > { %v4003_v60 = vadd.f32 %v3881_v53, %v7975_v31  ;;  %v3883_v16 = vpop.permute.xlu0 %3882  ;;  %v2351_v18 = vadd.f32 %v7722_v24, %v1508_v59  ;;  %v9589_v31 = vld [vmem:[#allocation68_spill] sm:$0xff]  ;;  %v4396_v24 = vmul.f32 0.01, %v4300_v1  ;;  %vm4348_vm12 = vcmp.ge.f32.partialorder %v4300_v1, 0.0  ;;  %s8882_s16 = scalar_lea.sflag [#allocation3], %s274_s11 }
 0x270   : > { %v4443_v35 = vsel %vm4347_vm6, %v4299_v12, %v4395_v34  ;;  %v4004_v47 = vadd.f32 %v3883_v16, %v7985_v50  ;;  %v8522_v49 = vadd.f32 %v8012_v22, %v2883_v17  ;;  %v9590_v27 = vpack.c.bf16 %v9588_v51, %v9589_v31  ;;  %v9591_v22 = vld [vmem:[#allocation5_spill] sm:$0xff]  ;;  %v9592_v34 = vld [vmem:[#allocation96_spill] sm:$0xff]  ;;  %v9594_v16 = vld [vmem:[#allocation67_spill] sm:$0xff]  ;;  %s8821_s8 = scalar_lea.vmem [#allocation2], %s5372_s17 }
 0x271   : > { %v4489_v15 = vpack.c.bf16 %v4443_v35, %v4442_v41  ;;  %v4246_v43 = vadd.f32 %v9587_v6, %v4003_v60  ;;  %v4507_v41 = vld [vmem:[%s8932_s4 + $0x18] sm:$0xff]  ;;  %v4506_v60 = vld [vmem:[%s8932_s4 + $0x10] sm:$0xff]  ;;  %s4875_s13 = sshll.u32 %s8821_s8, 4  ;;  %s8869_s13 = int_to_ptr.vmem [resolvable:$true] %s4875_s13 }
 0x272   : > { %v4247_v56 = vadd.f32 %v7715_v9, %v4004_v47  ;;  %v2533_v20 = vpop.permute.xlu1 %2532  ;;  %v4588_v5 = vsel %vm525_vm0, %v9590_v27, 0  ;;  %v4504_v9 = vld [vmem:[%s8932_s4] sm:$0xff]  ;;  %v4444_v47 = vsel %vm4348_vm12, %v4300_v1, %v4396_v24  ;;  %v9595_v6 = vld [vmem:[#allocation116_spill] sm:$0xff]  ;;  %4524 = vperm.xlu1 %5436, %v4506_v60   ;;  %v9601_v24 = vld [vmem:[#allocation131_spill] sm:$0xff]  ;;  %s5557_s18 = scalar_lea.vmem %s8869_s13, 3072  ;;  %p5564_p1 = scmp.lt.s32.totalorder %s8869_s13, %s5562_s20 }
 0x273   : > { %5357 = vmatprep.subr.msk.bf16.mxu1 %vm525_vm0, %v4489_v15  ;;  %v4301_v45 = vadd.f32 %v7823_v42, %v4246_v43  ;;  %v2641_v50 = vadd.f32 %v2533_v20, %v2351_v18  ;;  %v1159_v12 = vpop.permute.xlu0 %1158  ;;  %4514 = vperm.xlu0 %5435, %v4504_v9   ;;  %v9597_v31 = vld [vmem:[#allocation56_spill] sm:$0xff]  ;;  %v9600_v1 = vld [vmem:[#allocation117_spill] sm:$0xff]  ;;  %p5558_p12 = scmp.ne.s32.totalorder %s8869_s13, %s5557_s18  ;;  %p5565_p2 = scmp.lt.s32.totalorder %s5563_s27, %s5557_s18 }
 0x274   : > { %v1266_v10 = vadd.f32 %v1159_v12, %v9591_v22  ;;  %v4302_v59 = vadd.f32 %v7823_v42, %v4247_v56  ;;  %v9596_v56 = vld [vmem:[#allocation115_spill] sm:$0xff]  ;;  %v9599_v22 = vld [vmem:[#allocation52_spill] sm:$0xff] }
 0x275   : > { %5291 = vmatpush3.bf16.xpose.msra.mxu1 %v4588_v5  ;;  %vm4349_vm13 = vcmp.ge.f32.partialorder %v4301_v45, 0.0  ;;  %v4397_v62 = vmul.f32 0.01, %v4301_v45  ;;  %v2884_v23 = vadd.f32 %v9592_v34, %v2641_v50  ;;  %v9598_v5 = vld [vmem:[#allocation101_spill] sm:$0xff]  ;;  %v9604_v60 = vld [vmem:[#allocation12_spill] sm:$0xff]  ;;  %p5559_p13 = pnand %p5558_p12, %p5717_p4  ;;  %p5566_p3 = por %p5565_p2, %p5564_p1 }
 0x276   : > { %v1509_v17 = vadd.f32 %v9593_v3, %v1266_v10  ;;  %v3885_v53 = vpop.permute.xlu1 %3884  ;;  %v4398_v12 = vmul.f32 0.01, %v4302_v59  ;;  %vm4350_vm14 = vcmp.ge.f32.partialorder %v4302_v59, 0.0 }
 0x277   : > { %v4005_v35 = vadd.f32 %v3885_v53, %v9594_v16  ;;  %v3887_v18 = vpop.permute.xlu0 %3886  ;;  %v4445_v15 = vsel %vm4349_vm13, %v4301_v45, %v4397_v62  ;;  %v8553_v43 = vadd.f32 %v9595_v6, %v2884_v23  ;;  %4529 = vperm.xlu0 %5435, %v4507_v41   ;;  %v9602_v45 = vpack.c.bf16 %v9600_v1, %v9601_v24  ;;  %v4508_v62 = vld [vmem:[%s8932_s4 + $0x20] sm:$0xff]  ;;  %v9603_v23 = vld [vmem:[#allocation6_spill] sm:$0xff]  ;;  %v4511_v6 = vld [vmem:[%s8932_s4 + $0x38] sm:$0xff]  ;;  %p5560_p0 = pneg %p5559_p13 }
 0x278   : > { %v4006_v20 = vadd.f32 %v3887_v18, %v9596_v56  ;;  %v4490_v51 = vpack.c.bf16 %v4445_v15, %v4444_v47  ;;  %v2352_v27 = vadd.f32 %v9597_v31, %v1509_v17  ;;  %4534 = vperm.xlu1 %5436, %v4508_v62   ;;  %v4446_v15 = vsel %vm4350_vm14, %v4302_v59, %v4398_v12  ;;  %v8583_v56 = vld [vmem:[%s8930_s2] ss:$0 sm:$0xff]  ;;  %v9608_v12 = vld [vmem:[#allocation118_spill] sm:$0xff] }
 0x279   : > { %v4248_v50 = vadd.f32 %v9598_v5, %v4005_v35  ;;  %v4591_v9 = vsel %vm525_vm0, %v9602_v45, 0  ;;  %v9605_v35 = vld [vmem:[#allocation104_spill] sm:$0xff]  ;;  %v9607_v59 = vld [vmem:[#allocation97_spill] sm:$0xff]  ;;  %v9609_v1 = vld [vmem:[#allocation74_spill] sm:$0xff]  ;;  %p5567_p5 = pnand %p5566_p3, %p5560_p0 }
 0x27a   : > { %v4249_v10 = vadd.f32 %v9599_v22, %v4006_v20  ;;  %5358 = vmatprep.subr.msk.bf16.mxu1 %vm525_vm0, %v4490_v51  ;;  %v1161_v37 = vpop.permute.xlu1 %1160  ;;  %v9606_v51 = vld [vmem:[#allocation70_spill] sm:$0xff]  ;;  %v9610_v45 = vld [vmem:[#allocation13_spill] sm:$0xff] }
 0x27b   : > { %v4303_v34 = vadd.f32 %v7823_v42, %v4248_v50  ;;  %v1267_v3 = vadd.f32 %v1161_v37, %v9603_v23  ;;  %v2535_v17 = vpop.permute.xlu0 %2534  ;;  %4539 = vperm.xlu0 %5435, %v4509_v40   ;;  %v4510_v42 = vld [vmem:[%s8932_s4 + $0x30] sm:$0xff]  ;;  %v9611_v40 = vld [vmem:[#allocation105_spill] sm:$0xff] }
 0x27c   : > { %v2642_v53 = vadd.f32 %v2535_v17, %v2352_v27  ;;  %v4304_v20 = vadd.f32 %v8583_v56, %v4249_v10  ;;  %4544 = vperm.xlu1 %5436, %v4510_v42  }
 0x27d   : > { %5293 = vmatpush3.bf16.xpose.msra.mxu1 %v4591_v9  ;;  %vm4351_vm15 = vcmp.ge.f32.partialorder %v4303_v34, 0.0  ;;  %v4399_v41 = vmul.f32 0.01, %v4303_v34  ;;  %v1510_v16 = vadd.f32 %v9604_v60, %v1267_v3  ;;  %v9613_v60 = vld [vmem:[#allocation9_spill] sm:$0xff] }
 0x27e   : > { %v2885_v18 = vadd.f32 %v9605_v35, %v2642_v53  ;;  %v3889_v47 = vpop.permute.xlu1 %3888  ;;  %v4400_v3 = vmul.f32 0.01, %v4304_v20  ;;  %vm4352_vm1 = vcmp.ge.f32.partialorder %v4304_v20, 0.0 }
 0x27f   : > { %v4007_v31 = vadd.f32 %v3889_v47, %v9606_v51  ;;  %v3891_v27 = vpop.permute.xlu0 %3890  ;;  %v4447_v5 = vsel %vm4351_vm15, %v4303_v34, %v4399_v41  ;;  %v2353_v50 = vadd.f32 %v9607_v59, %v1510_v16  ;;  %4549 = vperm.xlu0 %5435, %v4511_v6   ;;  %v9612_v34 = vpack.c.bf16 %v8170_v11, %v8168_v4  ;;  %v9615_v6 = vld [vmem:[#allocation14_spill] sm:$0xff]  ;;  %v9617_v59 = vld [vmem:[#allocation85_spill] sm:$0xff] }
 0x280   : > { %v4008_v22 = vadd.f32 %v3891_v27, %v9608_v12  ;;  %v4491_v37 = vpack.c.bf16 %v4447_v5, %v4446_v15  ;;  %v8590_v24 = vadd.f32 %v9609_v1, %v2885_v18  ;;  %v9614_v18 = vld [vmem:[#allocation106_spill] sm:$0xff]  ;;  %v4448_v27 = vsel %vm4352_vm1, %v4304_v20, %v4400_v3  ;;  %v9618_v12 = vld [vmem:[#allocation7_spill] sm:$0xff]  ;;  %v9619_v1 = vld [vmem:[#allocation17_spill] sm:$0xff] }
 0x281   : > { %v4250_v9 = vadd.f32 %v9610_v45, %v4007_v31  ;;  %v4594_v23 = vsel %vm525_vm0, %v9612_v34, 0  ;;  %v9616_v11 = vld [vmem:[#allocation82_spill] sm:$0xff]  ;;  %v9622_v20 = vpack.c.bf16 %v8236_v28, %v8234_v58 }
 0x282   : > { %v4251_v62 = vadd.f32 %v9611_v40, %v4008_v22  ;;  %5359 = vmatprep.subr.msk.bf16.mxu1 %vm525_vm0, %v4491_v37  ;;  %v2537_v10 = vpop.permute.xlu1 %2536 }
 0x283   : > { %v4305_v17 = vadd.f32 %v8583_v56, %v4250_v9  ;;  %v2643_v53 = vadd.f32 %v2537_v10, %v2353_v50  ;;  %v1163_v41 = vpop.permute.xlu0 %1162  ;;  %v9620_v9 = vld [vmem:[#allocation64_spill] sm:$0xff]  ;;  %v4597_v3 = vsel %vm525_vm0, %v9622_v20, 0  ;;  %v9631_v20 = vld [vmem:[#allocation15_spill] sm:$0xff] }
 0x284   : > { %v1268_v16 = vadd.f32 %v1163_v41, %v9613_v60  ;;  %v4306_v15 = vadd.f32 %v8583_v56, %v4251_v62  ;;  %v9621_v62 = vld [vmem:[#allocation58_spill] sm:$0xff] }
 0x285   : > { %5295 = vmatpush3.bf16.xpose.msra.mxu1 %v4594_v23  ;;  %vm4353_vm3 = vcmp.ge.f32.partialorder %v4305_v17, 0.0  ;;  %v4401_v35 = vmul.f32 0.01, %v4305_v17  ;;  %v2886_v47 = vadd.f32 %v9614_v18, %v2643_v53  ;;  %v9623_v53 = vld [vmem:[#allocation10_spill] sm:$0xff] }
 0x286   : > { %v1511_v42 = vadd.f32 %v9615_v6, %v1268_v16  ;;  %v3893_v4 = vpop.permute.xlu1 %3892  ;;  %v4402_v10 = vmul.f32 0.01, %v4306_v15  ;;  %vm4354_vm7 = vcmp.ge.f32.partialorder %v4306_v15, 0.0  ;;  %v9624_v18 = vld [vmem:[#allocation18_spill] sm:$0xff]  ;;  %v9625_v6 = vld [vmem:[#allocation109_spill] sm:$0xff] }
 0x287   : > { %v4009_v51 = vadd.f32 %v3893_v4, %v9616_v11  ;;  %v3895_v31 = vpop.permute.xlu0 %3894  ;;  %v4449_v5 = vsel %vm4353_vm3, %v4305_v17, %v4401_v35  ;;  %v8606_v50 = vadd.f32 %v9617_v59, %v2886_v47 }
 0x288   : > { %v4010_v22 = vadd.f32 %v3895_v31, %v9618_v12  ;;  %v4492_v37 = vpack.c.bf16 %v4449_v5, %v4448_v27  ;;  %v2354_v45 = vadd.f32 %v9619_v1, %v1511_v42  ;;  %v4450_v11 = vsel %vm4354_vm7, %v4306_v15, %v4402_v10  ;;  %v9626_v27 = vld [vmem:[#allocation62_spill] sm:$0xff] }
 0x289   : > { %v4252_v40 = vadd.f32 %v9620_v9, %v4009_v51  ;;  %v9628_v1 = vld [vmem:[#allocation50_spill] sm:$0xff] }
 0x28a   : > { %v4253_v34 = vadd.f32 %v9621_v62, %v4010_v22  ;;  %5360 = vmatprep.subr.msk.bf16.mxu1 %vm525_vm0, %v4492_v37  ;;  %v1165_v23 = vpop.permute.xlu1 %1164  ;;  %v9627_v22 = vld [vmem:[#allocation25_spill] sm:$0xff]  ;;  %v9629_v9 = vld [vmem:[#allocation110_spill] sm:$0xff] }
 0x28b   : > { %v4307_v17 = vadd.f32 %v8583_v56, %v4252_v40  ;;  %v1269_v41 = vadd.f32 %v1165_v23, %v9623_v53  ;;  %v2539_v60 = vpop.permute.xlu0 %2538  ;;  %v9632_v53 = vld [vmem:[#allocation111_spill] sm:$0xff] }
 0x28c   : > { %v2644_v16 = vadd.f32 %v2539_v60, %v2354_v45  ;;  %v4308_v28 = vadd.f32 %v8583_v56, %v4253_v34 }
 0x28d   : > { %5297 = vmatpush3.bf16.xpose.msra.mxu1 %v4597_v3  ;;  %vm4355_vm8 = vcmp.ge.f32.partialorder %v4307_v17, 0.0  ;;  %v4403_v35 = vmul.f32 0.01, %v4307_v17  ;;  %v1512_v47 = vadd.f32 %v9624_v18, %v1269_v41 }
 0x28e   : > { %v2887_v42 = vadd.f32 %v9625_v6, %v2644_v16  ;;  %v3897_v4 = vpop.permute.xlu1 %3896  ;;  %v4404_v62 = vmul.f32 0.01, %v4308_v28  ;;  %vm4356_vm9 = vcmp.ge.f32.partialorder %v4308_v28, 0.0  ;;  %v9633_v16 = vld [vmem:[#allocation20_spill] sm:$0xff] }
 0x28f   : > { %v4011_v58 = vadd.f32 %v3897_v4, %v8247_v36  ;;  %v3899_v51 = vpop.permute.xlu0 %3898  ;;  %v4451_v31 = vsel %vm4355_vm8, %v4307_v17, %v4403_v35  ;;  %v2355_v5 = vadd.f32 %v9626_v27, %v1512_v47  ;;  %v9630_v36 = vpack.c.bf16 %v8307_v19, %v8305_v0 }
 0x290   : > { %v4012_v59 = vadd.f32 %v3899_v51, %v8257_v55  ;;  %v4493_v12 = vpack.c.bf16 %v4451_v31, %v4450_v11  ;;  %v8626_v37 = vadd.f32 %v9627_v22, %v2887_v42  ;;  %v4452_v47 = vsel %vm4356_vm9, %v4308_v28, %v4404_v62  ;;  %v9635_v31 = vld [vmem:[#allocation55_spill] sm:$0xff] }
 0x291   : > { %v4254_v45 = vadd.f32 %v9628_v1, %v4011_v58  ;;  %v4600_v10 = vsel %vm525_vm0, %v9630_v36, 0  ;;  %v9634_v58 = vld [vmem:[#allocation112_spill] sm:$0xff] }
 0x292   : > { %v4255_v40 = vadd.f32 %v9629_v9, %v4012_v59  ;;  %5361 = vmatprep.subr.msk.bf16.mxu1 %vm525_vm0, %v4493_v12  ;;  %v2541_v15 = vpop.permute.xlu1 %2540  ;;  %v9636_v59 = vld [vmem:[#allocation76_spill] sm:$0xff] }
 0x293   : > { %v4309_v34 = vadd.f32 %v8583_v56, %v4254_v45  ;;  %v2645_v55 = vadd.f32 %v2541_v15, %v2355_v5  ;;  %v1167_v23 = vpop.permute.xlu0 %1166  ;;  %v9639_v15 = vld [vmem:[#allocation24_spill] sm:$0xff] }
 0x294   : > { %v1270_v3 = vadd.f32 %v1167_v23, %v9631_v20  ;;  %v4310_v60 = vadd.f32 %v8583_v56, %v4255_v40 }
 0x295   : > { %5299 = vmatpush3.bf16.xpose.msra.mxu1 %v4600_v10  ;;  %vm4357_vm10 = vcmp.ge.f32.partialorder %v4309_v34, 0.0  ;;  %v4405_v17 = vmul.f32 0.01, %v4309_v34  ;;  %v2888_v41 = vadd.f32 %v9632_v53, %v2645_v55  ;;  %v9640_v10 = vld [vmem:[#allocation60_spill] sm:$0xff] }
 0x296   : > { %v1513_v35 = vadd.f32 %v9633_v16, %v1270_v3  ;;  %v3901_v0 = vpop.permute.xlu1 %3900  ;;  %v4406_v5 = vmul.f32 0.01, %v4310_v60  ;;  %vm4358_vm11 = vcmp.ge.f32.partialorder %v4310_v60, 0.0  ;;  %v9641_v3 = vld [vmem:[#allocation61_spill] sm:$0xff] }
 0x297   : > { %v4013_v19 = vadd.f32 %v3901_v0, %v8310_v39  ;;  %v3903_v18 = vpop.permute.xlu0 %3902  ;;  %v4453_v6 = vsel %vm4357_vm10, %v4309_v34, %v4405_v17  ;;  %v8642_v42 = vadd.f32 %v8291_v52, %v2888_v41  ;;  %v9637_v39 = vpack.c.bf16 %v8375_v32, %v8364_v7 }
 0x298   : > { %v4014_v4 = vadd.f32 %v3903_v18, %v8464_v30  ;;  %v4494_v11 = vpack.c.bf16 %v4453_v6, %v4452_v47  ;;  %v2356_v51 = vadd.f32 %v9634_v58, %v1513_v35  ;;  %v9638_v30 = vld [vmem:[#allocation16_spill] sm:$0xff]  ;;  %v4454_v55 = vsel %vm4358_vm11, %v4310_v60, %v4406_v5  ;;  %v9642_v35 = vld [vmem:[#allocation19_spill] sm:$0xff] }
 0x299   : > { %v4256_v27 = vadd.f32 %v9635_v31, %v4013_v19  ;;  %v4603_v28 = vsel %vm525_vm0, %v9637_v39, 0  ;;  %v9643_v19 = vld [vmem:[#allocation113_spill] sm:$0xff]  ;;  %v9646_v31 = vld [vmem:[#allocation23_spill] sm:$0xff] }
 0x29a   : > { %v4257_v12 = vadd.f32 %v9636_v59, %v4014_v4  ;;  %5362 = vmatprep.subr.msk.bf16.mxu1 %vm525_vm0, %v4494_v11  ;;  %v1169_v22 = vpop.permute.xlu1 %1168  ;;  %v9647_v59 = vld [vmem:[#allocation26_spill] sm:$0xff] }
 0x29b   : > { %v4311_v52 = vadd.f32 %v8583_v56, %v4256_v27  ;;  %v1271_v1 = vadd.f32 %v1169_v22, %v9638_v30  ;;  %v2543_v45 = vpop.permute.xlu0 %2542  ;;  %v8683_v30 = vld [vmem:[%s8931_s3 + $0x8] sm:$0xff]  }
 0x29c   : > { %v2646_v9 = vadd.f32 %v2543_v45, %v2356_v51  ;;  %v4312_v7 = vadd.f32 %v8583_v56, %v4257_v12 }
 0x29d   : > { %5301 = vmatpush3.bf16.xpose.msra.mxu1 %v4603_v28  ;;  %vm4359_vm5 = vcmp.ge.f32.partialorder %v4311_v52, 0.0  ;;  %v4407_v40 = vmul.f32 0.01, %v4311_v52  ;;  %v1514_v36 = vadd.f32 %v9639_v15, %v1271_v1  ;;  %v9649_v15 = vld [vmem:[#allocation66_spill] sm:$0xff] }
 0x29e   : > { %v2889_v62 = vadd.f32 %v9640_v10, %v2646_v9  ;;  %v3905_v34 = vpop.permute.xlu1 %3904  ;;  %v4408_v6 = vmul.f32 0.01, %v4312_v7  ;;  %vm4360_vm2 = vcmp.ge.f32.partialorder %v4312_v7, 0.0  ;;  %v9648_v9 = vld [vmem:[#allocation119_spill] sm:$0xff] }
 0x29f   : > { %v4015_v32 = vadd.f32 %v3905_v34, %v8502_v29  ;;  %v3907_v23 = vpop.permute.xlu0 %3906  ;;  %v4455_v20 = vsel %vm4359_vm5, %v4311_v52, %v4407_v40  ;;  %v2357_v17 = vadd.f32 %v9641_v3, %v1514_v36  ;;  %v9644_v29 = vpack.c.bf16 %v8450_v25, %v8423_v21 }
 0x2a0   : > { %v4016_v53 = vadd.f32 %v3907_v23, %v8522_v49  ;;  %v4495_v41 = vpack.c.bf16 %v4455_v20, %v4454_v55  ;;  %v8662_v16 = vadd.f32 %v8299_v33, %v2889_v62  ;;  %v9645_v33 = vld [vmem:[#allocation21_spill] sm:$0xff]  ;;  %v4456_v39 = vsel %vm4360_vm2, %v4312_v7, %v4408_v6  ;;  %v9651_v7 = vld [vmem:[#allocation22_spill] sm:$0xff] }
 0x2a1   : > { %v4258_v0 = vadd.f32 %v9642_v35, %v4015_v32  ;;  %v4606_v47 = vsel %vm525_vm0, %v9644_v29, 0 }
 0x2a2   : > { %v4259_v18 = vadd.f32 %v9643_v19, %v4016_v53  ;;  %5363 = vmatprep.subr.msk.bf16.mxu1 %vm525_vm0, %v4495_v41  ;;  %v2545_v60 = vpop.permute.xlu1 %2544  ;;  %v9653_v41 = vld [vmem:[#allocation69_spill] sm:$0xff] }
 0x2a3   : > { %v4313_v4 = vadd.f32 %v8583_v56, %v4258_v0  ;;  %v2647_v49 = vadd.f32 %v2545_v60, %v2357_v17  ;;  %v1171_v11 = vpop.permute.xlu0 %1170  ;;  %v9652_v17 = vld [vmem:[#allocation30_spill] sm:$0xff] }
 0x2a4   : > { %v1272_v58 = vadd.f32 %v1171_v11, %v9645_v33  ;;  %v4314_v5 = vadd.f32 %v8583_v56, %v4259_v18 }
 0x2a5   : > { %5303 = vmatpush3.bf16.xpose.msra.mxu1 %v4606_v47  ;;  %vm4361_vm4 = vcmp.ge.f32.partialorder %v4313_v4, 0.0  ;;  %v4409_v51 = vmul.f32 0.01, %v4313_v4  ;;  %v2890_v27 = vadd.f32 %v9646_v31, %v2647_v49  ;;  %v9655_v31 = vld [vmem:[#allocation88_spill] sm:$0xff] }
 0x2a6   : > { %v1515_v12 = vadd.f32 %v9647_v59, %v1272_v58  ;;  %v3909_v21 = vpop.permute.xlu1 %3908  ;;  %v4410_v10 = vmul.f32 0.01, %v4314_v5  ;;  %vm4362_vm6 = vcmp.ge.f32.partialorder %v4314_v5, 0.0  ;;  %v9654_v58 = vld [vmem:[#allocation72_spill] sm:$0xff] }
 0x2a7   : > { %v4017_v25 = vadd.f32 %v3909_v21, %v8553_v43  ;;  %v3911_v22 = vpop.permute.xlu0 %3910  ;;  %v4457_v28 = vsel %vm4361_vm4, %v4313_v4, %v4409_v51  ;;  %v8678_v52 = vadd.f32 %v8358_v14, %v2890_v27  ;;  %v9650_v43 = vld [vmem:[#allocation92_spill] sm:$0xff]  ;;  %v8693_v14 = vld [vmem:[%s8931_s3] sm:$0xff]   ;;  %v8710_v4 = vld [vmem:[%s8931_s3 + $0x10] sm:$0xff]  }
 0x2a8   : > { %v4018_v1 = vadd.f32 %v3911_v22, %v8590_v24  ;;  %v4496_v45 = vpack.c.bf16 %v4457_v28, %v4456_v39  ;;  %v2358_v40 = vadd.f32 %v9648_v9, %v1515_v12  ;;  %v4458_v19 = vsel %vm4362_vm6, %v4314_v5, %v4410_v10  ;;  %v9657_v22 = vld [vmem:[#allocation80_spill] sm:$0xff] }
 0x2a9   : > { %v4260_v36 = vadd.f32 %v9649_v15, %v4017_v25 }
 0x2aa   : > { %v4261_v62 = vadd.f32 %v9650_v43, %v4018_v1  ;;  %5364 = vmatprep.subr.msk.bf16.mxu1 %vm525_vm0, %v4496_v45  ;;  %v1173_v34 = vpop.permute.xlu1 %1172  ;;  %v4633_v24 = vsel %vm525_vm0, %v4496_v45, 0  ;;  %v9658_v1 = vld [vmem:[#allocation32_spill] sm:$0xff] }
 0x2ab   : > { %v4315_v55 = vadd.f32 %v8583_v56, %v4260_v36  ;;  %v1273_v32 = vadd.f32 %v1173_v34, %v9651_v7  ;;  %v2547_v23 = vpop.permute.xlu0 %2546 }
 0x2ac   : > { %5305 = vmatmul.mubr.msk.bf16.vlgmr.msra.gmra.mrb[136].mxu1 %vm525_vm0, %v8693_v14  ;;  %v2648_v20 = vadd.f32 %v2547_v23, %v2358_v40  ;;  %v4316_v18 = vadd.f32 %v8583_v56, %v4261_v62  ;;  %v8732_v62 = vld [vmem:[%s8931_s3 + $0x18] sm:$0xff]  }
 0x2ad   : > { %5325 = vmatpush3.bf16.xpose.msra.mxu1 %v4633_v24  ;;  %5306 = vmatprep.mubr.msk.bf16.mxu1 %vm525_vm0, %v8683_v30  ;;  %vm4363_vm12 = vcmp.ge.f32.partialorder %v4315_v55, 0.0  ;;  %v4411_v3 = vmul.f32 0.01, %v4315_v55  ;;  %v1516_v53 = vadd.f32 %v9652_v17, %v1273_v32  ;;  %v9660_v32 = vld [vmem:[#allocation39_spill] sm:$0xff] }
 0x2ae   : > { %v2891_v35 = vadd.f32 %v9653_v41, %v2648_v20  ;;  %v3913_v0 = vpop.permute.xlu1 %3912  ;;  %vm4364_vm13 = vcmp.ge.f32.partialorder %v4316_v18, 0.0 }
 0x2af   : > { %v4019_v60 = vadd.f32 %v3913_v0, %v8606_v50  ;;  %v3915_v29 = vpop.permute.xlu0 %3914  ;;  %v2359_v47 = vadd.f32 %v8275_v26, %v1516_v53  ;;  %v4459_v6 = vsel %vm4363_vm12, %v4315_v55, %v4411_v3  ;;  %v4412_v50 = vmul.f32 0.01, %v4316_v18  ;;  %v9659_v55 = vld [vmem:[#allocation120_spill] sm:$0xff]  ;;  %v9661_v3 = vld [vmem:[#allocation79_spill] sm:$0xff] }
 0x2b0   : > { %v4020_v49 = vadd.f32 %v3915_v29, %v8626_v37  ;;  %v4497_v11 = vpack.c.bf16 %v4459_v6, %v4458_v19  ;;  %v3734_v33 = vadd.f32 %v8367_v63, %v2891_v35  ;;  %v9656_v63 = vld [vmem:[#allocation27_spill] sm:$0xff]  ;;  %v9664_v29 = vld [vmem:[#allocation73_spill] sm:$0xff] }
 0x2b1   : > { %v4262_v51 = vadd.f32 %v9654_v58, %v4019_v60  ;;  %v4460_v36 = vsel %vm4364_vm13, %v4316_v18, %v4412_v50  ;;  %v9663_v18 = vld [vmem:[#allocation36_spill] sm:$0xff] }
 0x2b2   : > { %v4263_v27 = vadd.f32 %v9655_v31, %v4020_v49  ;;  %v2549_v5 = vpop.permute.xlu1 %2548  ;;  %5365 = vmatprep.subr.msk.bf16.mxu1 %vm525_vm0, %v4497_v11  ;;  %v4636_v26 = vsel %vm525_vm0, %v4497_v11, 0  ;;  %v9665_v31 = vld [vmem:[#allocation78_spill] sm:$0xff] }
 0x2b3   : > { %v4317_v59 = vadd.f32 %v8583_v56, %v4262_v51  ;;  %v2649_v12 = vadd.f32 %v2549_v5, %v2359_v47  ;;  %v1175_v37 = vpop.permute.xlu0 %1174 }
 0x2b4   : > { %5307 = vmatmul.mubr.msk.bf16.gmra.mrb[140].mxu1 %vm525_vm0, %v8683_v30  ;;  %v1274_v21 = vadd.f32 %v1175_v37, %v9656_v63  ;;  %v4318_v28 = vadd.f32 %v8583_v56, %v4263_v27  ;;  %v9667_v63 = vld [vmem:[#allocation46_spill] sm:$0xff] }
 0x2b5   : > { %5327 = vmatpush3.bf16.xpose.msra.mxu1 %v4636_v26  ;;  %5308 = vmatprep.mubr.msk.bf16.mxu1 %vm525_vm0, %v8710_v4  ;;  %vm4365_vm14 = vcmp.ge.f32.partialorder %v4317_v59, 0.0  ;;  %v4413_v25 = vmul.f32 0.01, %v4317_v59  ;;  %v2892_v39 = vadd.f32 %v9657_v22, %v2649_v12  ;;  %v9666_v12 = vld [vmem:[#allocation29_spill] sm:$0xff] }
 0x2b6   : > { %v1517_v45 = vadd.f32 %v9658_v1, %v1274_v21  ;;  %v3917_v9 = vpop.permute.xlu1 %3916  ;;  %v4414_v20 = vmul.f32 0.01, %v4318_v28  ;;  %vm4366_vm15 = vcmp.ge.f32.partialorder %v4318_v28, 0.0 }
 0x2b7   : > { %v4021_v40 = vadd.f32 %v3917_v9, %v8642_v42  ;;  %v3919_v15 = vpop.permute.xlu0 %3918  ;;  %v4461_v10 = vsel %vm4365_vm14, %v4317_v59, %v4413_v25  ;;  %v3735_v43 = vadd.f32 %v8406_v13, %v2892_v39  ;;  %v9669_v9 = vld [vmem:[#allocation89_spill] sm:$0xff] }
 0x2b8   : > { %v4022_v34 = vadd.f32 %v3919_v15, %v8662_v16  ;;  %v4498_v24 = vpack.c.bf16 %v4461_v10, %v4460_v36  ;;  %v2360_v7 = vadd.f32 %v9659_v55, %v1517_v45  ;;  %v9662_v16 = vld [vmem:[#allocation28_spill] sm:$0xff]  ;;  %v4462_v49 = vsel %vm4366_vm15, %v4318_v28, %v4414_v20  ;;  %v9670_v36 = vld [vmem:[#allocation38_spill] sm:$0xff] }
 0x2b9   : > { %v4264_v23 = vadd.f32 %v9660_v32, %v4021_v40 }
 0x2ba   : > { %v4265_v42 = vadd.f32 %v9661_v3, %v4022_v34  ;;  %v1177_v17 = vpop.permute.xlu1 %1176  ;;  %5366 = vmatprep.subr.msk.bf16.mxu1 %vm525_vm0, %v4498_v24  ;;  %v4639_v13 = vsel %vm525_vm0, %v4498_v24, 0 }
 0x2bb   : > { %v4319_v53 = vadd.f32 %v8583_v56, %v4264_v23  ;;  %v1275_v41 = vadd.f32 %v1177_v17, %v9662_v16  ;;  %v2551_v35 = vpop.permute.xlu0 %2550 }
 0x2bc   : > { %5309 = vmatmul.mubr.msk.bf16.gmra.mrb[144].mxu1 %vm525_vm0, %v8710_v4  ;;  %v2650_v0 = vadd.f32 %v2551_v35, %v2360_v7  ;;  %v4320_v11 = vadd.f32 %v8583_v56, %v4265_v42  ;;  %v9671_v42 = vld [vmem:[#allocation91_spill] sm:$0xff] }
 0x2bd   : > { %5329 = vmatpush3.bf16.xpose.msra.mxu1 %v4639_v13  ;;  %5310 = vmatprep.mubr.msk.bf16.mxu1 %vm525_vm0, %v8732_v62  ;;  %vm4367_vm1 = vcmp.ge.f32.partialorder %v4319_v53, 0.0  ;;  %v4415_v19 = vmul.f32 0.01, %v4319_v53  ;;  %v1518_v60 = vadd.f32 %v9663_v18, %v1275_v41 }
 0x2be   : > { %v2893_v47 = vadd.f32 %v9664_v29, %v2650_v0  ;;  %v3921_v6 = vpop.permute.xlu1 %3920  ;;  %vm4368_vm3 = vcmp.ge.f32.partialorder %v4320_v11, 0.0  ;;  %v9673_v0 = vld [vmem:[#allocation34_spill] sm:$0xff] }
 0x2bf   : > { %v4023_v58 = vadd.f32 %v3921_v6, %v8678_v52  ;;  %v3923_v51 = vpop.permute.xlu0 %3922  ;;  %v2361_v27 = vadd.f32 %v9665_v31, %v1518_v60  ;;  %v4463_v5 = vsel %vm4367_vm1, %v4319_v53, %v4415_v19  ;;  %v4416_v52 = vmul.f32 0.01, %v4320_v11  ;;  %v9672_v53 = vld [vmem:[#allocation98_spill] sm:$0xff]  ;;  %v9674_v60 = vld [vmem:[#allocation41_spill] sm:$0xff] }
 0x2c0   : > { %v4024_v26 = vadd.f32 %v3923_v51, %v3734_v33  ;;  %v4499_v50 = vpack.c.bf16 %v4463_v5, %v4462_v49  ;;  %v3736_v59 = vadd.f32 %v8426_v2, %v2893_v47  ;;  %v9668_v2 = vld [vmem:[#allocation33_spill] sm:$0xff] }
 0x2c1   : > { %v4266_v37 = vadd.f32 %v9666_v12, %v4023_v58  ;;  %v4464_v7 = vsel %vm4368_vm3, %v4320_v11, %v4416_v52  ;;  %v9676_v52 = vld [vmem:[#allocation86_spill] sm:$0xff] }
 0x2c2   : > { %v4267_v21 = vadd.f32 %v9667_v63, %v4024_v26  ;;  %v2553_v25 = vpop.permute.xlu1 %2552  ;;  %5367 = vmatprep.subr.msk.bf16.mxu1 %vm525_vm0, %v4499_v50  ;;  %v4642_v22 = vsel %vm525_vm0, %v4499_v50, 0  ;;  %v9675_v26 = vld [vmem:[#allocation44_spill] sm:$0xff] }
 0x2c3   : > { %v4321_v39 = vadd.f32 %v8583_v56, %v4266_v37  ;;  %v2651_v28 = vadd.f32 %v2553_v25, %v2361_v27  ;;  %v1179_v33 = vpop.permute.xlu0 %1178 }
 0x2c4   : > { %5311 = vmatmul.mubr.msk.bf16.gmra.mrb[148].mxu1 %vm525_vm0, %v8732_v62  ;;  %v1276_v1 = vadd.f32 %v1179_v33, %v9668_v2  ;;  %v4322_v15 = vadd.f32 %v8583_v56, %v4267_v21 }
 0x2c5   : > { %5331 = vmatpush3.bf16.xpose.msra.mxu1 %v4642_v22  ;;  %5340 = vmatprep.mubr.msk.bf16.mxu1 %vm525_vm0, %v8693_v14  ;;  %vm4369_vm7 = vcmp.ge.f32.partialorder %v4321_v39, 0.0  ;;  %v4417_v45 = vmul.f32 0.01, %v4321_v39  ;;  %v2894_v40 = vadd.f32 %v9669_v9, %v2651_v28 }
 0x2c6   : > { %v1519_v10 = vadd.f32 %v9670_v36, %v1276_v1  ;;  %v3925_v34 = vpop.permute.xlu1 %3924  ;;  %v4418_v13 = vmul.f32 0.01, %v4322_v15  ;;  %vm4370_vm8 = vcmp.ge.f32.partialorder %v4322_v15, 0.0 }
 0x2c7   : > { %v4025_v24 = vadd.f32 %v3925_v34, %v3735_v43  ;;  %v3927_v55 = vpop.permute.xlu0 %3926  ;;  %v4465_v32 = vsel %vm4369_vm7, %v4321_v39, %v4417_v45  ;;  %v3737_v23 = vadd.f32 %v8453_v38, %v2894_v40 }
 0x2c8   : > { %v4026_v20 = vadd.f32 %v3927_v55, %v3736_v59  ;;  %v4500_v14 = vpack.c.bf16 %v4465_v32, %v4464_v7  ;;  %v2362_v3 = vadd.f32 %v8437_v57, %v1519_v10  ;;  %v4466_v49 = vsel %vm4370_vm8, %v4322_v15, %v4418_v13 }
 0x2c9   : > { %v4268_v17 = vadd.f32 %v9671_v42, %v4025_v24 }
 0x2ca   : > { %v4269_v16 = vadd.f32 %v9672_v53, %v4026_v20  ;;  %v1181_v41 = vpop.permute.xlu1 %1180  ;;  %5368 = vmatprep.subr.msk.bf16.mxu1 %vm525_vm0, %v4500_v14  ;;  %v4645_v35 = vsel %vm525_vm0, %v4500_v14, 0  ;;  %v4794_v14 = vld [vmem:[%s286_s30] sm:$0x7] }
 0x2cb   : > { %v4323_v43 = vadd.f32 %v8583_v56, %v4268_v17  ;;  %v1277_v19 = vadd.f32 %v1181_v41, %v9673_v0 }
 0x2cc   : > { %v4324_v11 = vadd.f32 %v8583_v56, %v4269_v16 }
 0x2cd   : > { %5333 = vmatpush3.bf16.xpose.msra.mxu1 %v4645_v35  ;;  %v2555_v38 = vpop.permute.xlu0 %2554  ;;  %vm4371_vm9 = vcmp.ge.f32.partialorder %v4323_v43, 0.0  ;;  %v4419_v57 = vmul.f32 0.01, %v4323_v43  ;;  %v1520_v29 = vadd.f32 %v9674_v60, %v1277_v19 }
 0x2ce   : > { %v2652_v18 = vadd.f32 %v2555_v38, %v2362_v3  ;;  %v3929_v6 = vpop.permute.xlu1 %3928  ;;  %v4420_v63 = vmul.f32 0.01, %v4324_v11  ;;  %vm4372_vm10 = vcmp.ge.f32.partialorder %v4324_v11, 0.0 }
 0x2cf   : > { %v4027_v58 = vadd.f32 %v3929_v6, %v3737_v23  ;;  %v2363_v51 = vadd.f32 %v8474_v8, %v1520_v29  ;;  %v4467_v31 = vsel %vm4371_vm9, %v4323_v43, %v4419_v57  ;;  %v4796_v23 = vlaneseq }
 0x2d0   : > { %v2895_v47 = vadd.f32 %v8447_v46, %v2652_v18  ;;  %v4501_v5 = vpack.c.bf16 %v4467_v31, %v4466_v49  ;;  %v4468_v28 = vsel %vm4372_vm10, %v4324_v11, %v4420_v63 }
 0x2d1   : > { %v4270_v50 = vadd.f32 %v9675_v26, %v4027_v58  ;;  %v3931_v59 = vpop.permute.xlu0 %3930  ;;  %v4797_v20 = vshrl.u32 %v4796_v23, 7 }
 0x2d2   : > { %v3738_v27 = vadd.f32 %v8477_v48, %v2895_v47  ;;  %v2557_v12 = vpop.permute.xlu1 %2556  ;;  %5369 = vmatprep.subr.msk.bf16.mxu1 %vm525_vm0, %v4501_v5  ;;  %v4648_v46 = vsel %vm525_vm0, %v4501_v5, 0 }
 0x2d3   : > { %v4325_v21 = vadd.f32 %v8583_v56, %v4270_v50  ;;  %v2653_v25 = vadd.f32 %v2557_v12, %v2363_v51  ;;  %v4798_v13 = vsub.s32 0, %v4797_v20  ;;  %v4802_v53 = vsub.s32 1, %v4797_v20 }
 0x2d4   : > { %v4028_v37 = vadd.f32 %v3931_v59, %v3738_v27 }
 0x2d5   : > { %5335 = vmatpush3.bf16.xpose.msra.mxu1 %v4648_v46  ;;  %vm4373_vm11 = vcmp.ge.f32.partialorder %v4325_v21, 0.0  ;;  %v4421_v48 = vmul.f32 0.01, %v4325_v21  ;;  %v2896_v22 = vadd.f32 %v8484_v54, %v2653_v25  ;;  %v8809_v41 = vrot.slane %v4794_v14, %v4798_v13 }
 0x2d6   : > { %v4271_v8 = vadd.f32 %v8489_v44, %v4028_v37  ;;  %v8811_v43 = vrot.slane %v4794_v14, %v4802_v53 }
 0x2d7   : > { %v3739_v39 = vadd.f32 %v9676_v52, %v2896_v22  ;;  %v4469_v33 = vsel %vm4373_vm11, %v4325_v21, %v4421_v48  ;;  %v3933_v2 = vpop.permute.xlu1 %3932 }
 0x2d8   : > { %v4502_v1 = vpack.c.bf16 %v4469_v33, %v4468_v28  ;;  %v4326_v45 = vadd.f32 %v8583_v56, %v4271_v8 }
 0x2d9   : > { %v4029_v9 = vadd.f32 %v3933_v2, %v3739_v39 }
 0x2da   : > { %5370 = vmatprep.subr.msk.bf16.mxu1 %vm525_vm0, %v4502_v1  ;;  %v4651_v40 = vsel %vm525_vm0, %v4502_v1, 0  ;;  %v4422_v44 = vmul.f32 0.01, %v4326_v45  ;;  %vm4374_vm5 = vcmp.ge.f32.partialorder %v4326_v45, 0.0 }
 0x2db   : > { %v4272_v15 = vadd.f32 %v8498_v61, %v4029_v9 }
 0x2dc   : > { %v4470_v10 = vsel %vm4374_vm5, %v4326_v45, %v4422_v44 }
 0x2dd   : > { %5337 = vmatpush3.bf16.xpose.msra.mxu1 %v4651_v40  ;;  %v4327_v36 = vadd.f32 %v8583_v56, %v4272_v15 }
 0x2df   : > { %vm4375_vm2 = vcmp.ge.f32.partialorder %v4327_v36, 0.0  ;;  %v4423_v54 = vmul.f32 0.01, %v4327_v36 }
 0x2e1   : > { %v4471_v34 = vsel %vm4375_vm2, %v4327_v36, %v4423_v54 }
 0x2e2   : > { %v4503_v24 = vpack.c.bf16 %v4471_v34, %v4470_v10 }
 0x2e4   : > { %5371 = vmatprep.subr.msk.bf16.mxu1 %vm525_vm0, %v4503_v24  ;;  %v4654_v55 = vsel %vm525_vm0, %v4503_v24, 0 }
 0x2e5   : > { %5339 = vmatpush3.bf16.xpose.msra.mxu1 %v4654_v55 }
 0x2ec   : > { %5341 = vmatmul.mubr.msk.bf16.vlgmr.msra.gmra.mrb[152].mxu1 %vm525_vm0, %v8683_v30  ;;  %v4806_v30 = vsub.s32 2, %v4797_v20 }
 0x2ed   : > { %5344 = vmatprep.mubr.msk.bf16.mxu1 %vm525_vm0, %v8710_v4  ;;  %v8813_v0 = vpop.permute.xlu1 %4519 }
 0x2ee   : > { %v8802_v3 = vrot.slane %v4794_v14, %v4806_v30 }
 0x2f1   : > { %v4525_v51 = vpop.permute.xlu1 %4524 }
 0x2f2   : > { %v8805_v16 = vpop.permute.xlu0 %4514 }
 0x2f4   : > { %5345 = vmatmul.mubr.msk.bf16.gmra.mrb[156].mxu1 %vm525_vm0, %v8732_v62  ;;  %v2117_v61 = vpop.f32.mrb[132].mxu1 }
 0x2f5   : > { %v2118_v56 = vpop.f32.mrb[133].mxu1 }
 0x2f6   : > { %v2119_v7 = vpop.f32.mrb[134].mxu1  ;;  %v4530_v27 = vpop.permute.xlu0 %4529 }
 0x2f7   : > { %v2120_v32 = vpop.f32.mrb[135].mxu1  ;;  %v4535_v48 = vpop.permute.xlu1 %4534 }
 0x2fa   : > { %v4540_v52 = vpop.permute.xlu0 %4539 }
 0x2fb   : > { %v4545_v54 = vpop.permute.xlu1 %4544 }
 0x2fe   : > { %v4550_v34 = vpop.permute.xlu0 %4549 }
 0x341   : > { %v3493_v4 = vpop.f32.mrb[172].mxu0 }
 0x342   : > { %v3494_v42 = vpop.f32.mrb[173].mxu0 }
 0x343   : > { %v3495_v62 = vpop.f32.mrb[174].mxu0 }
 0x344   : > { %v3496_v17 = vpop.f32.mrb[175].mxu0 }
 0x37f   : > { %v4690_v35 = vpop.f32.mrb[136].mxu1 }
 0x380   : > { %v4692_v19 = vpop.f32.mrb[137].mxu1  ;;  %v4691_v38 = vadd.f32 %v4690_v35, %v8805_v16 }
 0x381   : > { %v4694_v18 = vpop.f32.mrb[138].mxu1  ;;  %v4693_v57 = vadd.f32 %v4692_v19, %v8805_v16 }
 0x382   : > { %v4696_v60 = vpop.f32.mrb[139].mxu1  ;;  %v4811_v29 = vmul.f32 %v8809_v41, %v4691_v38  ;;  %v4695_v47 = vadd.f32 %v4694_v18, %v8813_v0 }
 0x383   : > { %v4812_v6 = vmul.f32 %v8811_v43, %v4693_v57  ;;  %v4697_v49 = vadd.f32 %v4696_v60, %v8813_v0 }
 0x384   : > { %4835 = vst [vmem:[%s8821_s8] sm:$0xff] %v4811_v29  ;;  %v4814_v11 = vmul.f32 %v8809_v41, %v4695_v47 }
 0x385   : > { %4836 = vst [vmem:[%s8821_s8 + $0x8] sm:$0xff] %v4812_v6  ;;  %v4815_v58 = vmul.f32 %v8811_v43, %v4697_v49 }
 0x386   : > { %4838 = vst [vmem:[%s8821_s8 + $0x18] sm:$0xff] %v4814_v11 }
 0x387   : > { %4839 = vst [vmem:[%s8821_s8 + $0x20] sm:$0xff] %v4815_v58  ;;  %v4700_v31 = vpop.f32.mrb[140].mxu1 }
 0x388   : > { %v4702_v5 = vpop.f32.mrb[141].mxu1  ;;  %v4701_v26 = vadd.f32 %v4700_v31, %v4525_v51 }
 0x389   : > { %v4704_v50 = vpop.f32.mrb[142].mxu1  ;;  %v4703_v59 = vadd.f32 %v4702_v5, %v4525_v51 }
 0x38a   : > { %v4706_v12 = vpop.f32.mrb[143].mxu1  ;;  %v4705_v37 = vadd.f32 %v4704_v50, %v4530_v27  ;;  %v4817_v46 = vmul.f32 %v8809_v41, %v4701_v26 }
 0x38b   : > { %v4707_v63 = vadd.f32 %v4706_v12, %v4530_v27  ;;  %v4818_v21 = vmul.f32 %v8811_v43, %v4703_v59 }
 0x38c   : > { %v4820_v25 = vmul.f32 %v8809_v41, %v4705_v37  ;;  %4841 = vst [vmem:[%s8821_s8 + $0x30] sm:$0xff] %v4817_v46 }
 0x38d   : > { %v4821_v8 = vmul.f32 %v8811_v43, %v4707_v63  ;;  %4842 = vst [vmem:[%s8821_s8 + $0x38] sm:$0xff] %v4818_v21 }
 0x38e   : > { %4844 = vst [vmem:[%s8821_s8 + $0x48] sm:$0xff] %v4820_v25 }
 0x38f   : > { %4845 = vst [vmem:[%s8821_s8 + $0x50] sm:$0xff] %v4821_v8  ;;  %v4710_v22 = vpop.f32.mrb[144].mxu1 }
 0x390   : > { %v4712_v39 = vpop.f32.mrb[145].mxu1  ;;  %v4711_v28 = vadd.f32 %v4710_v22, %v4535_v48 }
 0x391   : > { %v4714_v33 = vpop.f32.mrb[146].mxu1  ;;  %v4713_v2 = vadd.f32 %v4712_v39, %v4535_v48 }
 0x392   : > { %v4716_v1 = vpop.f32.mrb[147].mxu1  ;;  %v4715_v45 = vadd.f32 %v4714_v33, %v4540_v52  ;;  %v4823_v9 = vmul.f32 %v8809_v41, %v4711_v28 }
 0x393   : > { %v4717_v40 = vadd.f32 %v4716_v1, %v4540_v52  ;;  %v4824_v15 = vmul.f32 %v8811_v43, %v4713_v2 }
 0x394   : > { %v4826_v44 = vmul.f32 %v8809_v41, %v4715_v45  ;;  %4847 = vst [vmem:[%s8821_s8 + $0x60] sm:$0xff] %v4823_v9 }
 0x395   : > { %v4827_v36 = vmul.f32 %v8811_v43, %v4717_v40  ;;  %4848 = vst [vmem:[%s8821_s8 + $0x68] sm:$0xff] %v4824_v15 }
 0x396   : > { %4850 = vst [vmem:[%s8821_s8 + $0x78] sm:$0xff] %v4826_v44 }
 0x397   : > { %4851 = vst [vmem:[%s8821_s8 + $0x80] sm:$0xff] %v4827_v36  ;;  %v4720_v10 = vpop.f32.mrb[148].mxu1 }
 0x398   : > { %v4722_v24 = vpop.f32.mrb[149].mxu1  ;;  %v4721_v55 = vadd.f32 %v4720_v10, %v4545_v54 }
 0x399   : > { %v4724_v61 = vpop.f32.mrb[150].mxu1  ;;  %v4723_v56 = vadd.f32 %v4722_v24, %v4545_v54 }
 0x39a   : > { %v4726_v7 = vpop.f32.mrb[151].mxu1  ;;  %v4725_v32 = vadd.f32 %v4724_v61, %v4550_v34  ;;  %v4829_v23 = vmul.f32 %v8809_v41, %v4721_v55 }
 0x39b   : > { %v4727_v20 = vadd.f32 %v4726_v7, %v4550_v34  ;;  %v4830_v30 = vmul.f32 %v8811_v43, %v4723_v56 }
 0x39c   : > { %v4832_v14 = vmul.f32 %v8809_v41, %v4725_v32  ;;  %4853 = vst [vmem:[%s8821_s8 + $0x90] sm:$0xff] %v4829_v23 }
 0x39d   : > { %v4833_v4 = vmul.f32 %v8811_v43, %v4727_v20  ;;  %4854 = vst [vmem:[%s8821_s8 + $0x98] sm:$0xff] %v4830_v30 }
 0x39e   : > { %4856 = vst [vmem:[%s8821_s8 + $0xa8] sm:$0xff] %v4832_v14 }
 0x39f   : > { %4857 = vst [vmem:[%s8821_s8 + $0xb0] sm:$0xff] %v4833_v4 }
 0x3bf   : > { %v5342_v42 = vpop.f32.mrb[152].mxu1 }
 0x3c0   : > { %v4772_v62 = vadd.f32 %v5342_v42, %v4525_v51  ;;  %v4763_v17 = vpop.f32.mrb[153].mxu1 }
 0x3c1   : > { %v4764_v13 = vadd.f32 %v4763_v17, %v8805_v16  ;;  %v5343_v53 = vpop.f32.mrb[154].mxu1 }
 0x3c2   : > { %v4819_v35 = vmul.f32 %v8802_v3, %v4772_v62  ;;  %v4775_v41 = vadd.f32 %v5343_v53, %v4530_v27  ;;  %v4766_v19 = vpop.f32.mrb[155].mxu1 }
 0x3c3   : > { %v4813_v43 = vmul.f32 %v8802_v3, %v4764_v13  ;;  %v4767_v38 = vadd.f32 %v4766_v19, %v8813_v0 }
 0x3c4   : > { %4843 = vst [vmem:[%s8821_s8 + $0x40] sm:$0xff] %v4819_v35  ;;  %v4822_v18 = vmul.f32 %v8802_v3, %v4775_v41 }
 0x3c5   : > { %4837 = vst [vmem:[%s8821_s8 + $0x10] sm:$0xff] %v4813_v43  ;;  %v4816_v57 = vmul.f32 %v8802_v3, %v4767_v38 }
 0x3c6   : > { %4846 = vst [vmem:[%s8821_s8 + $0x58] sm:$0xff] %v4822_v18 }
 0x3c7   : > { %4840 = vst [vmem:[%s8821_s8 + $0x28] sm:$0xff] %v4816_v57  ;;  %v5346_v16 = vpop.f32.mrb[156].mxu1 }
 0x3c8   : > { %v4788_v60 = vadd.f32 %v5346_v16, %v4545_v54  ;;  %v4779_v29 = vpop.f32.mrb[157].mxu1 }
 0x3c9   : > { %v4780_v47 = vadd.f32 %v4779_v29, %v4535_v48  ;;  %v5347_v6 = vpop.f32.mrb[158].mxu1 }
 0x3ca   : > { %v4831_v0 = vmul.f32 %v8802_v3, %v4788_v60  ;;  %v4791_v49 = vadd.f32 %v5347_v6, %v4550_v34  ;;  %v4782_v11 = vpop.f32.mrb[159].mxu1 }
 0x3cb   : > { %v4825_v58 = vmul.f32 %v8802_v3, %v4780_v47  ;;  %v4783_v51 = vadd.f32 %v4782_v11, %v4540_v52 }
 0x3cc   : > { %4855 = vst [vmem:[%s8821_s8 + $0xa0] sm:$0xff] %v4831_v0  ;;  %v4834_v31 = vmul.f32 %v8802_v3, %v4791_v49 }
 0x3cd   : > { %4849 = vst [vmem:[%s8821_s8 + $0x70] sm:$0xff] %v4825_v58  ;;  %v4828_v27 = vmul.f32 %v8802_v3, %v4783_v51 }
 0x3ce   : > { %4858 = vst [vmem:[%s8821_s8 + $0xb8] sm:$0xff] %v4834_v31 }
 0x3cf   : > { %4852 = vst [vmem:[%s8821_s8 + $0x88] sm:$0xff] %v4828_v27 }
 0x3d0   : > { %5570 = shalt.err (!%p5567_p5)
}
 0x3d1   : > { %s5571_s28 = scalar_lea.hbm %s8876_s15, 3072  ;;  %s5575_s17 = scalar_lea.hbm %s8934_s6, 6144 }
 0x3d2   : > { %p5572_p6 = scmp.ne.s32.totalorder %s8876_s15, %s5571_s28  ;;  %p5576_p10 = scmp.lt.u32.totalorder %s8876_s15, %s8934_s6 }
 0x3d3   : > { %p5577_p11 = scmp.lt.u32.totalorder %s5575_s17, %s5571_s28  ;;  %p5579_p13 = scmp.lt.u32.totalorder %s5571_s28, %s8876_s15 }
 0x3d4   : > { %p5573_p7 = pnand %p5572_p6, %p5717_p4 }
 0x3d5   : > { %p5578_p12 = por %p5577_p11, %p5576_p10 }
 0x3d6   : > { %p5574_p9 = pneg %p5573_p7 }
 0x3d7   : > { %p5580_p0 = por %p5579_p13, %p5578_p12 }
 0x3d9   : > { %p5581_p1 = pnand %p5580_p0, %p5574_p9 }
 0x3db   : > { %5584 = shalt.err (!%p5581_p1)
}
 0x3dc   : > { %s5640_s24 = smov 384   ;;  %s5641_s14 = smov 24  }
 0x3dd   : > { %5376 = dma.vmem_to_hbm [thread:$0]  (%p5717_p4), %s8869_s13, 3072, %s8876_s15, %s8882_s16, %s5640_s24, %s5640_s24, %s5641_s14  }
 0x3de PF: > { %p5382_p2 = scmp.ge.s32.totalorder %s5635_s26, 2  ;;  %s4890_s18 = sand.u32 1, %s5615_s21  }
 0x3df   : > { %s4891_s19 = scalar_lea.sflag [#allocation3], %s4890_s18 }
 0x3e0   : > { %p5379_p3 = pnand %p5382_p2, %p5724_p8 }
 0x3e2   : > { %5610 = dma.done.wait (!%p5379_p3), %s4891_s19, 3072  }
 0x3e3   : > { %5612 = vsyncadd (!%p5379_p3), %s4891_s19, 4294964224  ;;  %s19_s26 = sadd.s32 1, %s5635_s26   ;;  %s9677_s21 = smov %s5619_s22 }
 0x3e4   : > { %p16_p5 = scmp.ge.s32.totalorder %s19_s26, 4   ;;  %s9678_s22 = smov %s5623_s23 }
 0x3e5   : > { %s9679_s23 = smov %s5730_s10  ;;  %s9680_s24 = smov %s5631_s25 }
 0x3e6   : > { %s9681_s25 = smov %s9683_s29  ;;  %18 = sbr.rel (!%p16_p5) target bundleno = 4 (0x4), region = 87 }
 0x3ed   :  { %4896 = vsyncpa [#allocation3], 1 }
 0x3ee   :  { %4898 = vsyncpa [#allocation3 + $0x1], 1 }

</bundles_post_ra>
